<compile_context>
chip_gen: v5e
topology: v5e:2x2
jax: 0.10.0
libtpu: 0.0.40
codegen_flags: <defaults>
</compile_context>

<pallas_src>
import functools
import math

import numpy as np
import jax
import jax.numpy as jnp
from jax.experimental import pallas as pl
from jax.experimental.pallas import tpu as pltpu


# ----------------------------------------------------------------------------
# In-kernel helpers (traced inline inside the fused layer kernel)
# ----------------------------------------------------------------------------

def _layer_norm(z, gamma, beta, eps):
    mu = jnp.mean(z, axis=-1, keepdims=True)
    var = jnp.mean((z - mu) ** 2, axis=-1, keepdims=True)
    return (z - mu) * jax.lax.rsqrt(var + eps) * gamma + beta


def _attention(x, kvx, kpad, causal,
               wq_ref, bq_ref, wkv_ref, bkv_ref, wo_ref, bo_ref, g_ref, be_ref,
               q_s, kv_s, at_s, n_head, d_k, d_v, scale, eps):
    """x: (Lq, D) f32 query input / residual; kvx: (Lk, D) f32; kpad: (1, Lk) f32
    (1 = key is pad).  Returns LayerNorm(x + MHA(x, kvx, kvx)) as (Lq, D) f32."""
    Lq, Lk = x.shape[0], kvx.shape[0]

    # Fused projections: Q = x @ Wq, [K|V] = kv @ Wkv  (bf16 operands, f32 accumulate)
    q_s[...] = (jnp.dot(x.astype(jnp.bfloat16), wq_ref[...],
                        preferred_element_type=jnp.float32) + bq_ref[...])
    kv_s[...] = (jnp.dot(kvx.astype(jnp.bfloat16), wkv_ref[...],
                         preferred_element_type=jnp.float32) + bkv_ref[...])

    # Attention mask: key-pad broadcast over queries + in-kernel causal triangle.
    masked = jnp.broadcast_to(kpad, (Lq, Lk)) > 0.5
    if causal:
        row = jax.lax.broadcasted_iota(jnp.int32, (Lq, Lk), 0)
        col = jax.lax.broadcasted_iota(jnp.int32, (Lq, Lk), 1)
        masked = jnp.logical_or(masked, col > row)

    # Per-head attention (static unroll over heads; everything stays on-chip).
    for h in range(n_head):
        qh = q_s[:, h * d_k:(h + 1) * d_k].astype(jnp.bfloat16)              # (Lq, d_k)
        kh = kv_s[:, h * d_k:(h + 1) * d_k].astype(jnp.bfloat16)             # (Lk, d_k)
        vh = kv_s[:, n_head * d_k + h * d_v:
                     n_head * d_k + (h + 1) * d_v].astype(jnp.bfloat16)      # (Lk, d_v)

        # scores = qh @ kh^T  (NT dot_general, no explicit transpose op)
        s = jax.lax.dot_general(qh, kh, (((1,), (1,)), ((), ())),
                                preferred_element_type=jnp.float32) * scale
        s = jnp.where(masked, jnp.float32(-1e9), s)
        s = s - jnp.max(s, axis=-1, keepdims=True)
        p = jnp.exp(s)
        p = p * pl.reciprocal(jnp.sum(p, axis=-1, keepdims=True), approx=True)

        at_s[:, h * d_v:(h + 1) * d_v] = jnp.dot(
            p.astype(jnp.bfloat16), vh, preferred_element_type=jnp.float32)

    # Output projection + residual + LayerNorm.
    out = (jnp.dot(at_s[...].astype(jnp.bfloat16), wo_ref[...],
                   preferred_element_type=jnp.float32) + bo_ref[...])
    return _layer_norm(out + x, g_ref[...], be_ref[...], eps)


# ----------------------------------------------------------------------------
# Fused decoder-layer kernel (one grid step = one batch element)
# ----------------------------------------------------------------------------

def _decoder_layer_kernel(dec_ref, enc_ref, kps_ref, kpe_ref, np_ref,
                          # self-attention params
                          wq1, bq1, wkv1, bkv1, wo1, bo1, g1, be1,
                          # cross-attention params
                          wq2, bq2, wkv2, bkv2, wo2, bo2, g2, be2,
                          # feed-forward params
                          w1, b1, w2, b2, g3, be3,
                          o_ref,
                          q_s, kvs_s, kve_s, at_s,
                          *, n_head, d_k, d_v, scale, eps):
    np_m = np_ref[...]                                   # (Lq, 1)  1 = query not pad
    x = dec_ref[...]                                     # (Lq, D)  f32
    enc = enc_ref[...]                                   # (Lk, D)  f32

    # ---- masked causal self-attention + residual + LN + non-pad mask -------
    h = _attention(x, x, kps_ref[...], True,
                   wq1, bq1, wkv1, bkv1, wo1, bo1, g1, be1,
                   q_s, kvs_s, at_s, n_head, d_k, d_v, scale, eps) * np_m

    # ---- encoder/decoder cross attention + residual + LN + non-pad mask ----
    h = _attention(h, enc, kpe_ref[...], False,
                   wq2, bq2, wkv2, bkv2, wo2, bo2, g2, be2,
                   q_s, kve_s, at_s, n_head, d_k, d_v, scale, eps) * np_m

    # ---- position-wise feed-forward + residual + LN + non-pad mask ---------
    f = (jnp.dot(h.astype(jnp.bfloat16), w1[...],
                 preferred_element_type=jnp.float32) + b1[...])
    f = jnp.maximum(f, 0.0)
    f = (jnp.dot(f.astype(jnp.bfloat16), w2[...],
                 preferred_element_type=jnp.float32) + b2[...])
    y = _layer_norm(f + h, g3[...], be3[...], eps) * np_m

    o_ref[...] = y.astype(o_ref.dtype)


def fused_decoder_layer(dec_in, enc_out, kpad_self, kpad_enc, np_mask, p, cfg):
    """dec_in: (B, Lq, D), enc_out: (B, Lk, D), kpad_self: (B, 1, Lq) f32,
    kpad_enc: (B, 1, Lk) f32, np_mask: (B, Lq, 1) f32.  Returns (B, Lq, D)."""
    B, Lq, D = dec_in.shape
    Lk = enc_out.shape[1]
    H, Dk, Dv, Dff = cfg["n_head"], cfg["d_k"], cfg["d_v"], cfg["d_ff"]

    sa, ca, ff = p["self_attn"], p["cross_attn"], p["ffn"]

    kernel = functools.partial(
        _decoder_layer_kernel, n_head=H, d_k=Dk, d_v=Dv,
        scale=1.0 / math.sqrt(Dk), eps=1e-5)

    def rep(shape):                      # replicated (weight) operand spec
        return pl.BlockSpec(shape, lambda b, _s=shape: (0,) * len(_s))

    return pl.pallas_call(
        kernel,
        out_shape=jax.ShapeDtypeStruct((B, Lq, D), dec_in.dtype),
        grid=(B,),
        in_specs=[
            pl.BlockSpec((None, Lq, D), lambda b: (b, 0, 0)),        # dec input / residual
            pl.BlockSpec((None, Lk, D), lambda b: (b, 0, 0)),        # encoder output
            pl.BlockSpec((None, 1, Lq), lambda b: (b, 0, 0)),        # self key-pad mask
            pl.BlockSpec((None, 1, Lk), lambda b: (b, 0, 0)),        # enc key-pad mask
            pl.BlockSpec((None, Lq, 1), lambda b: (b, 0, 0)),        # non-pad mask
            # self-attention weights (bf16) / biases / LN params (f32)
            rep((D, H * Dk)), rep((1, H * Dk)),
            rep((D, H * (Dk + Dv))), rep((1, H * (Dk + Dv))),
            rep((H * Dv, D)), rep((1, D)), rep((1, D)), rep((1, D)),
            # cross-attention weights
            rep((D, H * Dk)), rep((1, H * Dk)),
            rep((D, H * (Dk + Dv))), rep((1, H * (Dk + Dv))),
            rep((H * Dv, D)), rep((1, D)), rep((1, D)), rep((1, D)),
            # feed-forward weights
            rep((D, Dff)), rep((1, Dff)), rep((Dff, D)),
            rep((1, D)), rep((1, D)), rep((1, D)),
        ],
        out_specs=pl.BlockSpec((None, Lq, D), lambda b: (b, 0, 0)),
        scratch_shapes=[
            pltpu.VMEM((Lq, H * Dk), jnp.float32),            # projected Q  (reused)
            pltpu.VMEM((Lq, H * (Dk + Dv)), jnp.float32),     # projected K|V (self)
            pltpu.VMEM((Lk, H * (Dk + Dv)), jnp.float32),     # projected K|V (cross)
            pltpu.VMEM((Lq, H * Dv), jnp.float32),            # per-head outputs (reused)
        ],
        compiler_params=pltpu.CompilerParams(
            dimension_semantics=("parallel",),
            vmem_limit_bytes=32 * 1024 * 1024),
    )(dec_in, enc_out, kpad_self, kpad_enc, np_mask,
      sa["wq"], sa["bq"], sa["wkv"], sa["bkv"], sa["wo"], sa["bo"], sa["ln_g"], sa["ln_b"],
      ca["wq"], ca["bq"], ca["wkv"], ca["bkv"], ca["wo"], ca["bo"], ca["ln_g"], ca["ln_b"],
      ff["w1"], ff["b1"], ff["w2"], ff["b2"], ff["ln_g"], ff["ln_b"])


# ----------------------------------------------------------------------------
# Model pieces (plain-JAX glue calling the fused layer kernel)
# ----------------------------------------------------------------------------

def positional_encoding(n_position, d_model, pad_idx):
    pos = np.arange(n_position)[:, None].astype(np.float64)
    i = np.arange(d_model)[None, :].astype(np.float64)
    angle = pos / np.power(10000.0, 2.0 * (i // 2) / d_model)
    table = np.zeros((n_position, d_model), dtype=np.float64)
    table[:, 0::2] = np.sin(angle[:, 0::2])
    table[:, 1::2] = np.cos(angle[:, 1::2])
    table[pad_idx] = 0.0
    return jnp.asarray(table, dtype=jnp.float32)


def decoder_transformer_forward(params, x, y, pos, enc_output, cfg):
    pad = cfg["pad"]

    # Mask construction (same semantics as get_non_pad_mask / get_dec_mask / get_pad_mask).
    # Only tiny per-batch key-pad masks are built; the (B*H, Lq, Lk) mask is never
    # materialized — the causal triangle is generated inside the attention kernel.
    np_mask = (y != pad).astype(jnp.float32)[..., None]         # (B, Ly, 1)
    kpad_self = (y == pad).astype(jnp.float32)[:, None, :]      # (B, 1, Ly)
    kpad_enc = (x == pad).astype(jnp.float32)[:, None, :]       # (B, 1, Lx)

    # Embedding + positional encoding (gathers: plain JAX glue).
    dec_output = params["embedding"][y] + params["pos_table"][pos]   # (B, Ly, D) f32

    for layer_p in params["layers"]:
        dec_output = fused_decoder_layer(dec_output, enc_output,
                                         kpad_self, kpad_enc, np_mask, layer_p, cfg)
    return dec_output


# ----------------------------------------------------------------------------
# Deterministic parameter construction (weights stored bf16, biases / LN in f32)
# ----------------------------------------------------------------------------

def init_params(key, cfg):
    D, H = cfg["model_size"], cfg["n_head"]
    Dk, Dv, Dff = cfg["d_k"], cfg["d_v"], cfg["d_ff"]

    def dense(k, fan_in, fan_out):
        kw, kb = jax.random.split(k)
        w = jax.random.normal(kw, (fan_in, fan_out), jnp.float32) * 0.05
        b = jax.random.normal(kb, (fan_out,), jnp.float32) * 0.01
        return w, b

    def mha_params(k):
        k1, k2, k3, k4 = jax.random.split(k, 4)
        wq, bq = dense(k1, D, H * Dk)
        wk, bk = dense(k2, D, H * Dk)
        wv, bv = dense(k3, D, H * Dv)
        wo, bo = dense(k4, H * Dv, D)
        return dict(
            wq=wq.astype(jnp.bfloat16),
            bq=bq.reshape(1, H * Dk),
            wkv=jnp.concatenate([wk, wv], axis=1).astype(jnp.bfloat16),
            bkv=jnp.concatenate([bk, bv]).reshape(1, H * (Dk + Dv)),
            wo=wo.astype(jnp.bfloat16),
            bo=bo.reshape(1, D),
            ln_g=jnp.ones((1, D), jnp.float32),
            ln_b=jnp.zeros((1, D), jnp.float32),
        )

    def ffn_params(k):
        k1, k2 = jax.random.split(k)
        w1, b1 = dense(k1, D, Dff)
        w2, b2 = dense(k2, Dff, D)
        return dict(
            w1=w1.astype(jnp.bfloat16), b1=b1.reshape(1, Dff),
            w2=w2.astype(jnp.bfloat16), b2=b2.reshape(1, D),
            ln_g=jnp.ones((1, D), jnp.float32),
            ln_b=jnp.zeros((1, D), jnp.float32),
        )

    key, ke = jax.random.split(key)
    embedding = jax.random.normal(ke, (cfg["vocab_size"], D), jnp.float32) * 0.05

    layers = []
    for _ in range(cfg["n_layer"]):
        key, k1, k2, k3 = jax.random.split(key, 4)
        layers.append(dict(self_attn=mha_params(k1),
                           cross_attn=mha_params(k2),
                           ffn=ffn_params(k3)))

    return dict(embedding=embedding,
                pos_table=positional_encoding(cfg["s_len"] + 1, D, cfg["pad"]),
                layers=layers)


# ----------------------------------------------------------------------------
# main
# ----------------------------------------------------------------------------

if __name__ == "__main__":
    cfg = dict(vocab_size=16, model_size=32, n_head=4, d_k=8, d_v=8, d_ff=64,
               n_layer=2, s_len=8, pad=0)

    key = jax.random.PRNGKey(0)
    key, kp, kx, ky, ke = jax.random.split(key, 5)

    params = init_params(kp, cfg)

    B, Lx, Ly, D = 2, 8, 8, cfg["model_size"]

    # token sequences: valid tokens in [1, vocab), trailing pads (pad = 0)
    x_tok = jax.random.randint(kx, (B, Lx), 1, cfg["vocab_size"], dtype=jnp.int32)
    y_tok = jax.random.randint(ky, (B, Ly), 1, cfg["vocab_size"], dtype=jnp.int32)
    x_tok = x_tok.at[0, Lx - 2:].set(cfg["pad"])      # some pads at the end
    y_tok = y_tok.at[1, Ly - 3:].set(cfg["pad"])

    # positions: 1..L for real tokens, 0 for pad (matches positional_encoding pad row)
    pos = jnp.where(y_tok != cfg["pad"],
                    jnp.arange(1, Ly + 1, dtype=jnp.int32)[None, :],
                    jnp.int32(0))

    enc_output = jax.random.normal(ke, (B, Lx, D), jnp.float32)

    fwd = jax.jit(functools.partial(decoder_transformer_forward, cfg=cfg))
    out = fwd(params, x_tok, y_tok, pos, enc_output)
    out = jax.block_until_ready(out)

    assert out.shape == (B, Ly, D)
    assert bool(jnp.all(jnp.isfinite(out)))
    print("KERNEL_OK")
</pallas_src>

<mosaic_0001>
module attributes {stable_mosaic.version = 11 : i64} {
  func.func @_decoder_layer_kernel(%arg0: i32, %arg1: memref<1x8x32xf32, #tpu.memory_space<vmem>>, %arg2: memref<1x8x32xf32, #tpu.memory_space<vmem>>, %arg3: memref<1x1x8xf32, #tpu.memory_space<vmem>>, %arg4: memref<1x1x8xf32, #tpu.memory_space<vmem>>, %arg5: memref<1x8x1xf32, #tpu.memory_space<vmem>>, %arg6: memref<32x32xbf16, #tpu.memory_space<vmem>>, %arg7: memref<1x32xf32, #tpu.memory_space<vmem>>, %arg8: memref<32x64xbf16, #tpu.memory_space<vmem>>, %arg9: memref<1x64xf32, #tpu.memory_space<vmem>>, %arg10: memref<32x32xbf16, #tpu.memory_space<vmem>>, %arg11: memref<1x32xf32, #tpu.memory_space<vmem>>, %arg12: memref<1x32xf32, #tpu.memory_space<vmem>>, %arg13: memref<1x32xf32, #tpu.memory_space<vmem>>, %arg14: memref<32x32xbf16, #tpu.memory_space<vmem>>, %arg15: memref<1x32xf32, #tpu.memory_space<vmem>>, %arg16: memref<32x64xbf16, #tpu.memory_space<vmem>>, %arg17: memref<1x64xf32, #tpu.memory_space<vmem>>, %arg18: memref<32x32xbf16, #tpu.memory_space<vmem>>, %arg19: memref<1x32xf32, #tpu.memory_space<vmem>>, %arg20: memref<1x32xf32, #tpu.memory_space<vmem>>, %arg21: memref<1x32xf32, #tpu.memory_space<vmem>>, %arg22: memref<32x64xbf16, #tpu.memory_space<vmem>>, %arg23: memref<1x64xf32, #tpu.memory_space<vmem>>, %arg24: memref<64x32xbf16, #tpu.memory_space<vmem>>, %arg25: memref<1x32xf32, #tpu.memory_space<vmem>>, %arg26: memref<1x32xf32, #tpu.memory_space<vmem>>, %arg27: memref<1x32xf32, #tpu.memory_space<vmem>>, %arg28: memref<1x8x32xf32, #tpu.memory_space<vmem>>, %arg29: memref<8x32xf32, #tpu.memory_space<vmem>>, %arg30: memref<8x64xf32, #tpu.memory_space<vmem>>, %arg31: memref<8x64xf32, #tpu.memory_space<vmem>>, %arg32: memref<8x32xf32, #tpu.memory_space<vmem>>) attributes {dimension_semantics = [#tpu.dimension_semantics<parallel>], iteration_bounds = array<i64: 2>, scalar_prefetch = 0 : i64, scratch_operands = 4 : i64, tpu.core_type = #tpu.core_type<tc>, window_params = [{transform_indices = @transform_0, window_bounds = array<i64: 1, 8, 32>}, {transform_indices = @transform_1, window_bounds = array<i64: 1, 8, 32>}, {transform_indices = @transform_2, window_bounds = array<i64: 1, 1, 8>}, {transform_indices = @transform_3, window_bounds = array<i64: 1, 1, 8>}, {transform_indices = @transform_4, window_bounds = array<i64: 1, 8, 1>}, {pipeline_mode = #tpu.pipeline_mode<synchronous>, transform_indices = @transform_5, window_bounds = array<i64: 32, 32>}, {pipeline_mode = #tpu.pipeline_mode<synchronous>, transform_indices = @transform_6, window_bounds = array<i64: 1, 32>}, {pipeline_mode = #tpu.pipeline_mode<synchronous>, transform_indices = @transform_7, window_bounds = array<i64: 32, 64>}, {pipeline_mode = #tpu.pipeline_mode<synchronous>, transform_indices = @transform_8, window_bounds = array<i64: 1, 64>}, {pipeline_mode = #tpu.pipeline_mode<synchronous>, transform_indices = @transform_9, window_bounds = array<i64: 32, 32>}, {pipeline_mode = #tpu.pipeline_mode<synchronous>, transform_indices = @transform_10, window_bounds = array<i64: 1, 32>}, {pipeline_mode = #tpu.pipeline_mode<synchronous>, transform_indices = @transform_11, window_bounds = array<i64: 1, 32>}, {pipeline_mode = #tpu.pipeline_mode<synchronous>, transform_indices = @transform_12, window_bounds = array<i64: 1, 32>}, {pipeline_mode = #tpu.pipeline_mode<synchronous>, transform_indices = @transform_13, window_bounds = array<i64: 32, 32>}, {pipeline_mode = #tpu.pipeline_mode<synchronous>, transform_indices = @transform_14, window_bounds = array<i64: 1, 32>}, {pipeline_mode = #tpu.pipeline_mode<synchronous>, transform_indices = @transform_15, window_bounds = array<i64: 32, 64>}, {pipeline_mode = #tpu.pipeline_mode<synchronous>, transform_indices = @transform_16, window_bounds = array<i64: 1, 64>}, {pipeline_mode = #tpu.pipeline_mode<synchronous>, transform_indices = @transform_17, window_bounds = array<i64: 32, 32>}, {pipeline_mode = #tpu.pipeline_mode<synchronous>, transform_indices = @transform_18, window_bounds = array<i64: 1, 32>}, {pipeline_mode = #tpu.pipeline_mode<synchronous>, transform_indices = @transform_19, window_bounds = array<i64: 1, 32>}, {pipeline_mode = #tpu.pipeline_mode<synchronous>, transform_indices = @transform_20, window_bounds = array<i64: 1, 32>}, {pipeline_mode = #tpu.pipeline_mode<synchronous>, transform_indices = @transform_21, window_bounds = array<i64: 32, 64>}, {pipeline_mode = #tpu.pipeline_mode<synchronous>, transform_indices = @transform_22, window_bounds = array<i64: 1, 64>}, {pipeline_mode = #tpu.pipeline_mode<synchronous>, transform_indices = @transform_23, window_bounds = array<i64: 64, 32>}, {pipeline_mode = #tpu.pipeline_mode<synchronous>, transform_indices = @transform_24, window_bounds = array<i64: 1, 32>}, {pipeline_mode = #tpu.pipeline_mode<synchronous>, transform_indices = @transform_25, window_bounds = array<i64: 1, 32>}, {pipeline_mode = #tpu.pipeline_mode<synchronous>, transform_indices = @transform_26, window_bounds = array<i64: 1, 32>}, {transform_indices = @transform_27, window_bounds = array<i64: 1, 8, 32>}]} {
    %c0 = arith.constant 0 : index
    %c0_0 = arith.constant 0 : index
    %c0_1 = arith.constant 0 : index
    %0 = vector.load %arg5[%c0, %c0_0, %c0_1] : memref<1x8x1xf32, #tpu.memory_space<vmem>>, vector<1x8x1xf32>
    %1 = vector.shape_cast %0 : vector<1x8x1xf32> to vector<8x1xf32>
    %c0_2 = arith.constant 0 : index
    %c0_3 = arith.constant 0 : index
    %c0_4 = arith.constant 0 : index
    %2 = vector.load %arg1[%c0_2, %c0_3, %c0_4] : memref<1x8x32xf32, #tpu.memory_space<vmem>>, vector<1x8x32xf32>
    %3 = vector.shape_cast %2 : vector<1x8x32xf32> to vector<8x32xf32>
    %c0_5 = arith.constant 0 : index
    %c0_6 = arith.constant 0 : index
    %c0_7 = arith.constant 0 : index
    %4 = vector.load %arg2[%c0_5, %c0_6, %c0_7] : memref<1x8x32xf32, #tpu.memory_space<vmem>>, vector<1x8x32xf32>
    %5 = vector.shape_cast %4 : vector<1x8x32xf32> to vector<8x32xf32>
    %c0_8 = arith.constant 0 : index
    %c0_9 = arith.constant 0 : index
    %c0_10 = arith.constant 0 : index
    %6 = vector.load %arg3[%c0_8, %c0_9, %c0_10] : memref<1x1x8xf32, #tpu.memory_space<vmem>>, vector<1x1x8xf32>
    %7 = vector.shape_cast %6 : vector<1x1x8xf32> to vector<1x8xf32>
    %8 = arith.truncf %3 : vector<8x32xf32> to vector<8x32xbf16>
    %c0_11 = arith.constant 0 : index
    %c0_12 = arith.constant 0 : index
    %9 = vector.load %arg6[%c0_11, %c0_12] : memref<32x32xbf16, #tpu.memory_space<vmem>>, vector<32x32xbf16>
    %cst = arith.constant dense<0.000000e+00> : vector<8x32xf32>
    %10 = tpu.matmul %8, %9, %cst {dimension_numbers = #tpu.dot_dimension_numbers<[1], [0], [0], [1], [0, 0, 1, 1], [], []>} : vector<8x32xbf16>, vector<32x32xbf16>, vector<8x32xf32> -> vector<8x32xf32>
    %c0_13 = arith.constant 0 : index
    %c0_14 = arith.constant 0 : index
    %11 = vector.load %arg7[%c0_13, %c0_14] : memref<1x32xf32, #tpu.memory_space<vmem>>, vector<1x32xf32>
    %12 = vector.broadcast %11 : vector<1x32xf32> to vector<8x32xf32>
    %13 = arith.addf %10, %12 : vector<8x32xf32>
    %c0_15 = arith.constant 0 : index
    %c0_16 = arith.constant 0 : index
    %14 = vector.load %arg29[%c0_15, %c0_16] : memref<8x32xf32, #tpu.memory_space<vmem>>, vector<8x32xf32>
    tpu.vector_store %arg29[%c0_15, %c0_16], %13 {strides = array<i32>} : memref<8x32xf32, #tpu.memory_space<vmem>>, vector<8x32xf32>,
    %15 = arith.truncf %3 : vector<8x32xf32> to vector<8x32xbf16>
    %c0_17 = arith.constant 0 : index
    %c0_18 = arith.constant 0 : index
    %16 = vector.load %arg8[%c0_17, %c0_18] : memref<32x64xbf16, #tpu.memory_space<vmem>>, vector<32x64xbf16>
    %cst_19 = arith.constant dense<0.000000e+00> : vector<8x64xf32>
    %17 = tpu.matmul %15, %16, %cst_19 {dimension_numbers = #tpu.dot_dimension_numbers<[1], [0], [0], [1], [0, 0, 1, 1], [], []>} : vector<8x32xbf16>, vector<32x64xbf16>, vector<8x64xf32> -> vector<8x64xf32>
    %c0_20 = arith.constant 0 : index
    %c0_21 = arith.constant 0 : index
    %18 = vector.load %arg9[%c0_20, %c0_21] : memref<1x64xf32, #tpu.memory_space<vmem>>, vector<1x64xf32>
    %19 = vector.broadcast %18 : vector<1x64xf32> to vector<8x64xf32>
    %20 = arith.addf %17, %19 : vector<8x64xf32>
    %c0_22 = arith.constant 0 : index
    %c0_23 = arith.constant 0 : index
    %21 = vector.load %arg30[%c0_22, %c0_23] : memref<8x64xf32, #tpu.memory_space<vmem>>, vector<8x64xf32>
    tpu.vector_store %arg30[%c0_22, %c0_23], %20 {strides = array<i32>} : memref<8x64xf32, #tpu.memory_space<vmem>>, vector<8x64xf32>,
    %22 = vector.shape_cast %7 : vector<1x8xf32> to vector<1x8xf32>
    %23 = vector.broadcast %22 : vector<1x8xf32> to vector<8x8xf32>
    %cst_24 = arith.constant 5.000000e-01 : f32
    %24 = vector.broadcast %cst_24 : f32 to vector<8x8xf32>
    %25 = arith.cmpf ogt, %23, %24 : vector<8x8xf32>
    %26 = tpu.iota {dimensions = array<i32: 0>} : vector<8x8xi32>
    %27 = tpu.iota {dimensions = array<i32: 1>} : vector<8x8xi32>
    %28 = arith.cmpi sgt, %27, %26 : vector<8x8xi32>
    %29 = arith.ori %25, %28 : vector<8x8xi1>
    %c0_25 = arith.constant 0 : index
    %c0_26 = arith.constant 0 : index
    %30 = vector.load %arg29[%c0_25, %c0_26] : memref<8x32xf32, #tpu.memory_space<vmem>>, vector<8x8xf32>
    %31 = arith.truncf %30 : vector<8x8xf32> to vector<8x8xbf16>
    %c0_27 = arith.constant 0 : index
    %c0_28 = arith.constant 0 : index
    %32 = vector.load %arg30[%c0_27, %c0_28] : memref<8x64xf32, #tpu.memory_space<vmem>>, vector<8x8xf32>
    %33 = arith.truncf %32 : vector<8x8xf32> to vector<8x8xbf16>
    %c0_29 = arith.constant 0 : index
    %c32 = arith.constant 32 : index
    %34 = vector.load %arg30[%c0_29, %c32] : memref<8x64xf32, #tpu.memory_space<vmem>>, vector<8x8xf32>
    %35 = arith.truncf %34 : vector<8x8xf32> to vector<8x8xbf16>
    %cst_30 = arith.constant dense<0.000000e+00> : vector<8x8xf32>
    %36 = tpu.matmul %31, %33, %cst_30 {dimension_numbers = #tpu.dot_dimension_numbers<[1], [1], [0], [0], [0, 0, 1, 0], [], []>} : vector<8x8xbf16>, vector<8x8xbf16>, vector<8x8xf32> -> vector<8x8xf32>
    %cst_31 = arith.constant 0.353553385 : f32
    %37 = vector.broadcast %cst_31 : f32 to vector<8x8xf32>
    %38 = arith.mulf %36, %37 : vector<8x8xf32>
    %cst_32 = arith.constant -1.000000e+09 : f32
    %39 = vector.broadcast %cst_32 : f32 to vector<8x8xf32>
    %40 = arith.select %29, %39, %38 : vector<8x8xi1>, vector<8x8xf32>
    %cst_33 = arith.constant dense<0xFF800000> : vector<8xf32>
    %41 = vector.multi_reduction <maximumf>, %40, %cst_33 [1] : vector<8x8xf32> to vector<8xf32>
    %42 = vector.shape_cast %41 : vector<8xf32> to vector<8x1xf32>
    %43 = vector.broadcast %42 : vector<8x1xf32> to vector<8x8xf32>
    %44 = arith.subf %40, %43 : vector<8x8xf32>
    %45 = math.exp %44 : vector<8x8xf32>
    %cst_34 = arith.constant dense<0.000000e+00> : vector<8xf32>
    %46 = vector.multi_reduction <add>, %45, %cst_34 [1] : vector<8x8xf32> to vector<8xf32>
    %47 = vector.shape_cast %46 : vector<8xf32> to vector<8x1xf32>
    %48 = tpu.reciprocal %47 {approx = true} : vector<8x1xf32> -> vector<8x1xf32>
    %49 = vector.broadcast %48 : vector<8x1xf32> to vector<8x8xf32>
    %50 = arith.mulf %45, %49 : vector<8x8xf32>
    %51 = arith.truncf %50 : vector<8x8xf32> to vector<8x8xbf16>
    %cst_35 = arith.constant dense<0.000000e+00> : vector<8x8xf32>
    %52 = tpu.matmul %51, %35, %cst_35 {dimension_numbers = #tpu.dot_dimension_numbers<[1], [0], [0], [1], [0, 0, 1, 1], [], []>} : vector<8x8xbf16>, vector<8x8xbf16>, vector<8x8xf32> -> vector<8x8xf32>
    %c0_36 = arith.constant 0 : index
    %c0_37 = arith.constant 0 : index
    %53 = vector.load %arg32[%c0_36, %c0_37] : memref<8x32xf32, #tpu.memory_space<vmem>>, vector<8x8xf32>
    tpu.vector_store %arg32[%c0_36, %c0_37], %52 {strides = array<i32>} : memref<8x32xf32, #tpu.memory_space<vmem>>, vector<8x8xf32>,
    %c0_38 = arith.constant 0 : index
    %c8 = arith.constant 8 : index
    %54 = vector.load %arg29[%c0_38, %c8] : memref<8x32xf32, #tpu.memory_space<vmem>>, vector<8x8xf32>
    %55 = arith.truncf %54 : vector<8x8xf32> to vector<8x8xbf16>
    %c0_39 = arith.constant 0 : index
    %c8_40 = arith.constant 8 : index
    %56 = vector.load %arg30[%c0_39, %c8_40] : memref<8x64xf32, #tpu.memory_space<vmem>>, vector<8x8xf32>
    %57 = arith.truncf %56 : vector<8x8xf32> to vector<8x8xbf16>
    %c0_41 = arith.constant 0 : index
    %c40 = arith.constant 40 : index
    %58 = vector.load %arg30[%c0_41, %c40] : memref<8x64xf32, #tpu.memory_space<vmem>>, vector<8x8xf32>
    %59 = arith.truncf %58 : vector<8x8xf32> to vector<8x8xbf16>
    %cst_42 = arith.constant dense<0.000000e+00> : vector<8x8xf32>
    %60 = tpu.matmul %55, %57, %cst_42 {dimension_numbers = #tpu.dot_dimension_numbers<[1], [1], [0], [0], [0, 0, 1, 0], [], []>} : vector<8x8xbf16>, vector<8x8xbf16>, vector<8x8xf32> -> vector<8x8xf32>
    %cst_43 = arith.constant 0.353553385 : f32
    %61 = vector.broadcast %cst_43 : f32 to vector<8x8xf32>
    %62 = arith.mulf %60, %61 : vector<8x8xf32>
    %cst_44 = arith.constant -1.000000e+09 : f32
    %63 = vector.broadcast %cst_44 : f32 to vector<8x8xf32>
    %64 = arith.select %29, %63, %62 : vector<8x8xi1>, vector<8x8xf32>
    %cst_45 = arith.constant dense<0xFF800000> : vector<8xf32>
    %65 = vector.multi_reduction <maximumf>, %64, %cst_45 [1] : vector<8x8xf32> to vector<8xf32>
    %66 = vector.shape_cast %65 : vector<8xf32> to vector<8x1xf32>
    %67 = vector.broadcast %66 : vector<8x1xf32> to vector<8x8xf32>
    %68 = arith.subf %64, %67 : vector<8x8xf32>
    %69 = math.exp %68 : vector<8x8xf32>
    %cst_46 = arith.constant dense<0.000000e+00> : vector<8xf32>
    %70 = vector.multi_reduction <add>, %69, %cst_46 [1] : vector<8x8xf32> to vector<8xf32>
    %71 = vector.shape_cast %70 : vector<8xf32> to vector<8x1xf32>
    %72 = tpu.reciprocal %71 {approx = true} : vector<8x1xf32> -> vector<8x1xf32>
    %73 = vector.broadcast %72 : vector<8x1xf32> to vector<8x8xf32>
    %74 = arith.mulf %69, %73 : vector<8x8xf32>
    %75 = arith.truncf %74 : vector<8x8xf32> to vector<8x8xbf16>
    %cst_47 = arith.constant dense<0.000000e+00> : vector<8x8xf32>
    %76 = tpu.matmul %75, %59, %cst_47 {dimension_numbers = #tpu.dot_dimension_numbers<[1], [0], [0], [1], [0, 0, 1, 1], [], []>} : vector<8x8xbf16>, vector<8x8xbf16>, vector<8x8xf32> -> vector<8x8xf32>
    %c0_48 = arith.constant 0 : index
    %c8_49 = arith.constant 8 : index
    %77 = vector.load %arg32[%c0_48, %c8_49] : memref<8x32xf32, #tpu.memory_space<vmem>>, vector<8x8xf32>
    tpu.vector_store %arg32[%c0_48, %c8_49], %76 {strides = array<i32>} : memref<8x32xf32, #tpu.memory_space<vmem>>, vector<8x8xf32>,
    %c0_50 = arith.constant 0 : index
    %c16 = arith.constant 16 : index
    %78 = vector.load %arg29[%c0_50, %c16] : memref<8x32xf32, #tpu.memory_space<vmem>>, vector<8x8xf32>
    %79 = arith.truncf %78 : vector<8x8xf32> to vector<8x8xbf16>
    %c0_51 = arith.constant 0 : index
    %c16_52 = arith.constant 16 : index
    %80 = vector.load %arg30[%c0_51, %c16_52] : memref<8x64xf32, #tpu.memory_space<vmem>>, vector<8x8xf32>
    %81 = arith.truncf %80 : vector<8x8xf32> to vector<8x8xbf16>
    %c0_53 = arith.constant 0 : index
    %c48 = arith.constant 48 : index
    %82 = vector.load %arg30[%c0_53, %c48] : memref<8x64xf32, #tpu.memory_space<vmem>>, vector<8x8xf32>
    %83 = arith.truncf %82 : vector<8x8xf32> to vector<8x8xbf16>
    %cst_54 = arith.constant dense<0.000000e+00> : vector<8x8xf32>
    %84 = tpu.matmul %79, %81, %cst_54 {dimension_numbers = #tpu.dot_dimension_numbers<[1], [1], [0], [0], [0, 0, 1, 0], [], []>} : vector<8x8xbf16>, vector<8x8xbf16>, vector<8x8xf32> -> vector<8x8xf32>
    %cst_55 = arith.constant 0.353553385 : f32
    %85 = vector.broadcast %cst_55 : f32 to vector<8x8xf32>
    %86 = arith.mulf %84, %85 : vector<8x8xf32>
    %cst_56 = arith.constant -1.000000e+09 : f32
    %87 = vector.broadcast %cst_56 : f32 to vector<8x8xf32>
    %88 = arith.select %29, %87, %86 : vector<8x8xi1>, vector<8x8xf32>
    %cst_57 = arith.constant dense<0xFF800000> : vector<8xf32>
    %89 = vector.multi_reduction <maximumf>, %88, %cst_57 [1] : vector<8x8xf32> to vector<8xf32>
    %90 = vector.shape_cast %89 : vector<8xf32> to vector<8x1xf32>
    %91 = vector.broadcast %90 : vector<8x1xf32> to vector<8x8xf32>
    %92 = arith.subf %88, %91 : vector<8x8xf32>
    %93 = math.exp %92 : vector<8x8xf32>
    %cst_58 = arith.constant dense<0.000000e+00> : vector<8xf32>
    %94 = vector.multi_reduction <add>, %93, %cst_58 [1] : vector<8x8xf32> to vector<8xf32>
    %95 = vector.shape_cast %94 : vector<8xf32> to vector<8x1xf32>
    %96 = tpu.reciprocal %95 {approx = true} : vector<8x1xf32> -> vector<8x1xf32>
    %97 = vector.broadcast %96 : vector<8x1xf32> to vector<8x8xf32>
    %98 = arith.mulf %93, %97 : vector<8x8xf32>
    %99 = arith.truncf %98 : vector<8x8xf32> to vector<8x8xbf16>
    %cst_59 = arith.constant dense<0.000000e+00> : vector<8x8xf32>
    %100 = tpu.matmul %99, %83, %cst_59 {dimension_numbers = #tpu.dot_dimension_numbers<[1], [0], [0], [1], [0, 0, 1, 1], [], []>} : vector<8x8xbf16>, vector<8x8xbf16>, vector<8x8xf32> -> vector<8x8xf32>
    %c0_60 = arith.constant 0 : index
    %c16_61 = arith.constant 16 : index
    %101 = vector.load %arg32[%c0_60, %c16_61] : memref<8x32xf32, #tpu.memory_space<vmem>>, vector<8x8xf32>
    tpu.vector_store %arg32[%c0_60, %c16_61], %100 {strides = array<i32>} : memref<8x32xf32, #tpu.memory_space<vmem>>, vector<8x8xf32>,
    %c0_62 = arith.constant 0 : index
    %c24 = arith.constant 24 : index
    %102 = vector.load %arg29[%c0_62, %c24] : memref<8x32xf32, #tpu.memory_space<vmem>>, vector<8x8xf32>
    %103 = arith.truncf %102 : vector<8x8xf32> to vector<8x8xbf16>
    %c0_63 = arith.constant 0 : index
    %c24_64 = arith.constant 24 : index
    %104 = vector.load %arg30[%c0_63, %c24_64] : memref<8x64xf32, #tpu.memory_space<vmem>>, vector<8x8xf32>
    %105 = arith.truncf %104 : vector<8x8xf32> to vector<8x8xbf16>
    %c0_65 = arith.constant 0 : index
    %c56 = arith.constant 56 : index
    %106 = vector.load %arg30[%c0_65, %c56] : memref<8x64xf32, #tpu.memory_space<vmem>>, vector<8x8xf32>
    %107 = arith.truncf %106 : vector<8x8xf32> to vector<8x8xbf16>
    %cst_66 = arith.constant dense<0.000000e+00> : vector<8x8xf32>
    %108 = tpu.matmul %103, %105, %cst_66 {dimension_numbers = #tpu.dot_dimension_numbers<[1], [1], [0], [0], [0, 0, 1, 0], [], []>} : vector<8x8xbf16>, vector<8x8xbf16>, vector<8x8xf32> -> vector<8x8xf32>
    %cst_67 = arith.constant 0.353553385 : f32
    %109 = vector.broadcast %cst_67 : f32 to vector<8x8xf32>
    %110 = arith.mulf %108, %109 : vector<8x8xf32>
    %cst_68 = arith.constant -1.000000e+09 : f32
    %111 = vector.broadcast %cst_68 : f32 to vector<8x8xf32>
    %112 = arith.select %29, %111, %110 : vector<8x8xi1>, vector<8x8xf32>
    %cst_69 = arith.constant dense<0xFF800000> : vector<8xf32>
    %113 = vector.multi_reduction <maximumf>, %112, %cst_69 [1] : vector<8x8xf32> to vector<8xf32>
    %114 = vector.shape_cast %113 : vector<8xf32> to vector<8x1xf32>
    %115 = vector.broadcast %114 : vector<8x1xf32> to vector<8x8xf32>
    %116 = arith.subf %112, %115 : vector<8x8xf32>
    %117 = math.exp %116 : vector<8x8xf32>
    %cst_70 = arith.constant dense<0.000000e+00> : vector<8xf32>
    %118 = vector.multi_reduction <add>, %117, %cst_70 [1] : vector<8x8xf32> to vector<8xf32>
    %119 = vector.shape_cast %118 : vector<8xf32> to vector<8x1xf32>
    %120 = tpu.reciprocal %119 {approx = true} : vector<8x1xf32> -> vector<8x1xf32>
    %121 = vector.broadcast %120 : vector<8x1xf32> to vector<8x8xf32>
    %122 = arith.mulf %117, %121 : vector<8x8xf32>
    %123 = arith.truncf %122 : vector<8x8xf32> to vector<8x8xbf16>
    %cst_71 = arith.constant dense<0.000000e+00> : vector<8x8xf32>
    %124 = tpu.matmul %123, %107, %cst_71 {dimension_numbers = #tpu.dot_dimension_numbers<[1], [0], [0], [1], [0, 0, 1, 1], [], []>} : vector<8x8xbf16>, vector<8x8xbf16>, vector<8x8xf32> -> vector<8x8xf32>
    %c0_72 = arith.constant 0 : index
    %c24_73 = arith.constant 24 : index
    %125 = vector.load %arg32[%c0_72, %c24_73] : memref<8x32xf32, #tpu.memory_space<vmem>>, vector<8x8xf32>
    tpu.vector_store %arg32[%c0_72, %c24_73], %124 {strides = array<i32>} : memref<8x32xf32, #tpu.memory_space<vmem>>, vector<8x8xf32>,
    %c0_74 = arith.constant 0 : index
    %c0_75 = arith.constant 0 : index
    %126 = vector.load %arg32[%c0_74, %c0_75] : memref<8x32xf32, #tpu.memory_space<vmem>>, vector<8x32xf32>
    %127 = arith.truncf %126 : vector<8x32xf32> to vector<8x32xbf16>
    %c0_76 = arith.constant 0 : index
    %c0_77 = arith.constant 0 : index
    %128 = vector.load %arg10[%c0_76, %c0_77] : memref<32x32xbf16, #tpu.memory_space<vmem>>, vector<32x32xbf16>
    %cst_78 = arith.constant dense<0.000000e+00> : vector<8x32xf32>
    %129 = tpu.matmul %127, %128, %cst_78 {dimension_numbers = #tpu.dot_dimension_numbers<[1], [0], [0], [1], [0, 0, 1, 1], [], []>} : vector<8x32xbf16>, vector<32x32xbf16>, vector<8x32xf32> -> vector<8x32xf32>
    %c0_79 = arith.constant 0 : index
    %c0_80 = arith.constant 0 : index
    %130 = vector.load %arg11[%c0_79, %c0_80] : memref<1x32xf32, #tpu.memory_space<vmem>>, vector<1x32xf32>
    %131 = vector.broadcast %130 : vector<1x32xf32> to vector<8x32xf32>
    %132 = arith.addf %129, %131 : vector<8x32xf32>
    %133 = arith.addf %132, %3 : vector<8x32xf32>
    %c0_81 = arith.constant 0 : index
    %c0_82 = arith.constant 0 : index
    %134 = vector.load %arg12[%c0_81, %c0_82] : memref<1x32xf32, #tpu.memory_space<vmem>>, vector<1x32xf32>
    %c0_83 = arith.constant 0 : index
    %c0_84 = arith.constant 0 : index
    %135 = vector.load %arg13[%c0_83, %c0_84] : memref<1x32xf32, #tpu.memory_space<vmem>>, vector<1x32xf32>
    %cst_85 = arith.constant dense<0.000000e+00> : vector<8xf32>
    %136 = vector.multi_reduction <add>, %133, %cst_85 [1] : vector<8x32xf32> to vector<8xf32>
    %137 = vector.shape_cast %136 : vector<8xf32> to vector<8x1xf32>
    %cst_86 = arith.constant 3.200000e+01 : f32
    %138 = vector.broadcast %cst_86 : f32 to vector<8x1xf32>
    %139 = arith.divf %137, %138 : vector<8x1xf32>
    %140 = vector.broadcast %139 : vector<8x1xf32> to vector<8x32xf32>
    %141 = arith.subf %133, %140 : vector<8x32xf32>
    %142 = arith.mulf %141, %141 : vector<8x32xf32>
    %cst_87 = arith.constant dense<0.000000e+00> : vector<8xf32>
    %143 = vector.multi_reduction <add>, %142, %cst_87 [1] : vector<8x32xf32> to vector<8xf32>
    %144 = vector.shape_cast %143 : vector<8xf32> to vector<8x1xf32>
    %cst_88 = arith.constant 3.200000e+01 : f32
    %145 = vector.broadcast %cst_88 : f32 to vector<8x1xf32>
    %146 = arith.divf %144, %145 : vector<8x1xf32>
    %147 = vector.broadcast %139 : vector<8x1xf32> to vector<8x32xf32>
    %148 = arith.subf %133, %147 : vector<8x32xf32>
    %cst_89 = arith.constant 9.99999974E-6 : f32
    %149 = vector.broadcast %cst_89 : f32 to vector<8x1xf32>
    %150 = arith.addf %146, %149 : vector<8x1xf32>
    %151 = math.rsqrt %150 : vector<8x1xf32>
    %152 = vector.broadcast %151 : vector<8x1xf32> to vector<8x32xf32>
    %153 = arith.mulf %148, %152 : vector<8x32xf32>
    %154 = vector.broadcast %134 : vector<1x32xf32> to vector<8x32xf32>
    %155 = arith.mulf %153, %154 : vector<8x32xf32>
    %156 = vector.broadcast %135 : vector<1x32xf32> to vector<8x32xf32>
    %157 = arith.addf %155, %156 : vector<8x32xf32>
    %158 = vector.broadcast %1 : vector<8x1xf32> to vector<8x32xf32>
    %159 = arith.mulf %157, %158 : vector<8x32xf32>
    %c0_90 = arith.constant 0 : index
    %c0_91 = arith.constant 0 : index
    %c0_92 = arith.constant 0 : index
    %160 = vector.load %arg4[%c0_90, %c0_91, %c0_92] : memref<1x1x8xf32, #tpu.memory_space<vmem>>, vector<1x1x8xf32>
    %161 = vector.shape_cast %160 : vector<1x1x8xf32> to vector<1x8xf32>
    %162 = arith.truncf %159 : vector<8x32xf32> to vector<8x32xbf16>
    %c0_93 = arith.constant 0 : index
    %c0_94 = arith.constant 0 : index
    %163 = vector.load %arg14[%c0_93, %c0_94] : memref<32x32xbf16, #tpu.memory_space<vmem>>, vector<32x32xbf16>
    %cst_95 = arith.constant dense<0.000000e+00> : vector<8x32xf32>
    %164 = tpu.matmul %162, %163, %cst_95 {dimension_numbers = #tpu.dot_dimension_numbers<[1], [0], [0], [1], [0, 0, 1, 1], [], []>} : vector<8x32xbf16>, vector<32x32xbf16>, vector<8x32xf32> -> vector<8x32xf32>
    %c0_96 = arith.constant 0 : index
    %c0_97 = arith.constant 0 : index
    %165 = vector.load %arg15[%c0_96, %c0_97] : memref<1x32xf32, #tpu.memory_space<vmem>>, vector<1x32xf32>
    %166 = vector.broadcast %165 : vector<1x32xf32> to vector<8x32xf32>
    %167 = arith.addf %164, %166 : vector<8x32xf32>
    %c0_98 = arith.constant 0 : index
    %c0_99 = arith.constant 0 : index
    %168 = vector.load %arg29[%c0_98, %c0_99] : memref<8x32xf32, #tpu.memory_space<vmem>>, vector<8x32xf32>
    tpu.vector_store %arg29[%c0_98, %c0_99], %167 {strides = array<i32>} : memref<8x32xf32, #tpu.memory_space<vmem>>, vector<8x32xf32>,
    %169 = arith.truncf %5 : vector<8x32xf32> to vector<8x32xbf16>
    %c0_100 = arith.constant 0 : index
    %c0_101 = arith.constant 0 : index
    %170 = vector.load %arg16[%c0_100, %c0_101] : memref<32x64xbf16, #tpu.memory_space<vmem>>, vector<32x64xbf16>
    %cst_102 = arith.constant dense<0.000000e+00> : vector<8x64xf32>
    %171 = tpu.matmul %169, %170, %cst_102 {dimension_numbers = #tpu.dot_dimension_numbers<[1], [0], [0], [1], [0, 0, 1, 1], [], []>} : vector<8x32xbf16>, vector<32x64xbf16>, vector<8x64xf32> -> vector<8x64xf32>
    %c0_103 = arith.constant 0 : index
    %c0_104 = arith.constant 0 : index
    %172 = vector.load %arg17[%c0_103, %c0_104] : memref<1x64xf32, #tpu.memory_space<vmem>>, vector<1x64xf32>
    %173 = vector.broadcast %172 : vector<1x64xf32> to vector<8x64xf32>
    %174 = arith.addf %171, %173 : vector<8x64xf32>
    %c0_105 = arith.constant 0 : index
    %c0_106 = arith.constant 0 : index
    %175 = vector.load %arg31[%c0_105, %c0_106] : memref<8x64xf32, #tpu.memory_space<vmem>>, vector<8x64xf32>
    tpu.vector_store %arg31[%c0_105, %c0_106], %174 {strides = array<i32>} : memref<8x64xf32, #tpu.memory_space<vmem>>, vector<8x64xf32>,
    %176 = vector.shape_cast %161 : vector<1x8xf32> to vector<1x8xf32>
    %177 = vector.broadcast %176 : vector<1x8xf32> to vector<8x8xf32>
    %cst_107 = arith.constant 5.000000e-01 : f32
    %178 = vector.broadcast %cst_107 : f32 to vector<8x8xf32>
    %179 = arith.cmpf ogt, %177, %178 : vector<8x8xf32>
    %c0_108 = arith.constant 0 : index
    %c0_109 = arith.constant 0 : index
    %180 = vector.load %arg29[%c0_108, %c0_109] : memref<8x32xf32, #tpu.memory_space<vmem>>, vector<8x8xf32>
    %181 = arith.truncf %180 : vector<8x8xf32> to vector<8x8xbf16>
    %c0_110 = arith.constant 0 : index
    %c0_111 = arith.constant 0 : index
    %182 = vector.load %arg31[%c0_110, %c0_111] : memref<8x64xf32, #tpu.memory_space<vmem>>, vector<8x8xf32>
    %183 = arith.truncf %182 : vector<8x8xf32> to vector<8x8xbf16>
    %c0_112 = arith.constant 0 : index
    %c32_113 = arith.constant 32 : index
    %184 = vector.load %arg31[%c0_112, %c32_113] : memref<8x64xf32, #tpu.memory_space<vmem>>, vector<8x8xf32>
    %185 = arith.truncf %184 : vector<8x8xf32> to vector<8x8xbf16>
    %cst_114 = arith.constant dense<0.000000e+00> : vector<8x8xf32>
    %186 = tpu.matmul %181, %183, %cst_114 {dimension_numbers = #tpu.dot_dimension_numbers<[1], [1], [0], [0], [0, 0, 1, 0], [], []>} : vector<8x8xbf16>, vector<8x8xbf16>, vector<8x8xf32> -> vector<8x8xf32>
    %cst_115 = arith.constant 0.353553385 : f32
    %187 = vector.broadcast %cst_115 : f32 to vector<8x8xf32>
    %188 = arith.mulf %186, %187 : vector<8x8xf32>
    %cst_116 = arith.constant -1.000000e+09 : f32
    %189 = vector.broadcast %cst_116 : f32 to vector<8x8xf32>
    %190 = arith.select %179, %189, %188 : vector<8x8xi1>, vector<8x8xf32>
    %cst_117 = arith.constant dense<0xFF800000> : vector<8xf32>
    %191 = vector.multi_reduction <maximumf>, %190, %cst_117 [1] : vector<8x8xf32> to vector<8xf32>
    %192 = vector.shape_cast %191 : vector<8xf32> to vector<8x1xf32>
    %193 = vector.broadcast %192 : vector<8x1xf32> to vector<8x8xf32>
    %194 = arith.subf %190, %193 : vector<8x8xf32>
    %195 = math.exp %194 : vector<8x8xf32>
    %cst_118 = arith.constant dense<0.000000e+00> : vector<8xf32>
    %196 = vector.multi_reduction <add>, %195, %cst_118 [1] : vector<8x8xf32> to vector<8xf32>
    %197 = vector.shape_cast %196 : vector<8xf32> to vector<8x1xf32>
    %198 = tpu.reciprocal %197 {approx = true} : vector<8x1xf32> -> vector<8x1xf32>
    %199 = vector.broadcast %198 : vector<8x1xf32> to vector<8x8xf32>
    %200 = arith.mulf %195, %199 : vector<8x8xf32>
    %201 = arith.truncf %200 : vector<8x8xf32> to vector<8x8xbf16>
    %cst_119 = arith.constant dense<0.000000e+00> : vector<8x8xf32>
    %202 = tpu.matmul %201, %185, %cst_119 {dimension_numbers = #tpu.dot_dimension_numbers<[1], [0], [0], [1], [0, 0, 1, 1], [], []>} : vector<8x8xbf16>, vector<8x8xbf16>, vector<8x8xf32> -> vector<8x8xf32>
    %c0_120 = arith.constant 0 : index
    %c0_121 = arith.constant 0 : index
    %203 = vector.load %arg32[%c0_120, %c0_121] : memref<8x32xf32, #tpu.memory_space<vmem>>, vector<8x8xf32>
    tpu.vector_store %arg32[%c0_120, %c0_121], %202 {strides = array<i32>} : memref<8x32xf32, #tpu.memory_space<vmem>>, vector<8x8xf32>,
    %c0_122 = arith.constant 0 : index
    %c8_123 = arith.constant 8 : index
    %204 = vector.load %arg29[%c0_122, %c8_123] : memref<8x32xf32, #tpu.memory_space<vmem>>, vector<8x8xf32>
    %205 = arith.truncf %204 : vector<8x8xf32> to vector<8x8xbf16>
    %c0_124 = arith.constant 0 : index
    %c8_125 = arith.constant 8 : index
    %206 = vector.load %arg31[%c0_124, %c8_125] : memref<8x64xf32, #tpu.memory_space<vmem>>, vector<8x8xf32>
    %207 = arith.truncf %206 : vector<8x8xf32> to vector<8x8xbf16>
    %c0_126 = arith.constant 0 : index
    %c40_127 = arith.constant 40 : index
    %208 = vector.load %arg31[%c0_126, %c40_127] : memref<8x64xf32, #tpu.memory_space<vmem>>, vector<8x8xf32>
    %209 = arith.truncf %208 : vector<8x8xf32> to vector<8x8xbf16>
    %cst_128 = arith.constant dense<0.000000e+00> : vector<8x8xf32>
    %210 = tpu.matmul %205, %207, %cst_128 {dimension_numbers = #tpu.dot_dimension_numbers<[1], [1], [0], [0], [0, 0, 1, 0], [], []>} : vector<8x8xbf16>, vector<8x8xbf16>, vector<8x8xf32> -> vector<8x8xf32>
    %cst_129 = arith.constant 0.353553385 : f32
    %211 = vector.broadcast %cst_129 : f32 to vector<8x8xf32>
    %212 = arith.mulf %210, %211 : vector<8x8xf32>
    %cst_130 = arith.constant -1.000000e+09 : f32
    %213 = vector.broadcast %cst_130 : f32 to vector<8x8xf32>
    %214 = arith.select %179, %213, %212 : vector<8x8xi1>, vector<8x8xf32>
    %cst_131 = arith.constant dense<0xFF800000> : vector<8xf32>
    %215 = vector.multi_reduction <maximumf>, %214, %cst_131 [1] : vector<8x8xf32> to vector<8xf32>
    %216 = vector.shape_cast %215 : vector<8xf32> to vector<8x1xf32>
    %217 = vector.broadcast %216 : vector<8x1xf32> to vector<8x8xf32>
    %218 = arith.subf %214, %217 : vector<8x8xf32>
    %219 = math.exp %218 : vector<8x8xf32>
    %cst_132 = arith.constant dense<0.000000e+00> : vector<8xf32>
    %220 = vector.multi_reduction <add>, %219, %cst_132 [1] : vector<8x8xf32> to vector<8xf32>
    %221 = vector.shape_cast %220 : vector<8xf32> to vector<8x1xf32>
    %222 = tpu.reciprocal %221 {approx = true} : vector<8x1xf32> -> vector<8x1xf32>
    %223 = vector.broadcast %222 : vector<8x1xf32> to vector<8x8xf32>
    %224 = arith.mulf %219, %223 : vector<8x8xf32>
    %225 = arith.truncf %224 : vector<8x8xf32> to vector<8x8xbf16>
    %cst_133 = arith.constant dense<0.000000e+00> : vector<8x8xf32>
    %226 = tpu.matmul %225, %209, %cst_133 {dimension_numbers = #tpu.dot_dimension_numbers<[1], [0], [0], [1], [0, 0, 1, 1], [], []>} : vector<8x8xbf16>, vector<8x8xbf16>, vector<8x8xf32> -> vector<8x8xf32>
    %c0_134 = arith.constant 0 : index
    %c8_135 = arith.constant 8 : index
    %227 = vector.load %arg32[%c0_134, %c8_135] : memref<8x32xf32, #tpu.memory_space<vmem>>, vector<8x8xf32>
    tpu.vector_store %arg32[%c0_134, %c8_135], %226 {strides = array<i32>} : memref<8x32xf32, #tpu.memory_space<vmem>>, vector<8x8xf32>,
    %c0_136 = arith.constant 0 : index
    %c16_137 = arith.constant 16 : index
    %228 = vector.load %arg29[%c0_136, %c16_137] : memref<8x32xf32, #tpu.memory_space<vmem>>, vector<8x8xf32>
    %229 = arith.truncf %228 : vector<8x8xf32> to vector<8x8xbf16>
    %c0_138 = arith.constant 0 : index
    %c16_139 = arith.constant 16 : index
    %230 = vector.load %arg31[%c0_138, %c16_139] : memref<8x64xf32, #tpu.memory_space<vmem>>, vector<8x8xf32>
    %231 = arith.truncf %230 : vector<8x8xf32> to vector<8x8xbf16>
    %c0_140 = arith.constant 0 : index
    %c48_141 = arith.constant 48 : index
    %232 = vector.load %arg31[%c0_140, %c48_141] : memref<8x64xf32, #tpu.memory_space<vmem>>, vector<8x8xf32>
    %233 = arith.truncf %232 : vector<8x8xf32> to vector<8x8xbf16>
    %cst_142 = arith.constant dense<0.000000e+00> : vector<8x8xf32>
    %234 = tpu.matmul %229, %231, %cst_142 {dimension_numbers = #tpu.dot_dimension_numbers<[1], [1], [0], [0], [0, 0, 1, 0], [], []>} : vector<8x8xbf16>, vector<8x8xbf16>, vector<8x8xf32> -> vector<8x8xf32>
    %cst_143 = arith.constant 0.353553385 : f32
    %235 = vector.broadcast %cst_143 : f32 to vector<8x8xf32>
    %236 = arith.mulf %234, %235 : vector<8x8xf32>
    %cst_144 = arith.constant -1.000000e+09 : f32
    %237 = vector.broadcast %cst_144 : f32 to vector<8x8xf32>
    %238 = arith.select %179, %237, %236 : vector<8x8xi1>, vector<8x8xf32>
    %cst_145 = arith.constant dense<0xFF800000> : vector<8xf32>
    %239 = vector.multi_reduction <maximumf>, %238, %cst_145 [1] : vector<8x8xf32> to vector<8xf32>
    %240 = vector.shape_cast %239 : vector<8xf32> to vector<8x1xf32>
    %241 = vector.broadcast %240 : vector<8x1xf32> to vector<8x8xf32>
    %242 = arith.subf %238, %241 : vector<8x8xf32>
    %243 = math.exp %242 : vector<8x8xf32>
    %cst_146 = arith.constant dense<0.000000e+00> : vector<8xf32>
    %244 = vector.multi_reduction <add>, %243, %cst_146 [1] : vector<8x8xf32> to vector<8xf32>
    %245 = vector.shape_cast %244 : vector<8xf32> to vector<8x1xf32>
    %246 = tpu.reciprocal %245 {approx = true} : vector<8x1xf32> -> vector<8x1xf32>
    %247 = vector.broadcast %246 : vector<8x1xf32> to vector<8x8xf32>
    %248 = arith.mulf %243, %247 : vector<8x8xf32>
    %249 = arith.truncf %248 : vector<8x8xf32> to vector<8x8xbf16>
    %cst_147 = arith.constant dense<0.000000e+00> : vector<8x8xf32>
    %250 = tpu.matmul %249, %233, %cst_147 {dimension_numbers = #tpu.dot_dimension_numbers<[1], [0], [0], [1], [0, 0, 1, 1], [], []>} : vector<8x8xbf16>, vector<8x8xbf16>, vector<8x8xf32> -> vector<8x8xf32>
    %c0_148 = arith.constant 0 : index
    %c16_149 = arith.constant 16 : index
    %251 = vector.load %arg32[%c0_148, %c16_149] : memref<8x32xf32, #tpu.memory_space<vmem>>, vector<8x8xf32>
    tpu.vector_store %arg32[%c0_148, %c16_149], %250 {strides = array<i32>} : memref<8x32xf32, #tpu.memory_space<vmem>>, vector<8x8xf32>,
    %c0_150 = arith.constant 0 : index
    %c24_151 = arith.constant 24 : index
    %252 = vector.load %arg29[%c0_150, %c24_151] : memref<8x32xf32, #tpu.memory_space<vmem>>, vector<8x8xf32>
    %253 = arith.truncf %252 : vector<8x8xf32> to vector<8x8xbf16>
    %c0_152 = arith.constant 0 : index
    %c24_153 = arith.constant 24 : index
    %254 = vector.load %arg31[%c0_152, %c24_153] : memref<8x64xf32, #tpu.memory_space<vmem>>, vector<8x8xf32>
    %255 = arith.truncf %254 : vector<8x8xf32> to vector<8x8xbf16>
    %c0_154 = arith.constant 0 : index
    %c56_155 = arith.constant 56 : index
    %256 = vector.load %arg31[%c0_154, %c56_155] : memref<8x64xf32, #tpu.memory_space<vmem>>, vector<8x8xf32>
    %257 = arith.truncf %256 : vector<8x8xf32> to vector<8x8xbf16>
    %cst_156 = arith.constant dense<0.000000e+00> : vector<8x8xf32>
    %258 = tpu.matmul %253, %255, %cst_156 {dimension_numbers = #tpu.dot_dimension_numbers<[1], [1], [0], [0], [0, 0, 1, 0], [], []>} : vector<8x8xbf16>, vector<8x8xbf16>, vector<8x8xf32> -> vector<8x8xf32>
    %cst_157 = arith.constant 0.353553385 : f32
    %259 = vector.broadcast %cst_157 : f32 to vector<8x8xf32>
    %260 = arith.mulf %258, %259 : vector<8x8xf32>
    %cst_158 = arith.constant -1.000000e+09 : f32
    %261 = vector.broadcast %cst_158 : f32 to vector<8x8xf32>
    %262 = arith.select %179, %261, %260 : vector<8x8xi1>, vector<8x8xf32>
    %cst_159 = arith.constant dense<0xFF800000> : vector<8xf32>
    %263 = vector.multi_reduction <maximumf>, %262, %cst_159 [1] : vector<8x8xf32> to vector<8xf32>
    %264 = vector.shape_cast %263 : vector<8xf32> to vector<8x1xf32>
    %265 = vector.broadcast %264 : vector<8x1xf32> to vector<8x8xf32>
    %266 = arith.subf %262, %265 : vector<8x8xf32>
    %267 = math.exp %266 : vector<8x8xf32>
    %cst_160 = arith.constant dense<0.000000e+00> : vector<8xf32>
    %268 = vector.multi_reduction <add>, %267, %cst_160 [1] : vector<8x8xf32> to vector<8xf32>
    %269 = vector.shape_cast %268 : vector<8xf32> to vector<8x1xf32>
    %270 = tpu.reciprocal %269 {approx = true} : vector<8x1xf32> -> vector<8x1xf32>
    %271 = vector.broadcast %270 : vector<8x1xf32> to vector<8x8xf32>
    %272 = arith.mulf %267, %271 : vector<8x8xf32>
    %273 = arith.truncf %272 : vector<8x8xf32> to vector<8x8xbf16>
    %cst_161 = arith.constant dense<0.000000e+00> : vector<8x8xf32>
    %274 = tpu.matmul %273, %257, %cst_161 {dimension_numbers = #tpu.dot_dimension_numbers<[1], [0], [0], [1], [0, 0, 1, 1], [], []>} : vector<8x8xbf16>, vector<8x8xbf16>, vector<8x8xf32> -> vector<8x8xf32>
    %c0_162 = arith.constant 0 : index
    %c24_163 = arith.constant 24 : index
    %275 = vector.load %arg32[%c0_162, %c24_163] : memref<8x32xf32, #tpu.memory_space<vmem>>, vector<8x8xf32>
    tpu.vector_store %arg32[%c0_162, %c24_163], %274 {strides = array<i32>} : memref<8x32xf32, #tpu.memory_space<vmem>>, vector<8x8xf32>,
    %c0_164 = arith.constant 0 : index
    %c0_165 = arith.constant 0 : index
    %276 = vector.load %arg32[%c0_164, %c0_165] : memref<8x32xf32, #tpu.memory_space<vmem>>, vector<8x32xf32>
    %277 = arith.truncf %276 : vector<8x32xf32> to vector<8x32xbf16>
    %c0_166 = arith.constant 0 : index
    %c0_167 = arith.constant 0 : index
    %278 = vector.load %arg18[%c0_166, %c0_167] : memref<32x32xbf16, #tpu.memory_space<vmem>>, vector<32x32xbf16>
    %cst_168 = arith.constant dense<0.000000e+00> : vector<8x32xf32>
    %279 = tpu.matmul %277, %278, %cst_168 {dimension_numbers = #tpu.dot_dimension_numbers<[1], [0], [0], [1], [0, 0, 1, 1], [], []>} : vector<8x32xbf16>, vector<32x32xbf16>, vector<8x32xf32> -> vector<8x32xf32>
    %c0_169 = arith.constant 0 : index
    %c0_170 = arith.constant 0 : index
    %280 = vector.load %arg19[%c0_169, %c0_170] : memref<1x32xf32, #tpu.memory_space<vmem>>, vector<1x32xf32>
    %281 = vector.broadcast %280 : vector<1x32xf32> to vector<8x32xf32>
    %282 = arith.addf %279, %281 : vector<8x32xf32>
    %283 = arith.addf %282, %159 : vector<8x32xf32>
    %c0_171 = arith.constant 0 : index
    %c0_172 = arith.constant 0 : index
    %284 = vector.load %arg20[%c0_171, %c0_172] : memref<1x32xf32, #tpu.memory_space<vmem>>, vector<1x32xf32>
    %c0_173 = arith.constant 0 : index
    %c0_174 = arith.constant 0 : index
    %285 = vector.load %arg21[%c0_173, %c0_174] : memref<1x32xf32, #tpu.memory_space<vmem>>, vector<1x32xf32>
    %cst_175 = arith.constant dense<0.000000e+00> : vector<8xf32>
    %286 = vector.multi_reduction <add>, %283, %cst_175 [1] : vector<8x32xf32> to vector<8xf32>
    %287 = vector.shape_cast %286 : vector<8xf32> to vector<8x1xf32>
    %cst_176 = arith.constant 3.200000e+01 : f32
    %288 = vector.broadcast %cst_176 : f32 to vector<8x1xf32>
    %289 = arith.divf %287, %288 : vector<8x1xf32>
    %290 = vector.broadcast %289 : vector<8x1xf32> to vector<8x32xf32>
    %291 = arith.subf %283, %290 : vector<8x32xf32>
    %292 = arith.mulf %291, %291 : vector<8x32xf32>
    %cst_177 = arith.constant dense<0.000000e+00> : vector<8xf32>
    %293 = vector.multi_reduction <add>, %292, %cst_177 [1] : vector<8x32xf32> to vector<8xf32>
    %294 = vector.shape_cast %293 : vector<8xf32> to vector<8x1xf32>
    %cst_178 = arith.constant 3.200000e+01 : f32
    %295 = vector.broadcast %cst_178 : f32 to vector<8x1xf32>
    %296 = arith.divf %294, %295 : vector<8x1xf32>
    %297 = vector.broadcast %289 : vector<8x1xf32> to vector<8x32xf32>
    %298 = arith.subf %283, %297 : vector<8x32xf32>
    %cst_179 = arith.constant 9.99999974E-6 : f32
    %299 = vector.broadcast %cst_179 : f32 to vector<8x1xf32>
    %300 = arith.addf %296, %299 : vector<8x1xf32>
    %301 = math.rsqrt %300 : vector<8x1xf32>
    %302 = vector.broadcast %301 : vector<8x1xf32> to vector<8x32xf32>
    %303 = arith.mulf %298, %302 : vector<8x32xf32>
    %304 = vector.broadcast %284 : vector<1x32xf32> to vector<8x32xf32>
    %305 = arith.mulf %303, %304 : vector<8x32xf32>
    %306 = vector.broadcast %285 : vector<1x32xf32> to vector<8x32xf32>
    %307 = arith.addf %305, %306 : vector<8x32xf32>
    %308 = vector.broadcast %1 : vector<8x1xf32> to vector<8x32xf32>
    %309 = arith.mulf %307, %308 : vector<8x32xf32>
    %310 = arith.truncf %309 : vector<8x32xf32> to vector<8x32xbf16>
    %c0_180 = arith.constant 0 : index
    %c0_181 = arith.constant 0 : index
    %311 = vector.load %arg22[%c0_180, %c0_181] : memref<32x64xbf16, #tpu.memory_space<vmem>>, vector<32x64xbf16>
    %cst_182 = arith.constant dense<0.000000e+00> : vector<8x64xf32>
    %312 = tpu.matmul %310, %311, %cst_182 {dimension_numbers = #tpu.dot_dimension_numbers<[1], [0], [0], [1], [0, 0, 1, 1], [], []>} : vector<8x32xbf16>, vector<32x64xbf16>, vector<8x64xf32> -> vector<8x64xf32>
    %c0_183 = arith.constant 0 : index
    %c0_184 = arith.constant 0 : index
    %313 = vector.load %arg23[%c0_183, %c0_184] : memref<1x64xf32, #tpu.memory_space<vmem>>, vector<1x64xf32>
    %314 = vector.broadcast %313 : vector<1x64xf32> to vector<8x64xf32>
    %315 = arith.addf %312, %314 : vector<8x64xf32>
    %cst_185 = arith.constant 0.000000e+00 : f32
    %316 = vector.broadcast %cst_185 : f32 to vector<8x64xf32>
    %317 = arith.maximumf %315, %316 : vector<8x64xf32>
    %318 = arith.truncf %317 : vector<8x64xf32> to vector<8x64xbf16>
    %c0_186 = arith.constant 0 : index
    %c0_187 = arith.constant 0 : index
    %319 = vector.load %arg24[%c0_186, %c0_187] : memref<64x32xbf16, #tpu.memory_space<vmem>>, vector<64x32xbf16>
    %cst_188 = arith.constant dense<0.000000e+00> : vector<8x32xf32>
    %320 = tpu.matmul %318, %319, %cst_188 {dimension_numbers = #tpu.dot_dimension_numbers<[1], [0], [0], [1], [0, 0, 1, 1], [], []>} : vector<8x64xbf16>, vector<64x32xbf16>, vector<8x32xf32> -> vector<8x32xf32>
    %c0_189 = arith.constant 0 : index
    %c0_190 = arith.constant 0 : index
    %321 = vector.load %arg25[%c0_189, %c0_190] : memref<1x32xf32, #tpu.memory_space<vmem>>, vector<1x32xf32>
    %322 = vector.broadcast %321 : vector<1x32xf32> to vector<8x32xf32>
    %323 = arith.addf %320, %322 : vector<8x32xf32>
    %324 = arith.addf %323, %309 : vector<8x32xf32>
    %c0_191 = arith.constant 0 : index
    %c0_192 = arith.constant 0 : index
    %325 = vector.load %arg26[%c0_191, %c0_192] : memref<1x32xf32, #tpu.memory_space<vmem>>, vector<1x32xf32>
    %c0_193 = arith.constant 0 : index
    %c0_194 = arith.constant 0 : index
    %326 = vector.load %arg27[%c0_193, %c0_194] : memref<1x32xf32, #tpu.memory_space<vmem>>, vector<1x32xf32>
    %cst_195 = arith.constant dense<0.000000e+00> : vector<8xf32>
    %327 = vector.multi_reduction <add>, %324, %cst_195 [1] : vector<8x32xf32> to vector<8xf32>
    %328 = vector.shape_cast %327 : vector<8xf32> to vector<8x1xf32>
    %cst_196 = arith.constant 3.200000e+01 : f32
    %329 = vector.broadcast %cst_196 : f32 to vector<8x1xf32>
    %330 = arith.divf %328, %329 : vector<8x1xf32>
    %331 = vector.broadcast %330 : vector<8x1xf32> to vector<8x32xf32>
    %332 = arith.subf %324, %331 : vector<8x32xf32>
    %333 = arith.mulf %332, %332 : vector<8x32xf32>
    %cst_197 = arith.constant dense<0.000000e+00> : vector<8xf32>
    %334 = vector.multi_reduction <add>, %333, %cst_197 [1] : vector<8x32xf32> to vector<8xf32>
    %335 = vector.shape_cast %334 : vector<8xf32> to vector<8x1xf32>
    %cst_198 = arith.constant 3.200000e+01 : f32
    %336 = vector.broadcast %cst_198 : f32 to vector<8x1xf32>
    %337 = arith.divf %335, %336 : vector<8x1xf32>
    %338 = vector.broadcast %330 : vector<8x1xf32> to vector<8x32xf32>
    %339 = arith.subf %324, %338 : vector<8x32xf32>
    %cst_199 = arith.constant 9.99999974E-6 : f32
    %340 = vector.broadcast %cst_199 : f32 to vector<8x1xf32>
    %341 = arith.addf %337, %340 : vector<8x1xf32>
    %342 = math.rsqrt %341 : vector<8x1xf32>
    %343 = vector.broadcast %342 : vector<8x1xf32> to vector<8x32xf32>
    %344 = arith.mulf %339, %343 : vector<8x32xf32>
    %345 = vector.broadcast %325 : vector<1x32xf32> to vector<8x32xf32>
    %346 = arith.mulf %344, %345 : vector<8x32xf32>
    %347 = vector.broadcast %326 : vector<1x32xf32> to vector<8x32xf32>
    %348 = arith.addf %346, %347 : vector<8x32xf32>
    %349 = vector.broadcast %1 : vector<8x1xf32> to vector<8x32xf32>
    %350 = arith.mulf %348, %349 : vector<8x32xf32>
    %c0_200 = arith.constant 0 : index
    %c0_201 = arith.constant 0 : index
    %c0_202 = arith.constant 0 : index
    %351 = vector.load %arg28[%c0_200, %c0_201, %c0_202] : memref<1x8x32xf32, #tpu.memory_space<vmem>>, vector<1x8x32xf32>
    %352 = vector.shape_cast %351 : vector<1x8x32xf32> to vector<8x32xf32>
    %353 = vector.shape_cast %350 : vector<8x32xf32> to vector<1x8x32xf32>
    tpu.vector_store %arg28[%c0_200, %c0_201, %c0_202], %353 {strides = array<i32>} : memref<1x8x32xf32, #tpu.memory_space<vmem>>, vector<1x8x32xf32>,
    return
  }
  func.func @transform_0(%arg0: i32) -> (i32, i32, i32) {
    %c0_i32 = arith.constant 0 : i32
    %c0_i32_0 = arith.constant 0 : i32
    %c0_i32_1 = arith.constant 0 : i32
    return %arg0, %c0_i32, %c0_i32_0 : i32, i32, i32
  }
  func.func @transform_1(%arg0: i32) -> (i32, i32, i32) {
    %c0_i32 = arith.constant 0 : i32
    %c0_i32_0 = arith.constant 0 : i32
    %c0_i32_1 = arith.constant 0 : i32
    return %arg0, %c0_i32, %c0_i32_0 : i32, i32, i32
  }
  func.func @transform_2(%arg0: i32) -> (i32, i32, i32) {
    %c0_i32 = arith.constant 0 : i32
    %c0_i32_0 = arith.constant 0 : i32
    %c0_i32_1 = arith.constant 0 : i32
    return %arg0, %c0_i32, %c0_i32_0 : i32, i32, i32
  }
  func.func @transform_3(%arg0: i32) -> (i32, i32, i32) {
    %c0_i32 = arith.constant 0 : i32
    %c0_i32_0 = arith.constant 0 : i32
    %c0_i32_1 = arith.constant 0 : i32
    return %arg0, %c0_i32, %c0_i32_0 : i32, i32, i32
  }
  func.func @transform_4(%arg0: i32) -> (i32, i32, i32) {
    %c0_i32 = arith.constant 0 : i32
    %c0_i32_0 = arith.constant 0 : i32
    %c0_i32_1 = arith.constant 0 : i32
    return %arg0, %c0_i32, %c0_i32_0 : i32, i32, i32
  }
  func.func @transform_5(%arg0: i32) -> (i32, i32) {
    %c0_i32 = arith.constant 0 : i32
    %c0_i32_0 = arith.constant 0 : i32
    %c0_i32_1 = arith.constant 0 : i32
    return %c0_i32, %c0_i32_0 : i32, i32
  }
  func.func @transform_6(%arg0: i32) -> (i32, i32) {
    %c0_i32 = arith.constant 0 : i32
    %c0_i32_0 = arith.constant 0 : i32
    %c0_i32_1 = arith.constant 0 : i32
    return %c0_i32, %c0_i32_0 : i32, i32
  }
  func.func @transform_7(%arg0: i32) -> (i32, i32) {
    %c0_i32 = arith.constant 0 : i32
    %c0_i32_0 = arith.constant 0 : i32
    %c0_i32_1 = arith.constant 0 : i32
    return %c0_i32, %c0_i32_0 : i32, i32
  }
  func.func @transform_8(%arg0: i32) -> (i32, i32) {
    %c0_i32 = arith.constant 0 : i32
    %c0_i32_0 = arith.constant 0 : i32
    %c0_i32_1 = arith.constant 0 : i32
    return %c0_i32, %c0_i32_0 : i32, i32
  }
  func.func @transform_9(%arg0: i32) -> (i32, i32) {
    %c0_i32 = arith.constant 0 : i32
    %c0_i32_0 = arith.constant 0 : i32
    %c0_i32_1 = arith.constant 0 : i32
    return %c0_i32, %c0_i32_0 : i32, i32
  }
  func.func @transform_10(%arg0: i32) -> (i32, i32) {
    %c0_i32 = arith.constant 0 : i32
    %c0_i32_0 = arith.constant 0 : i32
    %c0_i32_1 = arith.constant 0 : i32
    return %c0_i32, %c0_i32_0 : i32, i32
  }
  func.func @transform_11(%arg0: i32) -> (i32, i32) {
    %c0_i32 = arith.constant 0 : i32
    %c0_i32_0 = arith.constant 0 : i32
    %c0_i32_1 = arith.constant 0 : i32
    return %c0_i32, %c0_i32_0 : i32, i32
  }
  func.func @transform_12(%arg0: i32) -> (i32, i32) {
    %c0_i32 = arith.constant 0 : i32
    %c0_i32_0 = arith.constant 0 : i32
    %c0_i32_1 = arith.constant 0 : i32
    return %c0_i32, %c0_i32_0 : i32, i32
  }
  func.func @transform_13(%arg0: i32) -> (i32, i32) {
    %c0_i32 = arith.constant 0 : i32
    %c0_i32_0 = arith.constant 0 : i32
    %c0_i32_1 = arith.constant 0 : i32
    return %c0_i32, %c0_i32_0 : i32, i32
  }
  func.func @transform_14(%arg0: i32) -> (i32, i32) {
    %c0_i32 = arith.constant 0 : i32
    %c0_i32_0 = arith.constant 0 : i32
    %c0_i32_1 = arith.constant 0 : i32
    return %c0_i32, %c0_i32_0 : i32, i32
  }
  func.func @transform_15(%arg0: i32) -> (i32, i32) {
    %c0_i32 = arith.constant 0 : i32
    %c0_i32_0 = arith.constant 0 : i32
    %c0_i32_1 = arith.constant 0 : i32
    return %c0_i32, %c0_i32_0 : i32, i32
  }
  func.func @transform_16(%arg0: i32) -> (i32, i32) {
    %c0_i32 = arith.constant 0 : i32
    %c0_i32_0 = arith.constant 0 : i32
    %c0_i32_1 = arith.constant 0 : i32
    return %c0_i32, %c0_i32_0 : i32, i32
  }
  func.func @transform_17(%arg0: i32) -> (i32, i32) {
    %c0_i32 = arith.constant 0 : i32
    %c0_i32_0 = arith.constant 0 : i32
    %c0_i32_1 = arith.constant 0 : i32
    return %c0_i32, %c0_i32_0 : i32, i32
  }
  func.func @transform_18(%arg0: i32) -> (i32, i32) {
    %c0_i32 = arith.constant 0 : i32
    %c0_i32_0 = arith.constant 0 : i32
    %c0_i32_1 = arith.constant 0 : i32
    return %c0_i32, %c0_i32_0 : i32, i32
  }
  func.func @transform_19(%arg0: i32) -> (i32, i32) {
    %c0_i32 = arith.constant 0 : i32
    %c0_i32_0 = arith.constant 0 : i32
    %c0_i32_1 = arith.constant 0 : i32
    return %c0_i32, %c0_i32_0 : i32, i32
  }
  func.func @transform_20(%arg0: i32) -> (i32, i32) {
    %c0_i32 = arith.constant 0 : i32
    %c0_i32_0 = arith.constant 0 : i32
    %c0_i32_1 = arith.constant 0 : i32
    return %c0_i32, %c0_i32_0 : i32, i32
  }
  func.func @transform_21(%arg0: i32) -> (i32, i32) {
    %c0_i32 = arith.constant 0 : i32
    %c0_i32_0 = arith.constant 0 : i32
    %c0_i32_1 = arith.constant 0 : i32
    return %c0_i32, %c0_i32_0 : i32, i32
  }
  func.func @transform_22(%arg0: i32) -> (i32, i32) {
    %c0_i32 = arith.constant 0 : i32
    %c0_i32_0 = arith.constant 0 : i32
    %c0_i32_1 = arith.constant 0 : i32
    return %c0_i32, %c0_i32_0 : i32, i32
  }
  func.func @transform_23(%arg0: i32) -> (i32, i32) {
    %c0_i32 = arith.constant 0 : i32
    %c0_i32_0 = arith.constant 0 : i32
    %c0_i32_1 = arith.constant 0 : i32
    return %c0_i32, %c0_i32_0 : i32, i32
  }
  func.func @transform_24(%arg0: i32) -> (i32, i32) {
    %c0_i32 = arith.constant 0 : i32
    %c0_i32_0 = arith.constant 0 : i32
    %c0_i32_1 = arith.constant 0 : i32
    return %c0_i32, %c0_i32_0 : i32, i32
  }
  func.func @transform_25(%arg0: i32) -> (i32, i32) {
    %c0_i32 = arith.constant 0 : i32
    %c0_i32_0 = arith.constant 0 : i32
    %c0_i32_1 = arith.constant 0 : i32
    return %c0_i32, %c0_i32_0 : i32, i32
  }
  func.func @transform_26(%arg0: i32) -> (i32, i32) {
    %c0_i32 = arith.constant 0 : i32
    %c0_i32_0 = arith.constant 0 : i32
    %c0_i32_1 = arith.constant 0 : i32
    return %c0_i32, %c0_i32_0 : i32, i32
  }
  func.func @transform_27(%arg0: i32) -> (i32, i32, i32) {
    %c0_i32 = arith.constant 0 : i32
    %c0_i32_0 = arith.constant 0 : i32
    %c0_i32_1 = arith.constant 0 : i32
    return %arg0, %c0_i32, %c0_i32_0 : i32, i32, i32
  }
}

module attributes {stable_mosaic.version = 11 : i64} {
  func.func @_decoder_layer_kernel(%arg0: i32, %arg1: memref<1x8x32xf32, #tpu.memory_space<vmem>>, %arg2: memref<1x8x32xf32, #tpu.memory_space<vmem>>, %arg3: memref<1x1x8xf32, #tpu.memory_space<vmem>>, %arg4: memref<1x1x8xf32, #tpu.memory_space<vmem>>, %arg5: memref<1x8x1xf32, #tpu.memory_space<vmem>>, %arg6: memref<32x32xbf16, #tpu.memory_space<vmem>>, %arg7: memref<1x32xf32, #tpu.memory_space<vmem>>, %arg8: memref<32x64xbf16, #tpu.memory_space<vmem>>, %arg9: memref<1x64xf32, #tpu.memory_space<vmem>>, %arg10: memref<32x32xbf16, #tpu.memory_space<vmem>>, %arg11: memref<1x32xf32, #tpu.memory_space<vmem>>, %arg12: memref<1x32xf32, #tpu.memory_space<vmem>>, %arg13: memref<1x32xf32, #tpu.memory_space<vmem>>, %arg14: memref<32x32xbf16, #tpu.memory_space<vmem>>, %arg15: memref<1x32xf32, #tpu.memory_space<vmem>>, %arg16: memref<32x64xbf16, #tpu.memory_space<vmem>>, %arg17: memref<1x64xf32, #tpu.memory_space<vmem>>, %arg18: memref<32x32xbf16, #tpu.memory_space<vmem>>, %arg19: memref<1x32xf32, #tpu.memory_space<vmem>>, %arg20: memref<1x32xf32, #tpu.memory_space<vmem>>, %arg21: memref<1x32xf32, #tpu.memory_space<vmem>>, %arg22: memref<32x64xbf16, #tpu.memory_space<vmem>>, %arg23: memref<1x64xf32, #tpu.memory_space<vmem>>, %arg24: memref<64x32xbf16, #tpu.memory_space<vmem>>, %arg25: memref<1x32xf32, #tpu.memory_space<vmem>>, %arg26: memref<1x32xf32, #tpu.memory_space<vmem>>, %arg27: memref<1x32xf32, #tpu.memory_space<vmem>>, %arg28: memref<1x8x32xf32, #tpu.memory_space<vmem>>, %arg29: memref<8x32xf32, #tpu.memory_space<vmem>>, %arg30: memref<8x64xf32, #tpu.memory_space<vmem>>, %arg31: memref<8x64xf32, #tpu.memory_space<vmem>>, %arg32: memref<8x32xf32, #tpu.memory_space<vmem>>) attributes {dimension_semantics = [#tpu.dimension_semantics<parallel>], iteration_bounds = array<i64: 2>, scalar_prefetch = 0 : i64, scratch_operands = 4 : i64, tpu.core_type = #tpu.core_type<tc>, window_params = [{transform_indices = @transform_0, window_bounds = array<i64: 1, 8, 32>}, {transform_indices = @transform_1, window_bounds = array<i64: 1, 8, 32>}, {transform_indices = @transform_2, window_bounds = array<i64: 1, 1, 8>}, {transform_indices = @transform_3, window_bounds = array<i64: 1, 1, 8>}, {transform_indices = @transform_4, window_bounds = array<i64: 1, 8, 1>}, {pipeline_mode = #tpu.pipeline_mode<synchronous>, transform_indices = @transform_5, window_bounds = array<i64: 32, 32>}, {pipeline_mode = #tpu.pipeline_mode<synchronous>, transform_indices = @transform_6, window_bounds = array<i64: 1, 32>}, {pipeline_mode = #tpu.pipeline_mode<synchronous>, transform_indices = @transform_7, window_bounds = array<i64: 32, 64>}, {pipeline_mode = #tpu.pipeline_mode<synchronous>, transform_indices = @transform_8, window_bounds = array<i64: 1, 64>}, {pipeline_mode = #tpu.pipeline_mode<synchronous>, transform_indices = @transform_9, window_bounds = array<i64: 32, 32>}, {pipeline_mode = #tpu.pipeline_mode<synchronous>, transform_indices = @transform_10, window_bounds = array<i64: 1, 32>}, {pipeline_mode = #tpu.pipeline_mode<synchronous>, transform_indices = @transform_11, window_bounds = array<i64: 1, 32>}, {pipeline_mode = #tpu.pipeline_mode<synchronous>, transform_indices = @transform_12, window_bounds = array<i64: 1, 32>}, {pipeline_mode = #tpu.pipeline_mode<synchronous>, transform_indices = @transform_13, window_bounds = array<i64: 32, 32>}, {pipeline_mode = #tpu.pipeline_mode<synchronous>, transform_indices = @transform_14, window_bounds = array<i64: 1, 32>}, {pipeline_mode = #tpu.pipeline_mode<synchronous>, transform_indices = @transform_15, window_bounds = array<i64: 32, 64>}, {pipeline_mode = #tpu.pipeline_mode<synchronous>, transform_indices = @transform_16, window_bounds = array<i64: 1, 64>}, {pipeline_mode = #tpu.pipeline_mode<synchronous>, transform_indices = @transform_17, window_bounds = array<i64: 32, 32>}, {pipeline_mode = #tpu.pipeline_mode<synchronous>, transform_indices = @transform_18, window_bounds = array<i64: 1, 32>}, {pipeline_mode = #tpu.pipeline_mode<synchronous>, transform_indices = @transform_19, window_bounds = array<i64: 1, 32>}, {pipeline_mode = #tpu.pipeline_mode<synchronous>, transform_indices = @transform_20, window_bounds = array<i64: 1, 32>}, {pipeline_mode = #tpu.pipeline_mode<synchronous>, transform_indices = @transform_21, window_bounds = array<i64: 32, 64>}, {pipeline_mode = #tpu.pipeline_mode<synchronous>, transform_indices = @transform_22, window_bounds = array<i64: 1, 64>}, {pipeline_mode = #tpu.pipeline_mode<synchronous>, transform_indices = @transform_23, window_bounds = array<i64: 64, 32>}, {pipeline_mode = #tpu.pipeline_mode<synchronous>, transform_indices = @transform_24, window_bounds = array<i64: 1, 32>}, {pipeline_mode = #tpu.pipeline_mode<synchronous>, transform_indices = @transform_25, window_bounds = array<i64: 1, 32>}, {pipeline_mode = #tpu.pipeline_mode<synchronous>, transform_indices = @transform_26, window_bounds = array<i64: 1, 32>}, {transform_indices = @transform_27, window_bounds = array<i64: 1, 8, 32>}]} {
    %c0 = arith.constant 0 : index
    %c0_0 = arith.constant 0 : index
    %c0_1 = arith.constant 0 : index
    %0 = vector.load %arg5[%c0, %c0_0, %c0_1] : memref<1x8x1xf32, #tpu.memory_space<vmem>>, vector<1x8x1xf32>
    %1 = vector.shape_cast %0 : vector<1x8x1xf32> to vector<8x1xf32>
    %c0_2 = arith.constant 0 : index
    %c0_3 = arith.constant 0 : index
    %c0_4 = arith.constant 0 : index
    %2 = vector.load %arg1[%c0_2, %c0_3, %c0_4] : memref<1x8x32xf32, #tpu.memory_space<vmem>>, vector<1x8x32xf32>
    %3 = vector.shape_cast %2 : vector<1x8x32xf32> to vector<8x32xf32>
    %c0_5 = arith.constant 0 : index
    %c0_6 = arith.constant 0 : index
    %c0_7 = arith.constant 0 : index
    %4 = vector.load %arg2[%c0_5, %c0_6, %c0_7] : memref<1x8x32xf32, #tpu.memory_space<vmem>>, vector<1x8x32xf32>
    %5 = vector.shape_cast %4 : vector<1x8x32xf32> to vector<8x32xf32>
    %c0_8 = arith.constant 0 : index
    %c0_9 = arith.constant 0 : index
    %c0_10 = arith.constant 0 : index
    %6 = vector.load %arg3[%c0_8, %c0_9, %c0_10] : memref<1x1x8xf32, #tpu.memory_space<vmem>>, vector<1x1x8xf32>
    %7 = vector.shape_cast %6 : vector<1x1x8xf32> to vector<1x8xf32>
    %8 = arith.truncf %3 : vector<8x32xf32> to vector<8x32xbf16>
    %c0_11 = arith.constant 0 : index
    %c0_12 = arith.constant 0 : index
    %9 = vector.load %arg6[%c0_11, %c0_12] : memref<32x32xbf16, #tpu.memory_space<vmem>>, vector<32x32xbf16>
    %cst = arith.constant dense<0.000000e+00> : vector<8x32xf32>
    %10 = tpu.matmul %8, %9, %cst {dimension_numbers = #tpu.dot_dimension_numbers<[1], [0], [0], [1], [0, 0, 1, 1], [], []>} : vector<8x32xbf16>, vector<32x32xbf16>, vector<8x32xf32> -> vector<8x32xf32>
    %c0_13 = arith.constant 0 : index
    %c0_14 = arith.constant 0 : index
    %11 = vector.load %arg7[%c0_13, %c0_14] : memref<1x32xf32, #tpu.memory_space<vmem>>, vector<1x32xf32>
    %12 = vector.broadcast %11 : vector<1x32xf32> to vector<8x32xf32>
    %13 = arith.addf %10, %12 : vector<8x32xf32>
    %c0_15 = arith.constant 0 : index
    %c0_16 = arith.constant 0 : index
    %14 = vector.load %arg29[%c0_15, %c0_16] : memref<8x32xf32, #tpu.memory_space<vmem>>, vector<8x32xf32>
    tpu.vector_store %arg29[%c0_15, %c0_16], %13 {strides = array<i32>} : memref<8x32xf32, #tpu.memory_space<vmem>>, vector<8x32xf32>,
    %15 = arith.truncf %3 : vector<8x32xf32> to vector<8x32xbf16>
    %c0_17 = arith.constant 0 : index
    %c0_18 = arith.constant 0 : index
    %16 = vector.load %arg8[%c0_17, %c0_18] : memref<32x64xbf16, #tpu.memory_space<vmem>>, vector<32x64xbf16>
    %cst_19 = arith.constant dense<0.000000e+00> : vector<8x64xf32>
    %17 = tpu.matmul %15, %16, %cst_19 {dimension_numbers = #tpu.dot_dimension_numbers<[1], [0], [0], [1], [0, 0, 1, 1], [], []>} : vector<8x32xbf16>, vector<32x64xbf16>, vector<8x64xf32> -> vector<8x64xf32>
    %c0_20 = arith.constant 0 : index
    %c0_21 = arith.constant 0 : index
    %18 = vector.load %arg9[%c0_20, %c0_21] : memref<1x64xf32, #tpu.memory_space<vmem>>, vector<1x64xf32>
    %19 = vector.broadcast %18 : vector<1x64xf32> to vector<8x64xf32>
    %20 = arith.addf %17, %19 : vector<8x64xf32>
    %c0_22 = arith.constant 0 : index
    %c0_23 = arith.constant 0 : index
    %21 = vector.load %arg30[%c0_22, %c0_23] : memref<8x64xf32, #tpu.memory_space<vmem>>, vector<8x64xf32>
    tpu.vector_store %arg30[%c0_22, %c0_23], %20 {strides = array<i32>} : memref<8x64xf32, #tpu.memory_space<vmem>>, vector<8x64xf32>,
    %22 = vector.shape_cast %7 : vector<1x8xf32> to vector<1x8xf32>
    %23 = vector.broadcast %22 : vector<1x8xf32> to vector<8x8xf32>
    %cst_24 = arith.constant 5.000000e-01 : f32
    %24 = vector.broadcast %cst_24 : f32 to vector<8x8xf32>
    %25 = arith.cmpf ogt, %23, %24 : vector<8x8xf32>
    %26 = tpu.iota {dimensions = array<i32: 0>} : vector<8x8xi32>
    %27 = tpu.iota {dimensions = array<i32: 1>} : vector<8x8xi32>
    %28 = arith.cmpi sgt, %27, %26 : vector<8x8xi32>
    %29 = arith.ori %25, %28 : vector<8x8xi1>
    %c0_25 = arith.constant 0 : index
    %c0_26 = arith.constant 0 : index
    %30 = vector.load %arg29[%c0_25, %c0_26] : memref<8x32xf32, #tpu.memory_space<vmem>>, vector<8x8xf32>
    %31 = arith.truncf %30 : vector<8x8xf32> to vector<8x8xbf16>
    %c0_27 = arith.constant 0 : index
    %c0_28 = arith.constant 0 : index
    %32 = vector.load %arg30[%c0_27, %c0_28] : memref<8x64xf32, #tpu.memory_space<vmem>>, vector<8x8xf32>
    %33 = arith.truncf %32 : vector<8x8xf32> to vector<8x8xbf16>
    %c0_29 = arith.constant 0 : index
    %c32 = arith.constant 32 : index
    %34 = vector.load %arg30[%c0_29, %c32] : memref<8x64xf32, #tpu.memory_space<vmem>>, vector<8x8xf32>
    %35 = arith.truncf %34 : vector<8x8xf32> to vector<8x8xbf16>
    %cst_30 = arith.constant dense<0.000000e+00> : vector<8x8xf32>
    %36 = tpu.matmul %31, %33, %cst_30 {dimension_numbers = #tpu.dot_dimension_numbers<[1], [1], [0], [0], [0, 0, 1, 0], [], []>} : vector<8x8xbf16>, vector<8x8xbf16>, vector<8x8xf32> -> vector<8x8xf32>
    %cst_31 = arith.constant 0.353553385 : f32
    %37 = vector.broadcast %cst_31 : f32 to vector<8x8xf32>
    %38 = arith.mulf %36, %37 : vector<8x8xf32>
    %cst_32 = arith.constant -1.000000e+09 : f32
    %39 = vector.broadcast %cst_32 : f32 to vector<8x8xf32>
    %40 = arith.select %29, %39, %38 : vector<8x8xi1>, vector<8x8xf32>
    %cst_33 = arith.constant dense<0xFF800000> : vector<8xf32>
    %41 = vector.multi_reduction <maximumf>, %40, %cst_33 [1] : vector<8x8xf32> to vector<8xf32>
    %42 = vector.shape_cast %41 : vector<8xf32> to vector<8x1xf32>
    %43 = vector.broadcast %42 : vector<8x1xf32> to vector<8x8xf32>
    %44 = arith.subf %40, %43 : vector<8x8xf32>
    %45 = math.exp %44 : vector<8x8xf32>
    %cst_34 = arith.constant dense<0.000000e+00> : vector<8xf32>
    %46 = vector.multi_reduction <add>, %45, %cst_34 [1] : vector<8x8xf32> to vector<8xf32>
    %47 = vector.shape_cast %46 : vector<8xf32> to vector<8x1xf32>
    %48 = tpu.reciprocal %47 {approx = true} : vector<8x1xf32> -> vector<8x1xf32>
    %49 = vector.broadcast %48 : vector<8x1xf32> to vector<8x8xf32>
    %50 = arith.mulf %45, %49 : vector<8x8xf32>
    %51 = arith.truncf %50 : vector<8x8xf32> to vector<8x8xbf16>
    %cst_35 = arith.constant dense<0.000000e+00> : vector<8x8xf32>
    %52 = tpu.matmul %51, %35, %cst_35 {dimension_numbers = #tpu.dot_dimension_numbers<[1], [0], [0], [1], [0, 0, 1, 1], [], []>} : vector<8x8xbf16>, vector<8x8xbf16>, vector<8x8xf32> -> vector<8x8xf32>
    %c0_36 = arith.constant 0 : index
    %c0_37 = arith.constant 0 : index
    %53 = vector.load %arg32[%c0_36, %c0_37] : memref<8x32xf32, #tpu.memory_space<vmem>>, vector<8x8xf32>
    tpu.vector_store %arg32[%c0_36, %c0_37], %52 {strides = array<i32>} : memref<8x32xf32, #tpu.memory_space<vmem>>, vector<8x8xf32>,
    %c0_38 = arith.constant 0 : index
    %c8 = arith.constant 8 : index
    %54 = vector.load %arg29[%c0_38, %c8] : memref<8x32xf32, #tpu.memory_space<vmem>>, vector<8x8xf32>
    %55 = arith.truncf %54 : vector<8x8xf32> to vector<8x8xbf16>
    %c0_39 = arith.constant 0 : index
    %c8_40 = arith.constant 8 : index
    %56 = vector.load %arg30[%c0_39, %c8_40] : memref<8x64xf32, #tpu.memory_space<vmem>>, vector<8x8xf32>
    %57 = arith.truncf %56 : vector<8x8xf32> to vector<8x8xbf16>
    %c0_41 = arith.constant 0 : index
    %c40 = arith.constant 40 : index
    %58 = vector.load %arg30[%c0_41, %c40] : memref<8x64xf32, #tpu.memory_space<vmem>>, vector<8x8xf32>
    %59 = arith.truncf %58 : vector<8x8xf32> to vector<8x8xbf16>
    %cst_42 = arith.constant dense<0.000000e+00> : vector<8x8xf32>
    %60 = tpu.matmul %55, %57, %cst_42 {dimension_numbers = #tpu.dot_dimension_numbers<[1], [1], [0], [0], [0, 0, 1, 0], [], []>} : vector<8x8xbf16>, vector<8x8xbf16>, vector<8x8xf32> -> vector<8x8xf32>
    %cst_43 = arith.constant 0.353553385 : f32
    %61 = vector.broadcast %cst_43 : f32 to vector<8x8xf32>
    %62 = arith.mulf %60, %61 : vector<8x8xf32>
    %cst_44 = arith.constant -1.000000e+09 : f32
    %63 = vector.broadcast %cst_44 : f32 to vector<8x8xf32>
    %64 = arith.select %29, %63, %62 : vector<8x8xi1>, vector<8x8xf32>
    %cst_45 = arith.constant dense<0xFF800000> : vector<8xf32>
    %65 = vector.multi_reduction <maximumf>, %64, %cst_45 [1] : vector<8x8xf32> to vector<8xf32>
    %66 = vector.shape_cast %65 : vector<8xf32> to vector<8x1xf32>
    %67 = vector.broadcast %66 : vector<8x1xf32> to vector<8x8xf32>
    %68 = arith.subf %64, %67 : vector<8x8xf32>
    %69 = math.exp %68 : vector<8x8xf32>
    %cst_46 = arith.constant dense<0.000000e+00> : vector<8xf32>
    %70 = vector.multi_reduction <add>, %69, %cst_46 [1] : vector<8x8xf32> to vector<8xf32>
    %71 = vector.shape_cast %70 : vector<8xf32> to vector<8x1xf32>
    %72 = tpu.reciprocal %71 {approx = true} : vector<8x1xf32> -> vector<8x1xf32>
    %73 = vector.broadcast %72 : vector<8x1xf32> to vector<8x8xf32>
    %74 = arith.mulf %69, %73 : vector<8x8xf32>
    %75 = arith.truncf %74 : vector<8x8xf32> to vector<8x8xbf16>
    %cst_47 = arith.constant dense<0.000000e+00> : vector<8x8xf32>
    %76 = tpu.matmul %75, %59, %cst_47 {dimension_numbers = #tpu.dot_dimension_numbers<[1], [0], [0], [1], [0, 0, 1, 1], [], []>} : vector<8x8xbf16>, vector<8x8xbf16>, vector<8x8xf32> -> vector<8x8xf32>
    %c0_48 = arith.constant 0 : index
    %c8_49 = arith.constant 8 : index
    %77 = vector.load %arg32[%c0_48, %c8_49] : memref<8x32xf32, #tpu.memory_space<vmem>>, vector<8x8xf32>
    tpu.vector_store %arg32[%c0_48, %c8_49], %76 {strides = array<i32>} : memref<8x32xf32, #tpu.memory_space<vmem>>, vector<8x8xf32>,
    %c0_50 = arith.constant 0 : index
    %c16 = arith.constant 16 : index
    %78 = vector.load %arg29[%c0_50, %c16] : memref<8x32xf32, #tpu.memory_space<vmem>>, vector<8x8xf32>
    %79 = arith.truncf %78 : vector<8x8xf32> to vector<8x8xbf16>
    %c0_51 = arith.constant 0 : index
    %c16_52 = arith.constant 16 : index
    %80 = vector.load %arg30[%c0_51, %c16_52] : memref<8x64xf32, #tpu.memory_space<vmem>>, vector<8x8xf32>
    %81 = arith.truncf %80 : vector<8x8xf32> to vector<8x8xbf16>
    %c0_53 = arith.constant 0 : index
    %c48 = arith.constant 48 : index
    %82 = vector.load %arg30[%c0_53, %c48] : memref<8x64xf32, #tpu.memory_space<vmem>>, vector<8x8xf32>
    %83 = arith.truncf %82 : vector<8x8xf32> to vector<8x8xbf16>
    %cst_54 = arith.constant dense<0.000000e+00> : vector<8x8xf32>
    %84 = tpu.matmul %79, %81, %cst_54 {dimension_numbers = #tpu.dot_dimension_numbers<[1], [1], [0], [0], [0, 0, 1, 0], [], []>} : vector<8x8xbf16>, vector<8x8xbf16>, vector<8x8xf32> -> vector<8x8xf32>
    %cst_55 = arith.constant 0.353553385 : f32
    %85 = vector.broadcast %cst_55 : f32 to vector<8x8xf32>
    %86 = arith.mulf %84, %85 : vector<8x8xf32>
    %cst_56 = arith.constant -1.000000e+09 : f32
    %87 = vector.broadcast %cst_56 : f32 to vector<8x8xf32>
    %88 = arith.select %29, %87, %86 : vector<8x8xi1>, vector<8x8xf32>
    %cst_57 = arith.constant dense<0xFF800000> : vector<8xf32>
    %89 = vector.multi_reduction <maximumf>, %88, %cst_57 [1] : vector<8x8xf32> to vector<8xf32>
    %90 = vector.shape_cast %89 : vector<8xf32> to vector<8x1xf32>
    %91 = vector.broadcast %90 : vector<8x1xf32> to vector<8x8xf32>
    %92 = arith.subf %88, %91 : vector<8x8xf32>
    %93 = math.exp %92 : vector<8x8xf32>
    %cst_58 = arith.constant dense<0.000000e+00> : vector<8xf32>
    %94 = vector.multi_reduction <add>, %93, %cst_58 [1] : vector<8x8xf32> to vector<8xf32>
    %95 = vector.shape_cast %94 : vector<8xf32> to vector<8x1xf32>
    %96 = tpu.reciprocal %95 {approx = true} : vector<8x1xf32> -> vector<8x1xf32>
    %97 = vector.broadcast %96 : vector<8x1xf32> to vector<8x8xf32>
    %98 = arith.mulf %93, %97 : vector<8x8xf32>
    %99 = arith.truncf %98 : vector<8x8xf32> to vector<8x8xbf16>
    %cst_59 = arith.constant dense<0.000000e+00> : vector<8x8xf32>
    %100 = tpu.matmul %99, %83, %cst_59 {dimension_numbers = #tpu.dot_dimension_numbers<[1], [0], [0], [1], [0, 0, 1, 1], [], []>} : vector<8x8xbf16>, vector<8x8xbf16>, vector<8x8xf32> -> vector<8x8xf32>
    %c0_60 = arith.constant 0 : index
    %c16_61 = arith.constant 16 : index
    %101 = vector.load %arg32[%c0_60, %c16_61] : memref<8x32xf32, #tpu.memory_space<vmem>>, vector<8x8xf32>
    tpu.vector_store %arg32[%c0_60, %c16_61], %100 {strides = array<i32>} : memref<8x32xf32, #tpu.memory_space<vmem>>, vector<8x8xf32>,
    %c0_62 = arith.constant 0 : index
    %c24 = arith.constant 24 : index
    %102 = vector.load %arg29[%c0_62, %c24] : memref<8x32xf32, #tpu.memory_space<vmem>>, vector<8x8xf32>
    %103 = arith.truncf %102 : vector<8x8xf32> to vector<8x8xbf16>
    %c0_63 = arith.constant 0 : index
    %c24_64 = arith.constant 24 : index
    %104 = vector.load %arg30[%c0_63, %c24_64] : memref<8x64xf32, #tpu.memory_space<vmem>>, vector<8x8xf32>
    %105 = arith.truncf %104 : vector<8x8xf32> to vector<8x8xbf16>
    %c0_65 = arith.constant 0 : index
    %c56 = arith.constant 56 : index
    %106 = vector.load %arg30[%c0_65, %c56] : memref<8x64xf32, #tpu.memory_space<vmem>>, vector<8x8xf32>
    %107 = arith.truncf %106 : vector<8x8xf32> to vector<8x8xbf16>
    %cst_66 = arith.constant dense<0.000000e+00> : vector<8x8xf32>
    %108 = tpu.matmul %103, %105, %cst_66 {dimension_numbers = #tpu.dot_dimension_numbers<[1], [1], [0], [0], [0, 0, 1, 0], [], []>} : vector<8x8xbf16>, vector<8x8xbf16>, vector<8x8xf32> -> vector<8x8xf32>
    %cst_67 = arith.constant 0.353553385 : f32
    %109 = vector.broadcast %cst_67 : f32 to vector<8x8xf32>
    %110 = arith.mulf %108, %109 : vector<8x8xf32>
    %cst_68 = arith.constant -1.000000e+09 : f32
    %111 = vector.broadcast %cst_68 : f32 to vector<8x8xf32>
    %112 = arith.select %29, %111, %110 : vector<8x8xi1>, vector<8x8xf32>
    %cst_69 = arith.constant dense<0xFF800000> : vector<8xf32>
    %113 = vector.multi_reduction <maximumf>, %112, %cst_69 [1] : vector<8x8xf32> to vector<8xf32>
    %114 = vector.shape_cast %113 : vector<8xf32> to vector<8x1xf32>
    %115 = vector.broadcast %114 : vector<8x1xf32> to vector<8x8xf32>
    %116 = arith.subf %112, %115 : vector<8x8xf32>
    %117 = math.exp %116 : vector<8x8xf32>
    %cst_70 = arith.constant dense<0.000000e+00> : vector<8xf32>
    %118 = vector.multi_reduction <add>, %117, %cst_70 [1] : vector<8x8xf32> to vector<8xf32>
    %119 = vector.shape_cast %118 : vector<8xf32> to vector<8x1xf32>
    %120 = tpu.reciprocal %119 {approx = true} : vector<8x1xf32> -> vector<8x1xf32>
    %121 = vector.broadcast %120 : vector<8x1xf32> to vector<8x8xf32>
    %122 = arith.mulf %117, %121 : vector<8x8xf32>
    %123 = arith.truncf %122 : vector<8x8xf32> to vector<8x8xbf16>
    %cst_71 = arith.constant dense<0.000000e+00> : vector<8x8xf32>
    %124 = tpu.matmul %123, %107, %cst_71 {dimension_numbers = #tpu.dot_dimension_numbers<[1], [0], [0], [1], [0, 0, 1, 1], [], []>} : vector<8x8xbf16>, vector<8x8xbf16>, vector<8x8xf32> -> vector<8x8xf32>
    %c0_72 = arith.constant 0 : index
    %c24_73 = arith.constant 24 : index
    %125 = vector.load %arg32[%c0_72, %c24_73] : memref<8x32xf32, #tpu.memory_space<vmem>>, vector<8x8xf32>
    tpu.vector_store %arg32[%c0_72, %c24_73], %124 {strides = array<i32>} : memref<8x32xf32, #tpu.memory_space<vmem>>, vector<8x8xf32>,
    %c0_74 = arith.constant 0 : index
    %c0_75 = arith.constant 0 : index
    %126 = vector.load %arg32[%c0_74, %c0_75] : memref<8x32xf32, #tpu.memory_space<vmem>>, vector<8x32xf32>
    %127 = arith.truncf %126 : vector<8x32xf32> to vector<8x32xbf16>
    %c0_76 = arith.constant 0 : index
    %c0_77 = arith.constant 0 : index
    %128 = vector.load %arg10[%c0_76, %c0_77] : memref<32x32xbf16, #tpu.memory_space<vmem>>, vector<32x32xbf16>
    %cst_78 = arith.constant dense<0.000000e+00> : vector<8x32xf32>
    %129 = tpu.matmul %127, %128, %cst_78 {dimension_numbers = #tpu.dot_dimension_numbers<[1], [0], [0], [1], [0, 0, 1, 1], [], []>} : vector<8x32xbf16>, vector<32x32xbf16>, vector<8x32xf32> -> vector<8x32xf32>
    %c0_79 = arith.constant 0 : index
    %c0_80 = arith.constant 0 : index
    %130 = vector.load %arg11[%c0_79, %c0_80] : memref<1x32xf32, #tpu.memory_space<vmem>>, vector<1x32xf32>
    %131 = vector.broadcast %130 : vector<1x32xf32> to vector<8x32xf32>
    %132 = arith.addf %129, %131 : vector<8x32xf32>
    %133 = arith.addf %132, %3 : vector<8x32xf32>
    %c0_81 = arith.constant 0 : index
    %c0_82 = arith.constant 0 : index
    %134 = vector.load %arg12[%c0_81, %c0_82] : memref<1x32xf32, #tpu.memory_space<vmem>>, vector<1x32xf32>
    %c0_83 = arith.constant 0 : index
    %c0_84 = arith.constant 0 : index
    %135 = vector.load %arg13[%c0_83, %c0_84] : memref<1x32xf32, #tpu.memory_space<vmem>>, vector<1x32xf32>
    %cst_85 = arith.constant dense<0.000000e+00> : vector<8xf32>
    %136 = vector.multi_reduction <add>, %133, %cst_85 [1] : vector<8x32xf32> to vector<8xf32>
    %137 = vector.shape_cast %136 : vector<8xf32> to vector<8x1xf32>
    %cst_86 = arith.constant 3.200000e+01 : f32
    %138 = vector.broadcast %cst_86 : f32 to vector<8x1xf32>
    %139 = arith.divf %137, %138 : vector<8x1xf32>
    %140 = vector.broadcast %139 : vector<8x1xf32> to vector<8x32xf32>
    %141 = arith.subf %133, %140 : vector<8x32xf32>
    %142 = arith.mulf %141, %141 : vector<8x32xf32>
    %cst_87 = arith.constant dense<0.000000e+00> : vector<8xf32>
    %143 = vector.multi_reduction <add>, %142, %cst_87 [1] : vector<8x32xf32> to vector<8xf32>
    %144 = vector.shape_cast %143 : vector<8xf32> to vector<8x1xf32>
    %cst_88 = arith.constant 3.200000e+01 : f32
    %145 = vector.broadcast %cst_88 : f32 to vector<8x1xf32>
    %146 = arith.divf %144, %145 : vector<8x1xf32>
    %147 = vector.broadcast %139 : vector<8x1xf32> to vector<8x32xf32>
    %148 = arith.subf %133, %147 : vector<8x32xf32>
    %cst_89 = arith.constant 9.99999974E-6 : f32
    %149 = vector.broadcast %cst_89 : f32 to vector<8x1xf32>
    %150 = arith.addf %146, %149 : vector<8x1xf32>
    %151 = math.rsqrt %150 : vector<8x1xf32>
    %152 = vector.broadcast %151 : vector<8x1xf32> to vector<8x32xf32>
    %153 = arith.mulf %148, %152 : vector<8x32xf32>
    %154 = vector.broadcast %134 : vector<1x32xf32> to vector<8x32xf32>
    %155 = arith.mulf %153, %154 : vector<8x32xf32>
    %156 = vector.broadcast %135 : vector<1x32xf32> to vector<8x32xf32>
    %157 = arith.addf %155, %156 : vector<8x32xf32>
    %158 = vector.broadcast %1 : vector<8x1xf32> to vector<8x32xf32>
    %159 = arith.mulf %157, %158 : vector<8x32xf32>
    %c0_90 = arith.constant 0 : index
    %c0_91 = arith.constant 0 : index
    %c0_92 = arith.constant 0 : index
    %160 = vector.load %arg4[%c0_90, %c0_91, %c0_92] : memref<1x1x8xf32, #tpu.memory_space<vmem>>, vector<1x1x8xf32>
    %161 = vector.shape_cast %160 : vector<1x1x8xf32> to vector<1x8xf32>
    %162 = arith.truncf %159 : vector<8x32xf32> to vector<8x32xbf16>
    %c0_93 = arith.constant 0 : index
    %c0_94 = arith.constant 0 : index
    %163 = vector.load %arg14[%c0_93, %c0_94] : memref<32x32xbf16, #tpu.memory_space<vmem>>, vector<32x32xbf16>
    %cst_95 = arith.constant dense<0.000000e+00> : vector<8x32xf32>
    %164 = tpu.matmul %162, %163, %cst_95 {dimension_numbers = #tpu.dot_dimension_numbers<[1], [0], [0], [1], [0, 0, 1, 1], [], []>} : vector<8x32xbf16>, vector<32x32xbf16>, vector<8x32xf32> -> vector<8x32xf32>
    %c0_96 = arith.constant 0 : index
    %c0_97 = arith.constant 0 : index
    %165 = vector.load %arg15[%c0_96, %c0_97] : memref<1x32xf32, #tpu.memory_space<vmem>>, vector<1x32xf32>
    %166 = vector.broadcast %165 : vector<1x32xf32> to vector<8x32xf32>
    %167 = arith.addf %164, %166 : vector<8x32xf32>
    %c0_98 = arith.constant 0 : index
    %c0_99 = arith.constant 0 : index
    %168 = vector.load %arg29[%c0_98, %c0_99] : memref<8x32xf32, #tpu.memory_space<vmem>>, vector<8x32xf32>
    tpu.vector_store %arg29[%c0_98, %c0_99], %167 {strides = array<i32>} : memref<8x32xf32, #tpu.memory_space<vmem>>, vector<8x32xf32>,
    %169 = arith.truncf %5 : vector<8x32xf32> to vector<8x32xbf16>
    %c0_100 = arith.constant 0 : index
    %c0_101 = arith.constant 0 : index
    %170 = vector.load %arg16[%c0_100, %c0_101] : memref<32x64xbf16, #tpu.memory_space<vmem>>, vector<32x64xbf16>
    %cst_102 = arith.constant dense<0.000000e+00> : vector<8x64xf32>
    %171 = tpu.matmul %169, %170, %cst_102 {dimension_numbers = #tpu.dot_dimension_numbers<[1], [0], [0], [1], [0, 0, 1, 1], [], []>} : vector<8x32xbf16>, vector<32x64xbf16>, vector<8x64xf32> -> vector<8x64xf32>
    %c0_103 = arith.constant 0 : index
    %c0_104 = arith.constant 0 : index
    %172 = vector.load %arg17[%c0_103, %c0_104] : memref<1x64xf32, #tpu.memory_space<vmem>>, vector<1x64xf32>
    %173 = vector.broadcast %172 : vector<1x64xf32> to vector<8x64xf32>
    %174 = arith.addf %171, %173 : vector<8x64xf32>
    %c0_105 = arith.constant 0 : index
    %c0_106 = arith.constant 0 : index
    %175 = vector.load %arg31[%c0_105, %c0_106] : memref<8x64xf32, #tpu.memory_space<vmem>>, vector<8x64xf32>
    tpu.vector_store %arg31[%c0_105, %c0_106], %174 {strides = array<i32>} : memref<8x64xf32, #tpu.memory_space<vmem>>, vector<8x64xf32>,
    %176 = vector.shape_cast %161 : vector<1x8xf32> to vector<1x8xf32>
    %177 = vector.broadcast %176 : vector<1x8xf32> to vector<8x8xf32>
    %cst_107 = arith.constant 5.000000e-01 : f32
    %178 = vector.broadcast %cst_107 : f32 to vector<8x8xf32>
    %179 = arith.cmpf ogt, %177, %178 : vector<8x8xf32>
    %c0_108 = arith.constant 0 : index
    %c0_109 = arith.constant 0 : index
    %180 = vector.load %arg29[%c0_108, %c0_109] : memref<8x32xf32, #tpu.memory_space<vmem>>, vector<8x8xf32>
    %181 = arith.truncf %180 : vector<8x8xf32> to vector<8x8xbf16>
    %c0_110 = arith.constant 0 : index
    %c0_111 = arith.constant 0 : index
    %182 = vector.load %arg31[%c0_110, %c0_111] : memref<8x64xf32, #tpu.memory_space<vmem>>, vector<8x8xf32>
    %183 = arith.truncf %182 : vector<8x8xf32> to vector<8x8xbf16>
    %c0_112 = arith.constant 0 : index
    %c32_113 = arith.constant 32 : index
    %184 = vector.load %arg31[%c0_112, %c32_113] : memref<8x64xf32, #tpu.memory_space<vmem>>, vector<8x8xf32>
    %185 = arith.truncf %184 : vector<8x8xf32> to vector<8x8xbf16>
    %cst_114 = arith.constant dense<0.000000e+00> : vector<8x8xf32>
    %186 = tpu.matmul %181, %183, %cst_114 {dimension_numbers = #tpu.dot_dimension_numbers<[1], [1], [0], [0], [0, 0, 1, 0], [], []>} : vector<8x8xbf16>, vector<8x8xbf16>, vector<8x8xf32> -> vector<8x8xf32>
    %cst_115 = arith.constant 0.353553385 : f32
    %187 = vector.broadcast %cst_115 : f32 to vector<8x8xf32>
    %188 = arith.mulf %186, %187 : vector<8x8xf32>
    %cst_116 = arith.constant -1.000000e+09 : f32
    %189 = vector.broadcast %cst_116 : f32 to vector<8x8xf32>
    %190 = arith.select %179, %189, %188 : vector<8x8xi1>, vector<8x8xf32>
    %cst_117 = arith.constant dense<0xFF800000> : vector<8xf32>
    %191 = vector.multi_reduction <maximumf>, %190, %cst_117 [1] : vector<8x8xf32> to vector<8xf32>
    %192 = vector.shape_cast %191 : vector<8xf32> to vector<8x1xf32>
    %193 = vector.broadcast %192 : vector<8x1xf32> to vector<8x8xf32>
    %194 = arith.subf %190, %193 : vector<8x8xf32>
    %195 = math.exp %194 : vector<8x8xf32>
    %cst_118 = arith.constant dense<0.000000e+00> : vector<8xf32>
    %196 = vector.multi_reduction <add>, %195, %cst_118 [1] : vector<8x8xf32> to vector<8xf32>
    %197 = vector.shape_cast %196 : vector<8xf32> to vector<8x1xf32>
    %198 = tpu.reciprocal %197 {approx = true} : vector<8x1xf32> -> vector<8x1xf32>
    %199 = vector.broadcast %198 : vector<8x1xf32> to vector<8x8xf32>
    %200 = arith.mulf %195, %199 : vector<8x8xf32>
    %201 = arith.truncf %200 : vector<8x8xf32> to vector<8x8xbf16>
    %cst_119 = arith.constant dense<0.000000e+00> : vector<8x8xf32>
    %202 = tpu.matmul %201, %185, %cst_119 {dimension_numbers = #tpu.dot_dimension_numbers<[1], [0], [0], [1], [0, 0, 1, 1], [], []>} : vector<8x8xbf16>, vector<8x8xbf16>, vector<8x8xf32> -> vector<8x8xf32>
    %c0_120 = arith.constant 0 : index
    %c0_121 = arith.constant 0 : index
    %203 = vector.load %arg32[%c0_120, %c0_121] : memref<8x32xf32, #tpu.memory_space<vmem>>, vector<8x8xf32>
    tpu.vector_store %arg32[%c0_120, %c0_121], %202 {strides = array<i32>} : memref<8x32xf32, #tpu.memory_space<vmem>>, vector<8x8xf32>,
    %c0_122 = arith.constant 0 : index
    %c8_123 = arith.constant 8 : index
    %204 = vector.load %arg29[%c0_122, %c8_123] : memref<8x32xf32, #tpu.memory_space<vmem>>, vector<8x8xf32>
    %205 = arith.truncf %204 : vector<8x8xf32> to vector<8x8xbf16>
    %c0_124 = arith.constant 0 : index
    %c8_125 = arith.constant 8 : index
    %206 = vector.load %arg31[%c0_124, %c8_125] : memref<8x64xf32, #tpu.memory_space<vmem>>, vector<8x8xf32>
    %207 = arith.truncf %206 : vector<8x8xf32> to vector<8x8xbf16>
    %c0_126 = arith.constant 0 : index
    %c40_127 = arith.constant 40 : index
    %208 = vector.load %arg31[%c0_126, %c40_127] : memref<8x64xf32, #tpu.memory_space<vmem>>, vector<8x8xf32>
    %209 = arith.truncf %208 : vector<8x8xf32> to vector<8x8xbf16>
    %cst_128 = arith.constant dense<0.000000e+00> : vector<8x8xf32>
    %210 = tpu.matmul %205, %207, %cst_128 {dimension_numbers = #tpu.dot_dimension_numbers<[1], [1], [0], [0], [0, 0, 1, 0], [], []>} : vector<8x8xbf16>, vector<8x8xbf16>, vector<8x8xf32> -> vector<8x8xf32>
    %cst_129 = arith.constant 0.353553385 : f32
    %211 = vector.broadcast %cst_129 : f32 to vector<8x8xf32>
    %212 = arith.mulf %210, %211 : vector<8x8xf32>
    %cst_130 = arith.constant -1.000000e+09 : f32
    %213 = vector.broadcast %cst_130 : f32 to vector<8x8xf32>
    %214 = arith.select %179, %213, %212 : vector<8x8xi1>, vector<8x8xf32>
    %cst_131 = arith.constant dense<0xFF800000> : vector<8xf32>
    %215 = vector.multi_reduction <maximumf>, %214, %cst_131 [1] : vector<8x8xf32> to vector<8xf32>
    %216 = vector.shape_cast %215 : vector<8xf32> to vector<8x1xf32>
    %217 = vector.broadcast %216 : vector<8x1xf32> to vector<8x8xf32>
    %218 = arith.subf %214, %217 : vector<8x8xf32>
    %219 = math.exp %218 : vector<8x8xf32>
    %cst_132 = arith.constant dense<0.000000e+00> : vector<8xf32>
    %220 = vector.multi_reduction <add>, %219, %cst_132 [1] : vector<8x8xf32> to vector<8xf32>
    %221 = vector.shape_cast %220 : vector<8xf32> to vector<8x1xf32>
    %222 = tpu.reciprocal %221 {approx = true} : vector<8x1xf32> -> vector<8x1xf32>
    %223 = vector.broadcast %222 : vector<8x1xf32> to vector<8x8xf32>
    %224 = arith.mulf %219, %223 : vector<8x8xf32>
    %225 = arith.truncf %224 : vector<8x8xf32> to vector<8x8xbf16>
    %cst_133 = arith.constant dense<0.000000e+00> : vector<8x8xf32>
    %226 = tpu.matmul %225, %209, %cst_133 {dimension_numbers = #tpu.dot_dimension_numbers<[1], [0], [0], [1], [0, 0, 1, 1], [], []>} : vector<8x8xbf16>, vector<8x8xbf16>, vector<8x8xf32> -> vector<8x8xf32>
    %c0_134 = arith.constant 0 : index
    %c8_135 = arith.constant 8 : index
    %227 = vector.load %arg32[%c0_134, %c8_135] : memref<8x32xf32, #tpu.memory_space<vmem>>, vector<8x8xf32>
    tpu.vector_store %arg32[%c0_134, %c8_135], %226 {strides = array<i32>} : memref<8x32xf32, #tpu.memory_space<vmem>>, vector<8x8xf32>,
    %c0_136 = arith.constant 0 : index
    %c16_137 = arith.constant 16 : index
    %228 = vector.load %arg29[%c0_136, %c16_137] : memref<8x32xf32, #tpu.memory_space<vmem>>, vector<8x8xf32>
    %229 = arith.truncf %228 : vector<8x8xf32> to vector<8x8xbf16>
    %c0_138 = arith.constant 0 : index
    %c16_139 = arith.constant 16 : index
    %230 = vector.load %arg31[%c0_138, %c16_139] : memref<8x64xf32, #tpu.memory_space<vmem>>, vector<8x8xf32>
    %231 = arith.truncf %230 : vector<8x8xf32> to vector<8x8xbf16>
    %c0_140 = arith.constant 0 : index
    %c48_141 = arith.constant 48 : index
    %232 = vector.load %arg31[%c0_140, %c48_141] : memref<8x64xf32, #tpu.memory_space<vmem>>, vector<8x8xf32>
    %233 = arith.truncf %232 : vector<8x8xf32> to vector<8x8xbf16>
    %cst_142 = arith.constant dense<0.000000e+00> : vector<8x8xf32>
    %234 = tpu.matmul %229, %231, %cst_142 {dimension_numbers = #tpu.dot_dimension_numbers<[1], [1], [0], [0], [0, 0, 1, 0], [], []>} : vector<8x8xbf16>, vector<8x8xbf16>, vector<8x8xf32> -> vector<8x8xf32>
    %cst_143 = arith.constant 0.353553385 : f32
    %235 = vector.broadcast %cst_143 : f32 to vector<8x8xf32>
    %236 = arith.mulf %234, %235 : vector<8x8xf32>
    %cst_144 = arith.constant -1.000000e+09 : f32
    %237 = vector.broadcast %cst_144 : f32 to vector<8x8xf32>
    %238 = arith.select %179, %237, %236 : vector<8x8xi1>, vector<8x8xf32>
    %cst_145 = arith.constant dense<0xFF800000> : vector<8xf32>
    %239 = vector.multi_reduction <maximumf>, %238, %cst_145 [1] : vector<8x8xf32> to vector<8xf32>
    %240 = vector.shape_cast %239 : vector<8xf32> to vector<8x1xf32>
    %241 = vector.broadcast %240 : vector<8x1xf32> to vector<8x8xf32>
    %242 = arith.subf %238, %241 : vector<8x8xf32>
    %243 = math.exp %242 : vector<8x8xf32>
    %cst_146 = arith.constant dense<0.000000e+00> : vector<8xf32>
    %244 = vector.multi_reduction <add>, %243, %cst_146 [1] : vector<8x8xf32> to vector<8xf32>
    %245 = vector.shape_cast %244 : vector<8xf32> to vector<8x1xf32>
    %246 = tpu.reciprocal %245 {approx = true} : vector<8x1xf32> -> vector<8x1xf32>
    %247 = vector.broadcast %246 : vector<8x1xf32> to vector<8x8xf32>
    %248 = arith.mulf %243, %247 : vector<8x8xf32>
    %249 = arith.truncf %248 : vector<8x8xf32> to vector<8x8xbf16>
    %cst_147 = arith.constant dense<0.000000e+00> : vector<8x8xf32>
    %250 = tpu.matmul %249, %233, %cst_147 {dimension_numbers = #tpu.dot_dimension_numbers<[1], [0], [0], [1], [0, 0, 1, 1], [], []>} : vector<8x8xbf16>, vector<8x8xbf16>, vector<8x8xf32> -> vector<8x8xf32>
    %c0_148 = arith.constant 0 : index
    %c16_149 = arith.constant 16 : index
    %251 = vector.load %arg32[%c0_148, %c16_149] : memref<8x32xf32, #tpu.memory_space<vmem>>, vector<8x8xf32>
    tpu.vector_store %arg32[%c0_148, %c16_149], %250 {strides = array<i32>} : memref<8x32xf32, #tpu.memory_space<vmem>>, vector<8x8xf32>,
    %c0_150 = arith.constant 0 : index
    %c24_151 = arith.constant 24 : index
    %252 = vector.load %arg29[%c0_150, %c24_151] : memref<8x32xf32, #tpu.memory_space<vmem>>, vector<8x8xf32>
    %253 = arith.truncf %252 : vector<8x8xf32> to vector<8x8xbf16>
    %c0_152 = arith.constant 0 : index
    %c24_153 = arith.constant 24 : index
    %254 = vector.load %arg31[%c0_152, %c24_153] : memref<8x64xf32, #tpu.memory_space<vmem>>, vector<8x8xf32>
    %255 = arith.truncf %254 : vector<8x8xf32> to vector<8x8xbf16>
    %c0_154 = arith.constant 0 : index
    %c56_155 = arith.constant 56 : index
    %256 = vector.load %arg31[%c0_154, %c56_155] : memref<8x64xf32, #tpu.memory_space<vmem>>, vector<8x8xf32>
    %257 = arith.truncf %256 : vector<8x8xf32> to vector<8x8xbf16>
    %cst_156 = arith.constant dense<0.000000e+00> : vector<8x8xf32>
    %258 = tpu.matmul %253, %255, %cst_156 {dimension_numbers = #tpu.dot_dimension_numbers<[1], [1], [0], [0], [0, 0, 1, 0], [], []>} : vector<8x8xbf16>, vector<8x8xbf16>, vector<8x8xf32> -> vector<8x8xf32>
    %cst_157 = arith.constant 0.353553385 : f32
    %259 = vector.broadcast %cst_157 : f32 to vector<8x8xf32>
    %260 = arith.mulf %258, %259 : vector<8x8xf32>
    %cst_158 = arith.constant -1.000000e+09 : f32
    %261 = vector.broadcast %cst_158 : f32 to vector<8x8xf32>
    %262 = arith.select %179, %261, %260 : vector<8x8xi1>, vector<8x8xf32>
    %cst_159 = arith.constant dense<0xFF800000> : vector<8xf32>
    %263 = vector.multi_reduction <maximumf>, %262, %cst_159 [1] : vector<8x8xf32> to vector<8xf32>
    %264 = vector.shape_cast %263 : vector<8xf32> to vector<8x1xf32>
    %265 = vector.broadcast %264 : vector<8x1xf32> to vector<8x8xf32>
    %266 = arith.subf %262, %265 : vector<8x8xf32>
    %267 = math.exp %266 : vector<8x8xf32>
    %cst_160 = arith.constant dense<0.000000e+00> : vector<8xf32>
    %268 = vector.multi_reduction <add>, %267, %cst_160 [1] : vector<8x8xf32> to vector<8xf32>
    %269 = vector.shape_cast %268 : vector<8xf32> to vector<8x1xf32>
    %270 = tpu.reciprocal %269 {approx = true} : vector<8x1xf32> -> vector<8x1xf32>
    %271 = vector.broadcast %270 : vector<8x1xf32> to vector<8x8xf32>
    %272 = arith.mulf %267, %271 : vector<8x8xf32>
    %273 = arith.truncf %272 : vector<8x8xf32> to vector<8x8xbf16>
    %cst_161 = arith.constant dense<0.000000e+00> : vector<8x8xf32>
    %274 = tpu.matmul %273, %257, %cst_161 {dimension_numbers = #tpu.dot_dimension_numbers<[1], [0], [0], [1], [0, 0, 1, 1], [], []>} : vector<8x8xbf16>, vector<8x8xbf16>, vector<8x8xf32> -> vector<8x8xf32>
    %c0_162 = arith.constant 0 : index
    %c24_163 = arith.constant 24 : index
    %275 = vector.load %arg32[%c0_162, %c24_163] : memref<8x32xf32, #tpu.memory_space<vmem>>, vector<8x8xf32>
    tpu.vector_store %arg32[%c0_162, %c24_163], %274 {strides = array<i32>} : memref<8x32xf32, #tpu.memory_space<vmem>>, vector<8x8xf32>,
    %c0_164 = arith.constant 0 : index
    %c0_165 = arith.constant 0 : index
    %276 = vector.load %arg32[%c0_164, %c0_165] : memref<8x32xf32, #tpu.memory_space<vmem>>, vector<8x32xf32>
    %277 = arith.truncf %276 : vector<8x32xf32> to vector<8x32xbf16>
    %c0_166 = arith.constant 0 : index
    %c0_167 = arith.constant 0 : index
    %278 = vector.load %arg18[%c0_166, %c0_167] : memref<32x32xbf16, #tpu.memory_space<vmem>>, vector<32x32xbf16>
    %cst_168 = arith.constant dense<0.000000e+00> : vector<8x32xf32>
    %279 = tpu.matmul %277, %278, %cst_168 {dimension_numbers = #tpu.dot_dimension_numbers<[1], [0], [0], [1], [0, 0, 1, 1], [], []>} : vector<8x32xbf16>, vector<32x32xbf16>, vector<8x32xf32> -> vector<8x32xf32>
    %c0_169 = arith.constant 0 : index
    %c0_170 = arith.constant 0 : index
    %280 = vector.load %arg19[%c0_169, %c0_170] : memref<1x32xf32, #tpu.memory_space<vmem>>, vector<1x32xf32>
    %281 = vector.broadcast %280 : vector<1x32xf32> to vector<8x32xf32>
    %282 = arith.addf %279, %281 : vector<8x32xf32>
    %283 = arith.addf %282, %159 : vector<8x32xf32>
    %c0_171 = arith.constant 0 : index
    %c0_172 = arith.constant 0 : index
    %284 = vector.load %arg20[%c0_171, %c0_172] : memref<1x32xf32, #tpu.memory_space<vmem>>, vector<1x32xf32>
    %c0_173 = arith.constant 0 : index
    %c0_174 = arith.constant 0 : index
    %285 = vector.load %arg21[%c0_173, %c0_174] : memref<1x32xf32, #tpu.memory_space<vmem>>, vector<1x32xf32>
    %cst_175 = arith.constant dense<0.000000e+00> : vector<8xf32>
    %286 = vector.multi_reduction <add>, %283, %cst_175 [1] : vector<8x32xf32> to vector<8xf32>
    %287 = vector.shape_cast %286 : vector<8xf32> to vector<8x1xf32>
    %cst_176 = arith.constant 3.200000e+01 : f32
    %288 = vector.broadcast %cst_176 : f32 to vector<8x1xf32>
    %289 = arith.divf %287, %288 : vector<8x1xf32>
    %290 = vector.broadcast %289 : vector<8x1xf32> to vector<8x32xf32>
    %291 = arith.subf %283, %290 : vector<8x32xf32>
    %292 = arith.mulf %291, %291 : vector<8x32xf32>
    %cst_177 = arith.constant dense<0.000000e+00> : vector<8xf32>
    %293 = vector.multi_reduction <add>, %292, %cst_177 [1] : vector<8x32xf32> to vector<8xf32>
    %294 = vector.shape_cast %293 : vector<8xf32> to vector<8x1xf32>
    %cst_178 = arith.constant 3.200000e+01 : f32
    %295 = vector.broadcast %cst_178 : f32 to vector<8x1xf32>
    %296 = arith.divf %294, %295 : vector<8x1xf32>
    %297 = vector.broadcast %289 : vector<8x1xf32> to vector<8x32xf32>
    %298 = arith.subf %283, %297 : vector<8x32xf32>
    %cst_179 = arith.constant 9.99999974E-6 : f32
    %299 = vector.broadcast %cst_179 : f32 to vector<8x1xf32>
    %300 = arith.addf %296, %299 : vector<8x1xf32>
    %301 = math.rsqrt %300 : vector<8x1xf32>
    %302 = vector.broadcast %301 : vector<8x1xf32> to vector<8x32xf32>
    %303 = arith.mulf %298, %302 : vector<8x32xf32>
    %304 = vector.broadcast %284 : vector<1x32xf32> to vector<8x32xf32>
    %305 = arith.mulf %303, %304 : vector<8x32xf32>
    %306 = vector.broadcast %285 : vector<1x32xf32> to vector<8x32xf32>
    %307 = arith.addf %305, %306 : vector<8x32xf32>
    %308 = vector.broadcast %1 : vector<8x1xf32> to vector<8x32xf32>
    %309 = arith.mulf %307, %308 : vector<8x32xf32>
    %310 = arith.truncf %309 : vector<8x32xf32> to vector<8x32xbf16>
    %c0_180 = arith.constant 0 : index
    %c0_181 = arith.constant 0 : index
    %311 = vector.load %arg22[%c0_180, %c0_181] : memref<32x64xbf16, #tpu.memory_space<vmem>>, vector<32x64xbf16>
    %cst_182 = arith.constant dense<0.000000e+00> : vector<8x64xf32>
    %312 = tpu.matmul %310, %311, %cst_182 {dimension_numbers = #tpu.dot_dimension_numbers<[1], [0], [0], [1], [0, 0, 1, 1], [], []>} : vector<8x32xbf16>, vector<32x64xbf16>, vector<8x64xf32> -> vector<8x64xf32>
    %c0_183 = arith.constant 0 : index
    %c0_184 = arith.constant 0 : index
    %313 = vector.load %arg23[%c0_183, %c0_184] : memref<1x64xf32, #tpu.memory_space<vmem>>, vector<1x64xf32>
    %314 = vector.broadcast %313 : vector<1x64xf32> to vector<8x64xf32>
    %315 = arith.addf %312, %314 : vector<8x64xf32>
    %cst_185 = arith.constant 0.000000e+00 : f32
    %316 = vector.broadcast %cst_185 : f32 to vector<8x64xf32>
    %317 = arith.maximumf %315, %316 : vector<8x64xf32>
    %318 = arith.truncf %317 : vector<8x64xf32> to vector<8x64xbf16>
    %c0_186 = arith.constant 0 : index
    %c0_187 = arith.constant 0 : index
    %319 = vector.load %arg24[%c0_186, %c0_187] : memref<64x32xbf16, #tpu.memory_space<vmem>>, vector<64x32xbf16>
    %cst_188 = arith.constant dense<0.000000e+00> : vector<8x32xf32>
    %320 = tpu.matmul %318, %319, %cst_188 {dimension_numbers = #tpu.dot_dimension_numbers<[1], [0], [0], [1], [0, 0, 1, 1], [], []>} : vector<8x64xbf16>, vector<64x32xbf16>, vector<8x32xf32> -> vector<8x32xf32>
    %c0_189 = arith.constant 0 : index
    %c0_190 = arith.constant 0 : index
    %321 = vector.load %arg25[%c0_189, %c0_190] : memref<1x32xf32, #tpu.memory_space<vmem>>, vector<1x32xf32>
    %322 = vector.broadcast %321 : vector<1x32xf32> to vector<8x32xf32>
    %323 = arith.addf %320, %322 : vector<8x32xf32>
    %324 = arith.addf %323, %309 : vector<8x32xf32>
    %c0_191 = arith.constant 0 : index
    %c0_192 = arith.constant 0 : index
    %325 = vector.load %arg26[%c0_191, %c0_192] : memref<1x32xf32, #tpu.memory_space<vmem>>, vector<1x32xf32>
    %c0_193 = arith.constant 0 : index
    %c0_194 = arith.constant 0 : index
    %326 = vector.load %arg27[%c0_193, %c0_194] : memref<1x32xf32, #tpu.memory_space<vmem>>, vector<1x32xf32>
    %cst_195 = arith.constant dense<0.000000e+00> : vector<8xf32>
    %327 = vector.multi_reduction <add>, %324, %cst_195 [1] : vector<8x32xf32> to vector<8xf32>
    %328 = vector.shape_cast %327 : vector<8xf32> to vector<8x1xf32>
    %cst_196 = arith.constant 3.200000e+01 : f32
    %329 = vector.broadcast %cst_196 : f32 to vector<8x1xf32>
    %330 = arith.divf %328, %329 : vector<8x1xf32>
    %331 = vector.broadcast %330 : vector<8x1xf32> to vector<8x32xf32>
    %332 = arith.subf %324, %331 : vector<8x32xf32>
    %333 = arith.mulf %332, %332 : vector<8x32xf32>
    %cst_197 = arith.constant dense<0.000000e+00> : vector<8xf32>
    %334 = vector.multi_reduction <add>, %333, %cst_197 [1] : vector<8x32xf32> to vector<8xf32>
    %335 = vector.shape_cast %334 : vector<8xf32> to vector<8x1xf32>
    %cst_198 = arith.constant 3.200000e+01 : f32
    %336 = vector.broadcast %cst_198 : f32 to vector<8x1xf32>
    %337 = arith.divf %335, %336 : vector<8x1xf32>
    %338 = vector.broadcast %330 : vector<8x1xf32> to vector<8x32xf32>
    %339 = arith.subf %324, %338 : vector<8x32xf32>
    %cst_199 = arith.constant 9.99999974E-6 : f32
    %340 = vector.broadcast %cst_199 : f32 to vector<8x1xf32>
    %341 = arith.addf %337, %340 : vector<8x1xf32>
    %342 = math.rsqrt %341 : vector<8x1xf32>
    %343 = vector.broadcast %342 : vector<8x1xf32> to vector<8x32xf32>
    %344 = arith.mulf %339, %343 : vector<8x32xf32>
    %345 = vector.broadcast %325 : vector<1x32xf32> to vector<8x32xf32>
    %346 = arith.mulf %344, %345 : vector<8x32xf32>
    %347 = vector.broadcast %326 : vector<1x32xf32> to vector<8x32xf32>
    %348 = arith.addf %346, %347 : vector<8x32xf32>
    %349 = vector.broadcast %1 : vector<8x1xf32> to vector<8x32xf32>
    %350 = arith.mulf %348, %349 : vector<8x32xf32>
    %c0_200 = arith.constant 0 : index
    %c0_201 = arith.constant 0 : index
    %c0_202 = arith.constant 0 : index
    %351 = vector.load %arg28[%c0_200, %c0_201, %c0_202] : memref<1x8x32xf32, #tpu.memory_space<vmem>>, vector<1x8x32xf32>
    %352 = vector.shape_cast %351 : vector<1x8x32xf32> to vector<8x32xf32>
    %353 = vector.shape_cast %350 : vector<8x32xf32> to vector<1x8x32xf32>
    tpu.vector_store %arg28[%c0_200, %c0_201, %c0_202], %353 {strides = array<i32>} : memref<1x8x32xf32, #tpu.memory_space<vmem>>, vector<1x8x32xf32>,
    return
  }
  func.func @transform_0(%arg0: i32) -> (i32, i32, i32) {
    %c0_i32 = arith.constant 0 : i32
    %c0_i32_0 = arith.constant 0 : i32
    %c0_i32_1 = arith.constant 0 : i32
    return %arg0, %c0_i32, %c0_i32_0 : i32, i32, i32
  }
  func.func @transform_1(%arg0: i32) -> (i32, i32, i32) {
    %c0_i32 = arith.constant 0 : i32
    %c0_i32_0 = arith.constant 0 : i32
    %c0_i32_1 = arith.constant 0 : i32
    return %arg0, %c0_i32, %c0_i32_0 : i32, i32, i32
  }
  func.func @transform_2(%arg0: i32) -> (i32, i32, i32) {
    %c0_i32 = arith.constant 0 : i32
    %c0_i32_0 = arith.constant 0 : i32
    %c0_i32_1 = arith.constant 0 : i32
    return %arg0, %c0_i32, %c0_i32_0 : i32, i32, i32
  }
  func.func @transform_3(%arg0: i32) -> (i32, i32, i32) {
    %c0_i32 = arith.constant 0 : i32
    %c0_i32_0 = arith.constant 0 : i32
    %c0_i32_1 = arith.constant 0 : i32
    return %arg0, %c0_i32, %c0_i32_0 : i32, i32, i32
  }
  func.func @transform_4(%arg0: i32) -> (i32, i32, i32) {
    %c0_i32 = arith.constant 0 : i32
    %c0_i32_0 = arith.constant 0 : i32
    %c0_i32_1 = arith.constant 0 : i32
    return %arg0, %c0_i32, %c0_i32_0 : i32, i32, i32
  }
  func.func @transform_5(%arg0: i32) -> (i32, i32) {
    %c0_i32 = arith.constant 0 : i32
    %c0_i32_0 = arith.constant 0 : i32
    %c0_i32_1 = arith.constant 0 : i32
    return %c0_i32, %c0_i32_0 : i32, i32
  }
  func.func @transform_6(%arg0: i32) -> (i32, i32) {
    %c0_i32 = arith.constant 0 : i32
    %c0_i32_0 = arith.constant 0 : i32
    %c0_i32_1 = arith.constant 0 : i32
    return %c0_i32, %c0_i32_0 : i32, i32
  }
  func.func @transform_7(%arg0: i32) -> (i32, i32) {
    %c0_i32 = arith.constant 0 : i32
    %c0_i32_0 = arith.constant 0 : i32
    %c0_i32_1 = arith.constant 0 : i32
    return %c0_i32, %c0_i32_0 : i32, i32
  }
  func.func @transform_8(%arg0: i32) -> (i32, i32) {
    %c0_i32 = arith.constant 0 : i32
    %c0_i32_0 = arith.constant 0 : i32
    %c0_i32_1 = arith.constant 0 : i32
    return %c0_i32, %c0_i32_0 : i32, i32
  }
  func.func @transform_9(%arg0: i32) -> (i32, i32) {
    %c0_i32 = arith.constant 0 : i32
    %c0_i32_0 = arith.constant 0 : i32
    %c0_i32_1 = arith.constant 0 : i32
    return %c0_i32, %c0_i32_0 : i32, i32
  }
  func.func @transform_10(%arg0: i32) -> (i32, i32) {
    %c0_i32 = arith.constant 0 : i32
    %c0_i32_0 = arith.constant 0 : i32
    %c0_i32_1 = arith.constant 0 : i32
    return %c0_i32, %c0_i32_0 : i32, i32
  }
  func.func @transform_11(%arg0: i32) -> (i32, i32) {
    %c0_i32 = arith.constant 0 : i32
    %c0_i32_0 = arith.constant 0 : i32
    %c0_i32_1 = arith.constant 0 : i32
    return %c0_i32, %c0_i32_0 : i32, i32
  }
  func.func @transform_12(%arg0: i32) -> (i32, i32) {
    %c0_i32 = arith.constant 0 : i32
    %c0_i32_0 = arith.constant 0 : i32
    %c0_i32_1 = arith.constant 0 : i32
    return %c0_i32, %c0_i32_0 : i32, i32
  }
  func.func @transform_13(%arg0: i32) -> (i32, i32) {
    %c0_i32 = arith.constant 0 : i32
    %c0_i32_0 = arith.constant 0 : i32
    %c0_i32_1 = arith.constant 0 : i32
    return %c0_i32, %c0_i32_0 : i32, i32
  }
  func.func @transform_14(%arg0: i32) -> (i32, i32) {
    %c0_i32 = arith.constant 0 : i32
    %c0_i32_0 = arith.constant 0 : i32
    %c0_i32_1 = arith.constant 0 : i32
    return %c0_i32, %c0_i32_0 : i32, i32
  }
  func.func @transform_15(%arg0: i32) -> (i32, i32) {
    %c0_i32 = arith.constant 0 : i32
    %c0_i32_0 = arith.constant 0 : i32
    %c0_i32_1 = arith.constant 0 : i32
    return %c0_i32, %c0_i32_0 : i32, i32
  }
  func.func @transform_16(%arg0: i32) -> (i32, i32) {
    %c0_i32 = arith.constant 0 : i32
    %c0_i32_0 = arith.constant 0 : i32
    %c0_i32_1 = arith.constant 0 : i32
    return %c0_i32, %c0_i32_0 : i32, i32
  }
  func.func @transform_17(%arg0: i32) -> (i32, i32) {
    %c0_i32 = arith.constant 0 : i32
    %c0_i32_0 = arith.constant 0 : i32
    %c0_i32_1 = arith.constant 0 : i32
    return %c0_i32, %c0_i32_0 : i32, i32
  }
  func.func @transform_18(%arg0: i32) -> (i32, i32) {
    %c0_i32 = arith.constant 0 : i32
    %c0_i32_0 = arith.constant 0 : i32
    %c0_i32_1 = arith.constant 0 : i32
    return %c0_i32, %c0_i32_0 : i32, i32
  }
  func.func @transform_19(%arg0: i32) -> (i32, i32) {
    %c0_i32 = arith.constant 0 : i32
    %c0_i32_0 = arith.constant 0 : i32
    %c0_i32_1 = arith.constant 0 : i32
    return %c0_i32, %c0_i32_0 : i32, i32
  }
  func.func @transform_20(%arg0: i32) -> (i32, i32) {
    %c0_i32 = arith.constant 0 : i32
    %c0_i32_0 = arith.constant 0 : i32
    %c0_i32_1 = arith.constant 0 : i32
    return %c0_i32, %c0_i32_0 : i32, i32
  }
  func.func @transform_21(%arg0: i32) -> (i32, i32) {
    %c0_i32 = arith.constant 0 : i32
    %c0_i32_0 = arith.constant 0 : i32
    %c0_i32_1 = arith.constant 0 : i32
    return %c0_i32, %c0_i32_0 : i32, i32
  }
  func.func @transform_22(%arg0: i32) -> (i32, i32) {
    %c0_i32 = arith.constant 0 : i32
    %c0_i32_0 = arith.constant 0 : i32
    %c0_i32_1 = arith.constant 0 : i32
    return %c0_i32, %c0_i32_0 : i32, i32
  }
  func.func @transform_23(%arg0: i32) -> (i32, i32) {
    %c0_i32 = arith.constant 0 : i32
    %c0_i32_0 = arith.constant 0 : i32
    %c0_i32_1 = arith.constant 0 : i32
    return %c0_i32, %c0_i32_0 : i32, i32
  }
  func.func @transform_24(%arg0: i32) -> (i32, i32) {
    %c0_i32 = arith.constant 0 : i32
    %c0_i32_0 = arith.constant 0 : i32
    %c0_i32_1 = arith.constant 0 : i32
    return %c0_i32, %c0_i32_0 : i32, i32
  }
  func.func @transform_25(%arg0: i32) -> (i32, i32) {
    %c0_i32 = arith.constant 0 : i32
    %c0_i32_0 = arith.constant 0 : i32
    %c0_i32_1 = arith.constant 0 : i32
    return %c0_i32, %c0_i32_0 : i32, i32
  }
  func.func @transform_26(%arg0: i32) -> (i32, i32) {
    %c0_i32 = arith.constant 0 : i32
    %c0_i32_0 = arith.constant 0 : i32
    %c0_i32_1 = arith.constant 0 : i32
    return %c0_i32, %c0_i32_0 : i32, i32
  }
  func.func @transform_27(%arg0: i32) -> (i32, i32, i32) {
    %c0_i32 = arith.constant 0 : i32
    %c0_i32_0 = arith.constant 0 : i32
    %c0_i32_1 = arith.constant 0 : i32
    return %arg0, %c0_i32, %c0_i32_0 : i32, i32, i32
  }
}

</mosaic_0001>

<bundles_post_ra>
// kernel: decoder_transformer_forward.3
= control target key start
LH: loop header
LB: loop body
LE: loop exit
PB: predicated region body
PF: predicated region fallthrough
CT: control target
= control target key end

     0   :  { %s3332_s0 = inlined_call_operand.vmem [shape: f32[2,8,32], index: 0, kind: input, shape index: {}]   ;;  %s3333_s1 = inlined_call_operand.vmem [shape: f32[2,8,32], index: 1, kind: input, shape index: {}]   ;;  %s3334_s2 = inlined_call_operand.vmem [shape: f32[2,1,8], index: 2, kind: input, shape index: {}]   ;;  %s3335_s3 = inlined_call_operand.vmem [shape: f32[2,1,8], index: 3, kind: input, shape index: {}]   ;;  %s3336_s4 = inlined_call_operand.vmem [shape: f32[2,8,1], index: 4, kind: input, shape index: {}]   ;;  %s3337_s5 = inlined_call_operand.vmem [shape: bf16[32,32], index: 5, kind: input, shape index: {}]   ;;  %s3338_s6 = inlined_call_operand.vmem [shape: f32[1,32], index: 6, kind: input, shape index: {}]   ;;  %s3339_s7 = inlined_call_operand.vmem [shape: bf16[32,64], index: 7, kind: input, shape index: {}]   ;;  %s3340_s8 = inlined_call_operand.vmem [shape: f32[1,64], index: 8, kind: input, shape index: {}]   ;;  %s3341_s9 = inlined_call_operand.vmem [shape: bf16[32,32], index: 9, kind: input, shape index: {}]   ;;  %s3342_s10 = inlined_call_operand.vmem [shape: f32[1,32], index: 10, kind: input, shape index: {}]   ;;  %s3343_s11 = inlined_call_operand.vmem [shape: f32[1,32], index: 11, kind: input, shape index: {}]   ;;  %s3344_s12 = inlined_call_operand.vmem [shape: f32[1,32], index: 12, kind: input, shape index: {}]   ;;  %s3345_s13 = inlined_call_operand.vmem [shape: bf16[32,32], index: 13, kind: input, shape index: {}]   ;;  %s3346_s14 = inlined_call_operand.vmem [shape: f32[1,32], index: 14, kind: input, shape index: {}]   ;;  %s3347_s15 = inlined_call_operand.vmem [shape: bf16[32,64], index: 15, kind: input, shape index: {}]   ;;  %s3348_s16 = inlined_call_operand.vmem [shape: f32[1,64], index: 16, kind: input, shape index: {}]   ;;  %s3349_s17 = inlined_call_operand.vmem [shape: bf16[32,32], index: 17, kind: input, shape index: {}]   ;;  %s3350_s18 = inlined_call_operand.hbm [shape: f32[1,32], index: 18, kind: input, shape index: {}]   ;;  %s3351_s19 = inlined_call_operand.hbm [shape: f32[1,32], index: 19, kind: input, shape index: {}]   ;;  %s3352_s20 = inlined_call_operand.hbm [shape: f32[1,32], index: 20, kind: input, shape index: {}]   ;;  %s3353_s21 = inlined_call_operand.vmem [shape: bf16[32,64], index: 21, kind: input, shape index: {}]   ;;  %s3354_s22 = inlined_call_operand.hbm [shape: f32[1,64], index: 22, kind: input, shape index: {}]   ;;  %s3355_s23 = inlined_call_operand.vmem [shape: bf16[64,32], index: 23, kind: input, shape index: {}]   ;;  %s3356_s24 = inlined_call_operand.hbm [shape: f32[1,32], index: 24, kind: input, shape index: {}]   ;;  %s3357_s25 = inlined_call_operand.hbm [shape: f32[1,32], index: 25, kind: input, shape index: {}]   ;;  %s3358_s26 = inlined_call_operand.hbm [shape: f32[1,32], index: 26, kind: input, shape index: {}]   ;;  %s3359_s27 = inlined_call_operand.hbm [shape: f32[2,8,32], index: 27, kind: output, shape index: {}]  }
   0x1   :  { %3383 = sst [smem:[#allocation31_spill]] %s3332_s0 }
   0x2   :  { %3384 = sst [smem:[#allocation32_spill]] %s3333_s1 }
   0x3   :  { %3385 = sst [smem:[#allocation33_spill]] %s3334_s2 }
   0x4   :  { %3386 = sst [smem:[#allocation34_spill]] %s3335_s3 }
   0x5   :  { %3387 = sst [smem:[#allocation35_spill]] %s3336_s4 }
   0x6   :  { %3388 = sst [smem:[#allocation36_spill]] %s3337_s5 }
   0x7   :  { %3389 = sst [smem:[#allocation37_spill]] %s3338_s6 }
   0x8   :  { %3390 = sst [smem:[#allocation38_spill]] %s3339_s7 }
   0x9   :  { %3391 = sst [smem:[#allocation39_spill]] %s3340_s8 }
   0xa   :  { %3392 = sst [smem:[#allocation40_spill]] %s3341_s9 }
   0xb   :  { %3393 = sst [smem:[#allocation41_spill]] %s3342_s10 }
   0xc   :  { %3394 = sst [smem:[#allocation42_spill]] %s3343_s11 }
   0xd   :  { %3395 = sst [smem:[#allocation43_spill]] %s3350_s18 }
   0xe   :  { %3396 = sst [smem:[#allocation44_spill]] %s3351_s19 }
   0xf   :  { %3397 = sst [smem:[#allocation45_spill]] %s3354_s22 }
  0x10   :  { %32 = vsyncpa [#allocation7], 0 }
  0x11   :  { %33 = vsyncpa [#allocation10], 0 }
  0x12   :  { %34 = vsyncpa [#allocation13], 0 }
  0x13   :  { %35 = vsyncpa [#allocation16], 0 }
  0x14   :  { %36 = vsyncpa [#allocation8], 0 }
  0x15   :  { %38 = vsyncpa [#allocation8 + $0x1], 0  ;;  %s2924_s7 = smov 0   ;;  %s2926_s4 = smov 0  }
  0x16   :  { %s2928_s8 = smov 0   ;;  %s2930_s30 = smov 0  }
  0x17 LB: > { %3398 = sst [smem:[#allocation24_spill]] %s2751_s7  ;;  %s2945_s9 = sadd.s32 4294967295, %s2763_s30   ;;  %s2763_s30 = sphi %s2930_s30, %s3440_s30   ;;  %s2759_s8 = sphi %s2928_s8, %s3442_s8   ;;  %s2755_s4 = sphi %s2926_s4, %s3444_s4   ;;  %s2751_s7 = sphi %s2924_s7, %s3443_s7  }
  0x18   : > { %3399 = sst [smem:[#allocation25_spill]] %s2759_s8  ;;  %s2155_s5 = sadd.s32 4294967294, %s2763_s30  }
  0x19   : > { %3400 = sst [smem:[#allocation26_spill]] %s2763_s30  ;;  %s2949_s28 = sadd.s32 1, %s2763_s30  }
  0x1a   : > { %3401 = sst [smem:[#allocation27_spill]] %s2949_s28  ;;  %s643_s0 = sadd.s32 1, %s2759_s8 }
  0x1b   : > { %s640_s10 = ssub.s32 %s2763_s30, %s2949_s28  ;;  %p653_p0 = scmp.ne.s32.totalorder %s2759_s8, %s2755_s4 }
  0x1c   : > { %p641_p1 = scmp.eq.s32.totalorder %s640_s10, 0  ;;  %p654_p2 = scmp.eq.s32.totalorder %s2945_s9, 1 }
  0x1d   : > { %p659_p3 = scmp.ne.s32.totalorder %s2755_s4, %s2751_s7  ;;  %p660_p4 = scmp.eq.s32.totalorder %s2155_s5, 1 }
  0x1e   : > { %s2960_s29 = scalar_select %p641_p1, %s2759_s8, %s643_s0  }
  0x1f   : > { %p2962_p5 = por %p654_p2, %p653_p0  ;;  %p2966_p6 = por %p660_p4, %p659_p3 }
  0x20   : > { %3402 = sst [smem:[#allocation28_spill]] %s2960_s29  ;;  %p2156_p7 = scmp.ge.s32.totalorder %s2763_s30, 1 }
  0x21   : > { %s3403_s1 = scalar_select %p2962_p5, 1, 0 }
  0x22   : > { %s3405_s6 = scalar_select %p2966_p6, 1, 0 }
  0x23   : > { %3404 = sst [smem:[#allocation29_spill]] %s3403_s1  ;;  %p667_p8 = scmp.lt.s32.totalorder %s2763_s30, 3 }
  0x24   : > { %3406 = sst [smem:[#allocation30_spill]] %s3405_s6  ;;  %p2351_p9 = scmp.eq.s32.totalorder %s2945_s9, 0 }
  0x25   : > { %p2973_p10 = pnand %p2156_p7, %p667_p8  ;;  %s3408_s19 = sld [smem:[#allocation44_spill]] }
  0x26   : > { %s2765_s0 = smov [#allocation9]   ;;  %s3409_s22 = sld [smem:[#allocation45_spill]] }
  0x27   : > { %p2325_p11 = pneg %p2973_p10  ;;  %s732_s10 = sshll.u32 %s2765_s0, 4  ;;  %s733_s10 = int_to_ptr.vmem [resolvable:$true] %s732_s10 }
  0x28   : > { %s2766_s7 = smov [#allocation12]   ;;  %s3411_s18 = sld [smem:[#allocation43_spill]] }
  0x29   : > { %p2987_p12 = pnand %p2351_p9, %p2325_p11  ;;  %s759_s0 = sshll.u32 %s2766_s7, 4  ;;  %s760_s0 = int_to_ptr.vmem [resolvable:$true] %s759_s0 }
  0x2a   : > { %s2767_s30 = smov [#allocation15]   ;;  %s2768_s2 = smov [#allocation6]  }
  0x2b   : > { %s730_s5 = sshll.u32 %s3408_s19, 4  ;;  %s784_s19 = sshll.u32 %s3357_s25, 4  ;;  %s731_s5 = int_to_ptr.hbm [resolvable:$true] %s730_s5  ;;  %s785_s19 = int_to_ptr.hbm [resolvable:$true] %s784_s19 }
  0x2c   : > { %s757_s28 = sshll.u32 %s3409_s22, 4  ;;  %s786_s1 = sshll.u32 %s2767_s30, 4  ;;  %s758_s28 = int_to_ptr.hbm [resolvable:$true] %s757_s28  ;;  %s787_s1 = int_to_ptr.vmem [resolvable:$true] %s786_s1 }
  0x2d   : > { %2331 = dma.hbm_to_vmem [thread:$0]  (!%p2987_p12), %s731_s5, 16, %s733_s10, [#allocation10]  }
  0x2e   : > { %2337 = dma.hbm_to_vmem [thread:$0]  (!%p2987_p12), %s758_s28, 16, %s760_s0, [#allocation13]  }
  0x2f   : > { %s718_s22 = sshll.u32 %s3411_s18, 4  ;;  %s720_s7 = sshll.u32 %s2768_s2, 4  ;;  %s719_s22 = int_to_ptr.hbm [resolvable:$true] %s718_s22  ;;  %s721_s7 = int_to_ptr.vmem [resolvable:$true] %s720_s7 }
  0x30   : > { %2343 = dma.hbm_to_vmem [thread:$0]  (!%p2987_p12), %s785_s19, 16, %s787_s1, [#allocation16]  }
  0x31   : > { %s742_s10 = sshll.u32 %s3352_s20, 4  ;;  %s772_s30 = sshll.u32 %s3356_s24, 4  ;;  %s743_s10 = int_to_ptr.hbm [resolvable:$true] %s742_s10  ;;  %s773_s30 = int_to_ptr.hbm [resolvable:$true] %s772_s30 }
  0x32   : > { %2328 = dma.hbm_to_vmem [thread:$0]  (!%p2987_p12), %s719_s22, 16, %s721_s7, [#allocation7]  }
  0x33   : > { %s2769_s8 = smov [#allocation11]   ;;  %s2770_s19 = smov [#allocation14]  }
  0x34   : > { %s744_s29 = sshll.u32 %s2769_s8, 4  ;;  %s774_s1 = sshll.u32 %s2770_s19, 4  ;;  %s745_s29 = int_to_ptr.vmem [resolvable:$true] %s744_s29  ;;  %s775_s1 = int_to_ptr.vmem [resolvable:$true] %s774_s1 }
  0x35   : > { %2334 = dma.hbm_to_vmem [thread:$0]  (!%p2987_p12), %s743_s10, 16, %s745_s29, [#allocation10]  }
  0x36   : > { %s796_s5 = sshll.u32 %s3358_s26, 4  ;;  %s2771_s22 = smov [#allocation17]   ;;  %s797_s5 = int_to_ptr.hbm [resolvable:$true] %s796_s5 }
  0x37   : > { %2340 = dma.hbm_to_vmem [thread:$0]  (!%p2987_p12), %s773_s30, 16, %s775_s1, [#allocation13]  }
  0x38   : > { %s798_s7 = sshll.u32 %s2771_s22, 4  ;;  %844 = sbr.rel (%p2973_p10) target bundleno = 3555 (0xde3), region = 128  ;;  %s799_s7 = int_to_ptr.vmem [resolvable:$true] %s798_s7 }
  0x39   : > { %2346 = dma.hbm_to_vmem [thread:$0]  (!%p2987_p12), %s797_s5, 16, %s799_s7, [#allocation16]  }
  0x3d   : > { %2730 = dma.done.wait (%p2351_p9), [#allocation7], 16  }
  0x3e   : > { %2732 = vsyncadd (%p2351_p9), [#allocation7], 4294967280 }
  0x3f   : > { %2734 = dma.done.wait (%p2351_p9), [#allocation10], 32  }
  0x40   : > { %2736 = vsyncadd (%p2351_p9), [#allocation10], 4294967264 }
  0x41   : > { %2738 = dma.done.wait (%p2351_p9), [#allocation13], 32  }
  0x42   : > { %2740 = vsyncadd (%p2351_p9), [#allocation13], 4294967264 }
  0x43   : > { %2742 = dma.done.wait (%p2351_p9), [#allocation16], 32  }
  0x44   : > { %2744 = vsyncadd (%p2351_p9), [#allocation16], 4294967264  ;;  %p960_p13 = scmp.lt.s32.totalorder %s2945_s9, 1  ;;  %s3412_s0 = sld [smem:[#allocation31_spill]]  ;;  %vm1004_vm0 = vcmask 261120   ;;  %vm1055_vm1 = vcmask 523264   ;;  %v1061_v26 = vlaneseq }
  0x45   : > { %s3413_s19 = sld [smem:[#allocation36_spill]]  ;;  %vm1071_vm2 = vcmask 64512   ;;  %s3374_s1 = smov 96   ;;  %vm1111_vm3 = vcmask 1043456   ;;  %vm1197_vm7 = vcmask 130112   ;;  %vm1267_vm8 = vcmask 195712  }
  0x46   : > { %s3040_s6 = scalar_select %p960_p13, %s2945_s9, 1  ;;  %v1062_v29 = vshrl.u32 %v1061_v26, 7  ;;  %v1064_v30 = vand.u32 127, %v1061_v26  ;;  %vm1337_vm9 = vcmask 261312  }
  0x47   : > { %s3414_s3 = sld [smem:[#allocation38_spill]]  ;;  %s2774_s2 = smov 112  }
  0x48   : > { %s3043_s11 = sshll.u32 %s3040_s6, 3  ;;  %s3416_s29 = sld [smem:[#allocation39_spill]]  ;;  %vm1065_vm5 = vcmp.gt.s32.totalorder %v1064_v30, %v1062_v29 }
  0x49   : > { %s3417_s7 = sld [smem:[#allocation33_spill]]  ;;  %s3378_s28 = smov 104  }
  0x4a   : > { %s963_s30 = scalar_lea.vmem %s3412_s0, %s3043_s11  ;;  %s3415_s0 = sld [smem:[#allocation37_spill]] }
  0x4b   : > { %v2278_v0 = vld [vmem:[%s3413_s19 + $0x8] sm:$0xff]  ;;  %v2277_v2 = vld [vmem:[%s3413_s19] sm:$0xff]  ;;  %s3372_s18 = smov 80   ;;  %s3371_s8 = smov 72  }
  0x4c   : > { %1014 = vmatpush.bf16.msra.mxu0 %v2278_v0  ;;  %v3061_v4 = vld [vmem:[%s963_s30] sm:$0xff]  ;;  %s3380_s30 = smov 120   ;;  %s3376_s5 = smov 16  }
  0x4d   : > { %v2280_v1 = vld [vmem:[%s3414_s3 + $0x8] sm:$0xff]  ;;  %v2279_v3 = vld [vmem:[%s3414_s3] sm:$0xff]  ;;  %v983_v5 = vpack.c.bf16 %v3061_v4, %v3061_v4  ;;  %s3375_s22 = smov 24  }
  0x4e   : > { %1048 = vmatpush.bf16.msra.mxu1 %v2280_v1  ;;  %v2420_v7 = vld [vmem:[%s3416_s29] ss:$0 sm:$0xff]  ;;  %s3377_s29 = smov 8  }
  0x4f   : > { %s970_s10 = scalar_lea.vmem %s3417_s7, %s3040_s6  ;;  %s3426_s7 = smov 120  }
  0x50   : > { %1015 = vmatpush.bf16.msra.mxu0 %v2277_v2  ;;  %v2419_v6 = vld [vmem:[%s3415_s0] ss:$0 sm:$0xff]  ;;  %s3373_s0 = smov 88  }
  0x51   : > { %v2421_v28 = vld [vmem:[%s970_s10] ss:$0 sm:$0xff]  ;;  %s3435_s10 = smov 24  }
  0x52   : > { %1049 = vmatpush.bf16.msra.mxu1 %v2279_v3  ;;  %vm1060_vm4 = vcmp.gt.f32.partialorder %v2421_v28, 0.5 }
  0x53   : > { %2185 = vmatmul.msk.bf16.vlgmr.msra.gmra.mxu0 %vm1004_vm0, %v983_v5  ;;  %vm3097_vm6 = vmor %vm1060_vm4, %vm1065_vm5 }
  0x55   : > { %2194 = vmatmul.msk.bf16.vlgmr.msra.gmra.mxu1 %vm1004_vm0, %v983_v5 }
  0xd0   : > { %v1017_v8 = vpop.f32.mrf.mxu0 }
  0xd1   : > { %v1018_v10 = vadd.f32 %v2419_v6, %v1017_v8 }
  0xd2   : > { %v1051_v9 = vpop.f32.mrf.mxu1 }
  0xd3   : > { %v1052_v11 = vadd.f32 %v2420_v7, %v1051_v9  ;;  %1021 = vst.msk [vmem:[#allocation2] sm:$0xff] %vm1004_vm0, %v1018_v10 }
  0xd5   : > { %1056 = vst.msk [vmem:[#allocation3] sm:$0xff] %vm1055_vm1, %v1052_v11 }
  0xd8   : > { %v1019_v12 = vpop.f32.mrf.mxu0 }
  0xda   : > { %v1053_v13 = vpop.f32.mrf.mxu1  ;;  %v1129_v14 = vld [vmem:[#allocation2] sm:$0xff] }
  0xdb   : > { %v1130_v16 = vpack.c.bf16 %v1129_v14, %v1129_v14 }
  0xdc   : > { %v1069_v15 = vld [vmem:[#allocation3] sm:$0xff] }
  0xdd   : > { %v3075_v17 = vpack.c.bf16 %v1069_v15, %v1069_v15  ;;  %1134 = vrot.lane.b32.xlu2 %v1130_v16, %s3380_s30 }
  0xdf   : > { %1106 = vrot.lane.b32.xlu1 %v3075_v17, %s3374_s1  ;;  %v1076_v18 = vsel %vm1071_vm2, %v3075_v17, 0  ;;  %s3424_s1 = sld [smem:[#allocation32_spill]] }
  0xe0   : > { %1085 = vmatpush.bf16.xpose.msra.mxu2 %v1076_v18 }
  0xe5   : > { %1207 = vrot.lane.b32.xlu2 %v3075_v17, %s2774_s2 }
  0xe7   : > { %1137 = vrot.lane.b32.xlu1 %v3075_v17, %s3380_s30  ;;  %2195 = vmatmul.msk.bf16.vlgmr.msra.gmra.mxu2 %vm1071_vm2, %v1130_v16 }
  0xed   : > { %1274 = vrot.lane.b32.xlu2 %v1130_v16, %s3378_s28 }
  0xef   : > { %1204 = vrot.lane.b32.xlu1 %v1130_v16, %s2774_s2 }
 0x137   : > { %v1135_v19 = vpop.permute.xlu2 %1134 }
 0x13f   : > { %v1208_v20 = vpop.permute.xlu2 %1207 }
 0x140   : > { %v1213_v21 = vsel %vm1071_vm2, %v1208_v20, 0 }
 0x141   : > { %1222 = vmatpush.bf16.xpose.msrb.mxu1 %v1213_v21 }
 0x147   : > { %v1275_v47 = vpop.permute.xlu2 %1274 }
 0x151   : > { %v1107_v22 = vpop.permute.xlu1 %1106 }
 0x152   : > { %v1113_v23 = vsel %vm1111_vm3, %v1107_v22, 0 }
 0x153   : > { %1122 = vmatpush.bf16.msra.mxu3 %v1113_v23 }
 0x159   : > { %v1138_v24 = vpop.permute.xlu1 %1137 }
 0x15a   : > { %v1143_v25 = vsel %vm1071_vm2, %v1138_v24, 0 }
 0x15b   : > { %1152 = vmatpush.bf16.xpose.msrb.mxu3 %v1143_v25 }
 0x161   : > { %v1205_v27 = vpop.permute.xlu1 %1204 }
 0x162   : > { %2199 = vmatmul.msk.bf16.vlgmr.msrb.gmra.mxu1 %vm1071_vm2, %v1205_v27 }
 0x16a   : > { %v1087_v31 = vpop.f32.mrf.mxu2 }
 0x16b   : > { %v1091_v33 = vmul.f32 0.35355338, %v1087_v31 }
 0x16d   : > { %v1092_v34 = vsel %vm3097_vm6, -1e+09, %v1091_v33 }
 0x16e   : > { %v1093_v35 = vsel %vm1071_vm2, %v1092_v34, -inf }
 0x16f   : > { %1094 = vmax.xlane.f32.xlu0 %v1093_v35 }
 0x172   : > { %v1089_v36 = vpop.f32.mrf.mxu2 }
 0x1df   : > { %v1224_v37 = vpop.f32.mrf.mxu1 }
 0x1e0   : > { %v1228_v38 = vmul.f32 0.35355338, %v1224_v37 }
 0x1e2   : > { %v1095_v39 = vpop.xlane.xlu0 %1094  ;;  %v1229_v40 = vsel %vm3097_vm6, -1e+09, %v1228_v38 }
 0x1e3   : > { %v1096_v41 = vsub.f32 %v1092_v34, %v1095_v39  ;;  %v1230_v42 = vsel %vm1071_vm2, %v1229_v40, -inf }
 0x1e4   : > { %1231 = vmax.xlane.f32.xlu2 %v1230_v42 }
 0x1e5   : > { %v1097_v43 = vmul.f32 1.442695, %v1096_v41 }
 0x1e7   : > { %2435 = vpow2.f32 %v1097_v43  ;;  %v1226_v44 = vpop.f32.mrf.mxu1 }
 0x1ed   : > { %v2436_v45 = vpop.eup %2435 }
 0x1ee   : > { %v1099_v46 = vsel %vm1071_vm2, %v2436_v45, 0.0 }
 0x1ef   : > { %1100 = vadd.xlane.f32.xlu0 %v1099_v46 }
 0x203   : > { %1277 = vrot.lane.b32.xlu0 %v3075_v17, %s3378_s28  ;;  %s3427_s28 = sld [smem:[#allocation34_spill]] }
 0x257   : > { %v1232_v48 = vpop.xlane.xlu2 %1231 }
 0x258   : > { %v1233_v49 = vsub.f32 %v1229_v40, %v1232_v48 }
 0x25a   : > { %v1234_v50 = vmul.f32 1.442695, %v1233_v49 }
 0x25c   : > { %2437 = vpow2.f32 %v1234_v50 }
 0x262   : > { %v2438_v51 = vpop.eup %2437  ;;  %v1101_v52 = vpop.xlane.xlu0 %1100 }
 0x263   : > { %2439 = vrcp.f32 %v1101_v52  ;;  %v1236_v53 = vsel %vm1071_vm2, %v2438_v51, 0.0 }
 0x264   : > { %1237 = vadd.xlane.f32.xlu2 %v1236_v53 }
 0x269   : > { %v2440_v54 = vpop.eup %2439 }
 0x26a   : > { %v1103_v55 = vmul.f32 %v2440_v54, %v2436_v45 }
 0x26c   : > { %v1104_v56 = vpack.c.bf16 %v1103_v55, %v1103_v55  ;;  %v2782_v55 = vmov 32.0  }
 0x26e   : > { %2196 = vmatmul.msk.bf16.vlgmr.msra.gmra.mxu3 %vm1071_vm2, %v1104_v56 }
 0x275   : > { %v1278_v57 = vpop.permute.xlu0 %1277 }
 0x276   : > { %v1283_v58 = vsel %vm1071_vm2, %v1278_v57, 0  ;;  %v2783_v57 = vmov 0  }
 0x277   : > { %1292 = vmatpush.bf16.xpose.msra.mxu3 %v1283_v58  ;;  %2417 = vset.pattern.permute.xlu2 %v2783_v57 }
 0x278   : > { %2418 = vset.pattern.permute.xlu0 %v2783_v57 }
 0x27e   : > { %2197 = vmatmul.msk.bf16.vlgmr.msrb.gmra.mxu3 %vm1071_vm2, %v1135_v19 }
 0x28e   : > { %2201 = vmatmul.msk.bf16.vlgmr.msra.gmra.mxu3 %vm1071_vm2, %v1275_v47 }
 0x2d7   : > { %v1238_v21 = vpop.xlane.xlu2 %1237 }
 0x2f1   : > { %v1124_v59 = vpop.f32.mrf.mxu3 }
 0x2f2   : > { %1128 = vst.msk [vmem:[#allocation5] sm:$0xff] %vm1071_vm2, %v1124_v59 }
 0x2f9   : > { %v1126_v60 = vpop.f32.mrf.mxu3 }
 0x301   : > { %v1154_v61 = vpop.f32.mrf.mxu3 }
 0x302   : > { %v1158_v62 = vmul.f32 0.35355338, %v1154_v61 }
 0x304   : > { %v1159_v63 = vsel %vm3097_vm6, -1e+09, %v1158_v62 }
 0x305   : > { %v1160_v0 = vsel %vm1071_vm2, %v1159_v63, -inf }
 0x306   : > { %1161 = vmax.xlane.f32.xlu1 %v1160_v0 }
 0x309   : > { %v1156_v1 = vpop.f32.mrf.mxu3 }
 0x311   : > { %v1294_v2 = vpop.f32.mrf.mxu3 }
 0x312   : > { %v1298_v3 = vmul.f32 0.35355338, %v1294_v2 }
 0x314   : > { %v1299_v5 = vsel %vm3097_vm6, -1e+09, %v1298_v3 }
 0x315   : > { %v1300_v6 = vsel %vm1071_vm2, %v1299_v5, -inf }
 0x316   : > { %1301 = vmax.xlane.f32.xlu0 %v1300_v6 }
 0x319   : > { %v1296_v7 = vpop.f32.mrf.mxu3 }
 0x31a   : > { %v2285_v7 = vld [vmem:[%s3347_s15] sm:$0xff] }
 0x31f   : > { %1172 = vrot.lane.b32.xlu1 %v3075_v17, %s3373_s0  ;;  %s967_s0 = scalar_lea.vmem %s3424_s1, %s3043_s11  ;;  %s3431_s1 = smov 80  }
 0x320   : > { %v981_v6 = vld [vmem:[%s967_s0] sm:$0xff]  ;;  %s3432_s0 = smov 72  }
 0x379   : > { %v1162_v8 = vpop.xlane.xlu1 %1161 }
 0x37a   : > { %v1163_v9 = vsub.f32 %v1159_v63, %v1162_v8  ;;  %v1462_v8 = vpack.c.bf16 %v981_v6, %v981_v6 }
 0x37c   : > { %v1164_v10 = vmul.f32 1.442695, %v1163_v9  ;;  %v2284_v9 = vld [vmem:[%s3345_s13 + $0x8] sm:$0xff] }
 0x37e   : > { %2441 = vpow2.f32 %v1164_v10  ;;  %v2283_v10 = vld [vmem:[%s3345_s13] sm:$0xff] }
 0x384   : > { %v2442_v11 = vpop.eup %2441 }
 0x385   : > { %v1166_v12 = vsel %vm1071_vm2, %v2442_v11, 0.0 }
 0x386   : > { %1167 = vadd.xlane.f32.xlu2 %v1166_v12 }
 0x389   : > { %v1302_v13 = vpop.xlane.xlu0 %1301 }
 0x38a   : > { %v1303_v14 = vsub.f32 %v1299_v5, %v1302_v13  ;;  %v2286_v5 = vld [vmem:[%s3347_s15 + $0x8] sm:$0xff] }
 0x38b   : > { %1492 = vmatpush.bf16.msrb.mxu3 %v2286_v5 }
 0x38c   : > { %v1304_v15 = vmul.f32 1.442695, %v1303_v14 }
 0x38e   : > { %2443 = vpow2.f32 %v1304_v15 }
 0x38f   : > { %2445 = vrcp.f32 %v1238_v21  ;;  %1493 = vmatpush.bf16.msrb.mxu3 %v2285_v7 }
 0x391   : > { %v1173_v16 = vpop.permute.xlu1 %1172 }
 0x392   : > { %v1178_v18 = vsel %vm1111_vm3, %v1173_v16, 0  ;;  %2229 = vmatmul.msk.bf16.vlgmr.msrb.gmra.mxu3 %vm1004_vm0, %v1462_v8 }
 0x393   : > { %1187 = vmatpush.bf16.msrb.mxu0 %v1178_v18 }
 0x394   : > { %v2444_v19 = vpop.eup %2443 }
 0x395   : > { %v1306_v20 = vsel %vm1071_vm2, %v2444_v19, 0.0  ;;  %v2446_v23 = vpop.eup %2445 }
 0x396   : > { %1307 = vadd.xlane.f32.xlu0 %v1306_v20  ;;  %v1240_v25 = vmul.f32 %v2446_v23, %v2438_v51 }
 0x398   : > { %v1241_v30 = vpack.c.bf16 %v1240_v25, %v1240_v25 }
 0x39e   : > { %1242 = vrot.lane.b32.xlu2 %v3075_v17, %s3372_s18 }
 0x3aa   : > { %1312 = vrot.lane.b32.xlu0 %v3075_v17, %s3371_s8  ;;  %s3420_s8 = sld [smem:[#allocation40_spill]] }
 0x3b0   : > { %s3421_s18 = smov %s3420_s8  ;;  %v2282_v42 = vld [vmem:[%s3420_s8 + $0x8] sm:$0xff]  ;;  %s3422_s8 = sld [smem:[#allocation41_spill]] }
 0x3b1   : > { %1370 = vmatpush.bf16.msra.mxu1 %v2282_v42  ;;  %v2281_v43 = vld [vmem:[%s3421_s18] sm:$0xff] }
 0x3b5   : > { %1371 = vmatpush.bf16.msra.mxu1 %v2281_v43 }
 0x3b6   : > { %v2422_v49 = vld [vmem:[%s3422_s8] ss:$0 sm:$0xff]  ;;  %s3433_s8 = smov 8  }
 0x3f9   : > { %v1168_v22 = vpop.xlane.xlu2 %1167 }
 0x3fa   : > { %2447 = vrcp.f32 %v1168_v22 }
 0x400   : > { %v2448_v24 = vpop.eup %2447 }
 0x401   : > { %v1170_v26 = vmul.f32 %v2448_v24, %v2442_v11  ;;  %v1243_v27 = vpop.permute.xlu2 %1242  ;;  %v2424_v24 = vld [vmem:[%s3344_s12] ss:$0 sm:$0xff] }
 0x402   : > { %v1248_v28 = vsel %vm1111_vm3, %v1243_v27, 0 }
 0x403   : > { %1257 = vmatpush.bf16.msrb.mxu2 %v1248_v28  ;;  %v1171_v29 = vpack.c.bf16 %v1170_v26, %v1170_v26 }
 0x405   : > { %2198 = vmatmul.msk.bf16.vlgmr.msrb.gmra.mxu0 %vm1071_vm2, %v1171_v29 }
 0x406   : > { %2200 = vmatmul.msk.bf16.vlgmr.msrb.gmra.mxu2 %vm1071_vm2, %v1241_v30  ;;  %v2425_v30 = vld [vmem:[%s3348_s16] ss:$0 sm:$0xff] }
 0x407   : > { %1454 = vmatpush.bf16.msra.mxu2 %v2284_v9 }
 0x409   : > { %v1308_v31 = vpop.xlane.xlu0 %1307 }
 0x40a   : > { %2449 = vrcp.f32 %v1308_v31 }
 0x40b   : > { %2451 = vrcp.f32 %v2782_v55  ;;  %1455 = vmatpush.bf16.msra.mxu2 %v2283_v10 }
 0x410   : > { %v2450_v17 = vpop.eup %2449 }
 0x411   : > { %v1310_v32 = vmul.f32 %v2450_v17, %v2444_v19  ;;  %v2452_v58 = vpop.eup %2451 }
 0x412   : > { %v1384_v59 = vmul.f32 32.0, %v2452_v58  ;;  %vm1388_vm10 = vweird.f32 %v2452_v58 }
 0x413   : > { %v1311_v35 = vpack.c.bf16 %v1310_v32, %v1310_v32 }
 0x414   : > { %v1385_v60 = vsub.f32 1.0, %v1384_v59 }
 0x415   : > { %v1495_v31 = vpop.f32.mrf.mxu3 }
 0x416   : > { %v1496_v17 = vadd.f32 %v2425_v30, %v1495_v31 }
 0x418   : > { %1499 = vst.msk [vmem:[#allocation4] sm:$0xff] %vm1055_vm1, %v1496_v17 }
 0x41c   : > { %v1313_v33 = vpop.permute.xlu0 %1312 }
 0x41d   : > { %v1318_v34 = vsel %vm1111_vm3, %v1313_v33, 0  ;;  %v1497_v32 = vpop.f32.mrf.mxu3 }
 0x41e   : > { %1327 = vmatpush.bf16.msra.mxu0 %v1318_v34 }
 0x41f   : > { %v1635_v33 = vld [vmem:[#allocation4] sm:$0xff] }
 0x420   : > { %v3198_v34 = vpack.c.bf16 %v1635_v33, %v1635_v33 }
 0x421   : > { %2202 = vmatmul.msk.bf16.vlgmr.msra.gmra.mxu0 %vm1071_vm2, %v1311_v35 }
 0x422   : > { %v1512_v35 = vsel %vm1071_vm2, %v3198_v34, 0 }
 0x423   : > { %1521 = vmatpush.bf16.xpose.msrb.mxu0 %v1512_v35 }
 0x482   : > { %v1189_v36 = vpop.f32.mrf.mxu0 }
 0x483   : > { %1194 = vrot.lane.b32.xlu1 %v1189_v36, %s3377_s29  ;;  %s3425_s29 = sld [smem:[#allocation42_spill]]  ;;  %v2426_v36 = vld [vmem:[%s3346_s14] ss:$0 sm:$0xff] }
 0x489   : > { %v1259_v37 = vpop.f32.mrf.mxu2  ;;  %v2423_v21 = vld [vmem:[%s3425_s29] ss:$0 sm:$0xff]  ;;  %s973_s29 = scalar_lea.vmem %s3427_s28, %s3040_s6  ;;  %s3429_s6 = smov 96  }
 0x48a   : > { %v1191_v38 = vpop.f32.mrf.mxu0  ;;  %s957_s28 = sand.u32 1, %s2755_s4  }
 0x48b   : > { %1264 = vrot.lane.b32.xlu1 %v1259_v37, %s3376_s5 }
 0x491   : > { %v1261_v39 = vpop.f32.mrf.mxu2 }
 0x49e   : > { %v1329_v40 = vpop.f32.mrf.mxu0 }
 0x49f   : > { %1334 = vrot.lane.b32.xlu2 %v1329_v40, %s3375_s22  ;;  %s3423_s22 = sld [smem:[#allocation35_spill]] }
 0x4a5   : > { %s977_s5 = scalar_lea.vmem %s3423_s22, %s3043_s11  ;;  %s3428_s22 = smov 104  }
 0x4a6   : > { %v1331_v41 = vpop.f32.mrf.mxu0  ;;  %v979_v56 = vld [vmem:[%s977_s5] sm:$0xff] }
 0x4a7   : > { %1419 = vperm.xlu2 %2417, %v979_v56  }
 0x4af   : > { %1572 = vrot.lane.b32.xlu2 %v3198_v34, %s3426_s7 }
 0x4f5   : > { %v1195_v44 = vpop.permute.xlu1 %1194 }
 0x4f6   : > { %1198 = vst.msk [vmem:[#allocation5] sm:$0xff] %vm1197_vm7, %v1195_v44 }
 0x4f9   : > { %v1335_v46 = vpop.permute.xlu2 %1334 }
 0x4fd   : > { %v1265_v45 = vpop.permute.xlu1 %1264 }
 0x4fe   : > { %1268 = vst.msk [vmem:[#allocation5] sm:$0xff] %vm1267_vm8, %v1265_v45 }
 0x4ff   : > { %1338 = vst.msk [vmem:[#allocation5] sm:$0xff] %vm1337_vm9, %v1335_v46 }
 0x501   : > { %v3186_v26 = vpop.permute.xlu2 %1419 }
 0x506   : > { %v1339_v47 = vld [vmem:[#allocation5] sm:$0xff] }
 0x507   : > { %v1340_v48 = vpack.c.bf16 %v1339_v47, %v1339_v47 }
 0x509   : > { %2211 = vmatmul.msk.bf16.vlgmr.msra.gmra.mxu1 %vm1004_vm0, %v1340_v48  ;;  %v1573_v42 = vpop.permute.xlu2 %1572 }
 0x50a   : > { %v1578_v43 = vsel %vm1071_vm2, %v1573_v42, 0 }
 0x50b   : > { %1587 = vmatpush.bf16.xpose.msrb.mxu2 %v1578_v43 }
 0x586   : > { %v1373_v50 = vpop.f32.mrf.mxu1 }
 0x587   : > { %v1374_v51 = vadd.f32 %v2422_v49, %v1373_v50 }
 0x589   : > { %v1377_v52 = vadd.f32 %v1374_v51, %v3061_v4  ;;  %v1386_v4 = vmul.f32 %v2452_v58, %v1385_v60  ;;  %v2427_v51 = vld [vmem:[%s973_s29] ss:$0 sm:$0xff]  ;;  %s2173_s29 = sshll.u32 %s957_s28, 3 }
 0x58a   : > { %vm1503_vm14 = vcmp.gt.f32.partialorder %v2427_v51, 0.5 }
 0x58b   : > { %v1380_v53 = vsel %vm1004_vm0, %v1377_v52, 0.0  ;;  %v1387_v61 = vadd.f32 %v2452_v58, %v1386_v4 }
 0x58c   : > { %1381 = vadd.xlane.f32.xlu0 %v1380_v53 }
 0x58d   : > { %v3158_v62 = vsel %vm1388_vm10, %v2452_v58, %v1387_v61 }
 0x58e   : > { %v1375_v54 = vpop.f32.mrf.mxu1 }
 0x5a0   : > { %1641 = vrot.lane.b32.xlu0 %v3198_v34, %s2774_s2 }
 0x5ff   : > { %v1382_v63 = vpop.xlane.xlu0 %1381 }
 0x600   : > { %v1390_v0 = vmul.f32 %v3158_v62, %v1382_v63 }
 0x602   : > { %v1391_v1 = vsub.f32 %v1377_v52, %v1390_v0 }
 0x604   : > { %v1392_v2 = vmul.f32 %v1391_v1, %v1391_v1 }
 0x606   : > { %v1393_v3 = vsel %vm1004_vm0, %v1392_v2, 0.0 }
 0x607   : > { %1394 = vadd.xlane.f32.xlu1 %v1393_v3 }
 0x612   : > { %v1642_v44 = vpop.permute.xlu0 %1641 }
 0x613   : > { %v1647_v45 = vsel %vm1071_vm2, %v1642_v44, 0 }
 0x614   : > { %1656 = vmatpush.bf16.xpose.msra.mxu0 %v1647_v45 }
 0x67a   : > { %v1395_v11 = vpop.xlane.xlu1 %1394 }
 0x67b   : > { %v1396_v12 = vmul.f32 %v1395_v11, %v3158_v62 }
 0x67d   : > { %v1397_v13 = vadd.f32 1e-05, %v1396_v12 }
 0x67f   : > { %2453 = vrsqrt.f32 %v1397_v13  ;;  %vm1404_vm12 = vweird.f32 %v1397_v13 }
 0x685   : > { %v2454_v14 = vpop.eup %2453 }
 0x686   : > { %v1399_v15 = vmul.f32 %v2454_v14, %v1397_v13  ;;  %vm1405_vm11 = vweird.f32 %v2454_v14 }
 0x687   : > { %vm1406_vm13 = vmor %vm1404_vm12, %vm1405_vm11 }
 0x688   : > { %v1400_v16 = vmul.f32 %v2454_v14, %v1399_v15 }
 0x68a   : > { %v1401_v18 = vmul.f32 0.5, %v1400_v16 }
 0x68c   : > { %v1402_v19 = vsub.f32 1.5, %v1401_v18 }
 0x68e   : > { %v1403_v20 = vmul.f32 %v2454_v14, %v1402_v19 }
 0x690   : > { %v1407_v22 = vsel %vm1406_vm13, %v2454_v14, %v1403_v20 }
 0x691   : > { %v1408_v23 = vmul.f32 %v1407_v22, %v1391_v1 }
 0x693   : > { %v1412_v25 = vmul.f32 %v2423_v21, %v1408_v23 }
 0x695   : > { %v1416_v27 = vadd.f32 %v2424_v24, %v1412_v25 }
 0x697   : > { %v3189_v28 = vmul.f32 %v3186_v26, %v1416_v27 }
 0x699   : > { %v1424_v29 = vpack.c.bf16 %v3189_v28, %v3189_v28 }
 0x69b   : > { %2220 = vmatmul.msk.bf16.vlgmr.msra.gmra.mxu2 %vm1004_vm0, %v1424_v29 }
 0x71e   : > { %v1457_v37 = vpop.f32.mrf.mxu2 }
 0x71f   : > { %v1458_v38 = vadd.f32 %v2426_v36, %v1457_v37 }
 0x721   : > { %1461 = vst.msk [vmem:[#allocation2] sm:$0xff] %vm1004_vm0, %v1458_v38 }
 0x726   : > { %v1459_v39 = vpop.f32.mrf.mxu2 }
 0x728   : > { %v1633_v40 = vld [vmem:[#allocation2] sm:$0xff] }
 0x729   : > { %v1634_v41 = vpack.c.bf16 %v1633_v40, %v1633_v40 }
 0x72b   : > { %1638 = vrot.lane.b32.xlu1 %v1634_v41, %s2774_s2  ;;  %1569 = vrot.lane.b32.xlu2 %v1634_v41, %s3426_s7  ;;  %s3430_s2 = smov 88   ;;  %s3434_s7 = smov 16  }
 0x72c   : > { %2230 = vmatmul.msk.bf16.vlgmr.msrb.gmra.mxu0 %vm1071_vm2, %v1634_v41 }
 0x733   : > { %1710 = vrot.lane.b32.xlu2 %v3198_v34, %s3428_s22 }
 0x73b   : > { %1707 = vrot.lane.b32.xlu2 %v1634_v41, %s3428_s22  ;;  %s2274_s22 = sshll.u32 %s2945_s9, 3  ;;  %s1970_s9 = scalar_lea.sflag [#allocation8], %s957_s28 }
 0x785   : > { %v1570_v46 = vpop.permute.xlu2 %1569 }
 0x786   : > { %2232 = vmatmul.msk.bf16.vlgmr.msrb.gmra.mxu2 %vm1071_vm2, %v1570_v46 }
 0x78d   : > { %v1711_v47 = vpop.permute.xlu2 %1710 }
 0x78e   : > { %v1716_v48 = vsel %vm1071_vm2, %v1711_v47, 0 }
 0x78f   : > { %1725 = vmatpush.bf16.xpose.msra.mxu2 %v1716_v48 }
 0x795   : > { %v1708_v49 = vpop.permute.xlu2 %1707 }
 0x796   : > { %2236 = vmatmul.msk.bf16.vlgmr.msra.gmra.mxu2 %vm1071_vm2, %v1708_v49 }
 0x79d   : > { %v1639_v50 = vpop.permute.xlu1 %1638 }
 0x79e   : > { %2234 = vmatmul.msk.bf16.vlgmr.msra.gmra.mxu0 %vm1071_vm2, %v1639_v50 }
 0x7a9   : > { %v1523_v52 = vpop.f32.mrf.mxu0 }
 0x7aa   : > { %v1527_v53 = vmul.f32 0.35355338, %v1523_v52 }
 0x7ac   : > { %v1528_v54 = vsel %vm1503_vm14, -1e+09, %v1527_v53 }
 0x7ad   : > { %v1529_v55 = vsel %vm1071_vm2, %v1528_v54, -inf }
 0x7ae   : > { %1530 = vmax.xlane.f32.xlu0 %v1529_v55 }
 0x7b1   : > { %v1525_v56 = vpop.f32.mrf.mxu0 }
 0x809   : > { %v1589_v57 = vpop.f32.mrf.mxu2 }
 0x80a   : > { %v1593_v58 = vmul.f32 0.35355338, %v1589_v57 }
 0x80c   : > { %v1594_v59 = vsel %vm1503_vm14, -1e+09, %v1593_v58 }
 0x80d   : > { %v1595_v60 = vsel %vm1071_vm2, %v1594_v59, -inf }
 0x80e   : > { %1596 = vmax.xlane.f32.xlu2 %v1595_v60 }
 0x811   : > { %v1591_v4 = vpop.f32.mrf.mxu2 }
 0x819   : > { %v1727_v61 = vpop.f32.mrf.mxu2 }
 0x81a   : > { %v1731_v63 = vmul.f32 0.35355338, %v1727_v61 }
 0x81b   : > { %v1658_v0 = vpop.f32.mrf.mxu0 }
 0x81c   : > { %v1662_v1 = vmul.f32 0.35355338, %v1658_v0  ;;  %v1732_v2 = vsel %vm1503_vm14, -1e+09, %v1731_v63 }
 0x81d   : > { %v1733_v3 = vsel %vm1071_vm2, %v1732_v2, -inf }
 0x81e   : > { %1734 = vmax.xlane.f32.xlu1 %v1733_v3  ;;  %v1663_v5 = vsel %vm1503_vm14, -1e+09, %v1662_v1  ;;  %v2288_v1 = vld [vmem:[%s3349_s17 + $0x8] sm:$0xff] }
 0x81f   : > { %v1664_v6 = vsel %vm1071_vm2, %v1663_v5, -inf  ;;  %1802 = vmatpush.bf16.msrb.mxu0 %v2288_v1 }
 0x820   : > { %1665 = vmax.xlane.f32.xlu2 %v1664_v6 }
 0x821   : > { %v1531_v7 = vpop.xlane.xlu0 %1530  ;;  %v1729_v8 = vpop.f32.mrf.mxu2 }
 0x822   : > { %v1532_v9 = vsub.f32 %v1528_v54, %v1531_v7  ;;  %v2428_v7 = vld [vmem:[#allocation6] ss:$0 sm:$0xff] }
 0x823   : > { %v1660_v10 = vpop.f32.mrf.mxu0 }
 0x824   : > { %v1533_v11 = vmul.f32 1.442695, %v1532_v9 }
 0x826   : > { %2455 = vpow2.f32 %v1533_v11 }
 0x82c   : > { %v2456_v12 = vpop.eup %2455 }
 0x82d   : > { %v1535_v13 = vsel %vm1071_vm2, %v2456_v12, 0.0 }
 0x82e   : > { %1536 = vadd.xlane.f32.xlu0 %v1535_v13 }
 0x837   : > { %1542 = vrot.lane.b32.xlu1 %v3198_v34, %s3429_s6 }
 0x838   : > { %1607 = vrot.lane.b32.xlu2 %v3198_v34, %s3430_s2 }
 0x881   : > { %v1597_v14 = vpop.xlane.xlu2 %1596 }
 0x882   : > { %v1598_v15 = vsub.f32 %v1594_v59, %v1597_v14 }
 0x884   : > { %v1599_v16 = vmul.f32 1.442695, %v1598_v15 }
 0x886   : > { %2457 = vpow2.f32 %v1599_v16 }
 0x88c   : > { %v2458_v18 = vpop.eup %2457 }
 0x88d   : > { %v1601_v19 = vsel %vm1071_vm2, %v2458_v18, 0.0 }
 0x88e   : > { %1602 = vadd.xlane.f32.xlu2 %v1601_v19  ;;  %v2290_v19 = vld [vmem:[%s3353_s21 + $0x8] sm:$0xff] }
 0x891   : > { %v1735_v20 = vpop.xlane.xlu1 %1734 }
 0x892   : > { %v1736_v23 = vsub.f32 %v1732_v2, %v1735_v20  ;;  %v2287_v2 = vld [vmem:[%s3349_s17] sm:$0xff] }
 0x893   : > { %v1666_v21 = vpop.xlane.xlu2 %1665  ;;  %1803 = vmatpush.bf16.msrb.mxu0 %v2287_v2 }
 0x894   : > { %v1667_v22 = vsub.f32 %v1663_v5, %v1666_v21  ;;  %v1737_v25 = vmul.f32 1.442695, %v1736_v23 }
 0x896   : > { %v1668_v24 = vmul.f32 1.442695, %v1667_v22  ;;  %v2294_v22 = vld [vmem:[%s3355_s23 + $0x18] sm:$0xff] }
 0x897   : > { %1925 = vmatpush.bf16.msrb.mxu2 %v2294_v22 }
 0x898   : > { %2459 = vpow2.f32 %v1668_v24  ;;  %v2293_v24 = vld [vmem:[%s3355_s23 + $0x10] sm:$0xff] }
 0x899   : > { %2461 = vpow2.f32 %v1737_v25 }
 0x89b   : > { %v1608_v27 = vpop.permute.xlu2 %1607  ;;  %1926 = vmatpush.bf16.msrb.mxu2 %v2293_v24 }
 0x89c   : > { %v1613_v29 = vsel %vm1111_vm3, %v1608_v27, 0 }
 0x89d   : > { %1622 = vmatpush.bf16.msra.mxu3 %v1613_v29 }
 0x89e   : > { %v2460_v30 = vpop.eup %2459 }
 0x89f   : > { %v1670_v31 = vsel %vm1071_vm2, %v2460_v30, 0.0  ;;  %v2462_v32 = vpop.eup %2461 }
 0x8a0   : > { %1671 = vadd.xlane.f32.xlu0 %v1670_v31  ;;  %v1739_v33 = vsel %vm1071_vm2, %v2462_v32, 0.0 }
 0x8a1   : > { %v1537_v17 = vpop.xlane.xlu0 %1536 }
 0x8a2   : > { %2463 = vrcp.f32 %v1537_v17 }
 0x8a6   : > { %1676 = vrot.lane.b32.xlu2 %v3198_v34, %s3431_s1 }
 0x8a8   : > { %v2464_v35 = vpop.eup %2463  ;;  %1740 = vadd.xlane.f32.xlu0 %v1739_v33 }
 0x8a9   : > { %v1539_v36 = vmul.f32 %v2464_v35, %v2456_v12  ;;  %v1543_v37 = vpop.permute.xlu1 %1542  ;;  %v2430_v35 = vld [vmem:[#allocation11] ss:$0 sm:$0xff] }
 0x8aa   : > { %v1548_v38 = vsel %vm1111_vm3, %v1543_v37, 0 }
 0x8ab   : > { %1557 = vmatpush.bf16.msrb.mxu1 %v1548_v38  ;;  %v1540_v39 = vpack.c.bf16 %v1539_v36, %v1539_v36 }
 0x8ae   : > { %2231 = vmatmul.msk.bf16.vlgmr.msrb.gmra.mxu1 %vm1071_vm2, %v1540_v39 }
 0x8bc   : > { %1745 = vrot.lane.b32.xlu0 %v3198_v34, %s3432_s0  ;;  %s1980_s0 = scalar_lea.hbm %s3359_s27, %s2274_s22 }
 0x901   : > { %v1603_v40 = vpop.xlane.xlu2 %1602 }
 0x902   : > { %2465 = vrcp.f32 %v1603_v40 }
 0x908   : > { %v2466_v41 = vpop.eup %2465 }
 0x909   : > { %v1605_v42 = vmul.f32 %v2466_v41, %v2458_v18  ;;  %v1677_v43 = vpop.permute.xlu2 %1676  ;;  %v2292_v41 = vld [vmem:[%s3355_s23 + $0x8] sm:$0xff] }
 0x90a   : > { %v1682_v44 = vsel %vm1111_vm3, %v1677_v43, 0  ;;  %1927 = vmatpush.bf16.msrb.mxu2 %v2292_v41  ;;  %v2431_v43 = vld [vmem:[#allocation12] ss:$0 sm:$0xff] }
 0x90b   : > { %v1606_v45 = vpack.c.bf16 %v1605_v42, %v1605_v42  ;;  %1691 = vmatpush.bf16.msra.mxu1 %v1682_v44  ;;  %v2291_v42 = vld [vmem:[%s3355_s23] sm:$0xff] }
 0x90d   : > { %2233 = vmatmul.msk.bf16.vlgmr.msra.gmra.mxu3 %vm1071_vm2, %v1606_v45 }
 0x90e   : > { %1928 = vmatpush.bf16.msrb.mxu2 %v2291_v42 }
 0x90f   : > { %1873 = vmatpush.bf16.msrb.mxu1 %v2290_v19 }
 0x913   : > { %v1672_v46 = vpop.xlane.xlu0 %1671 }
 0x914   : > { %2467 = vrcp.f32 %v1672_v46 }
 0x91a   : > { %v2468_v47 = vpop.eup %2467 }
 0x91b   : > { %v1674_v48 = vmul.f32 %v2468_v47, %v2460_v30  ;;  %v1741_v50 = vpop.xlane.xlu0 %1740 }
 0x91c   : > { %2469 = vrcp.f32 %v1741_v50 }
 0x91d   : > { %v1675_v49 = vpack.c.bf16 %v1674_v48, %v1674_v48 }
 0x91f   : > { %2235 = vmatmul.msk.bf16.vlgmr.msra.gmra.mxu1 %vm1071_vm2, %v1675_v49  ;;  %v2432_v49 = vld [vmem:[#allocation14] ss:$0 sm:$0xff] }
 0x922   : > { %v2470_v34 = vpop.eup %2469 }
 0x923   : > { %v1743_v52 = vmul.f32 %v2470_v34, %v2462_v32  ;;  %v2429_v32 = vld [vmem:[#allocation9] ss:$0 sm:$0xff] }
 0x925   : > { %v1744_v55 = vpack.c.bf16 %v1743_v52, %v1743_v52 }
 0x92b   : > { %v1559_v51 = vpop.f32.mrf.mxu1 }
 0x92c   : > { %1563 = vst.msk [vmem:[#allocation5] sm:$0xff] %vm1071_vm2, %v1559_v51 }
 0x92e   : > { %v1746_v53 = vpop.permute.xlu0 %1745 }
 0x92f   : > { %v1751_v54 = vsel %vm1111_vm3, %v1746_v53, 0 }
 0x930   : > { %1760 = vmatpush.bf16.msrb.mxu3 %v1751_v54 }
 0x933   : > { %v1561_v56 = vpop.f32.mrf.mxu1  ;;  %2237 = vmatmul.msk.bf16.vlgmr.msrb.gmra.mxu3 %vm1071_vm2, %v1744_v55 }
 0x990   : > { %v1624_v57 = vpop.f32.mrf.mxu3 }
 0x991   : > { %1629 = vrot.lane.b32.xlu1 %v1624_v57, %s3433_s8  ;;  %s959_s8 = scalar_lea.vmem [#allocation18], %s2173_s29  ;;  %s2705_s29 = scalar_lea.hbm %s3359_s27, 16 }
 0x998   : > { %v1626_v58 = vpop.f32.mrf.mxu3 }
 0x99c   : > { %v1693_v59 = vpop.f32.mrf.mxu1 }
 0x99d   : > { %1698 = vrot.lane.b32.xlu2 %v1693_v59, %s3434_s7  ;;  %s1982_s7 = sshll.u32 %s959_s8, 4  ;;  %s1983_s7 = int_to_ptr.vmem [resolvable:$true] %s1982_s7 }
 0x9a4   : > { %v1695_v60 = vpop.f32.mrf.mxu1 }
 0x9b6   : > { %v1762_v4 = vpop.f32.mrf.mxu3 }
 0x9b7   : > { %1767 = vrot.lane.b32.xlu1 %v1762_v4, %s3435_s10  ;;  %s1984_s10 = sshll.u32 %s1980_s0, 4  ;;  %s1985_s10 = int_to_ptr.hbm [resolvable:$true] %s1984_s10 }
 0x9b8   : > { %s2699_s11 = sshra.s32 %s1985_s10, 4  ;;  %s2700_s11 = int_to_ptr.hbm [resolvable:$true] %s2699_s11 }
 0x9b9   : > { %s2701_s5 = scalar_lea.hbm %s2700_s11, 8  ;;  %p2706_p3 = scmp.lt.s32.totalorder %s2700_s11, %s3359_s27 }
 0x9ba   : > { %p2702_p0 = scmp.ne.s32.totalorder %s2700_s11, %s2701_s5  ;;  %p2707_p4 = scmp.lt.s32.totalorder %s2705_s29, %s2701_s5 }
 0x9bc   : > { %p2703_p1 = pnand %p2702_p0, %p2962_p5  ;;  %p2708_p7 = por %p2707_p4, %p2706_p3 }
 0x9be   : > { %v1764_v61 = vpop.f32.mrf.mxu3  ;;  %p2704_p2 = pneg %p2703_p1 }
 0x9c0   : > { %p2709_p8 = pnand %p2708_p7, %p2704_p2 }
 0x9f7   : > { %v1699_v0 = vpop.permute.xlu2 %1698 }
 0xa03   : > { %v1630_v63 = vpop.permute.xlu1 %1629 }
 0xa04   : > { %1632 = vst.msk [vmem:[#allocation5] sm:$0xff] %vm1197_vm7, %v1630_v63 }
 0xa05   : > { %1701 = vst.msk [vmem:[#allocation5] sm:$0xff] %vm1267_vm8, %v1699_v0 }
 0xa29   : > { %v1768_v3 = vpop.permute.xlu1 %1767 }
 0xa2a   : > { %1770 = vst.msk [vmem:[#allocation5] sm:$0xff] %vm1337_vm9, %v1768_v3 }
 0xa31   : > { %v1771_v5 = vld [vmem:[#allocation5] sm:$0xff] }
 0xa32   : > { %v1772_v6 = vpack.c.bf16 %v1771_v5, %v1771_v5  ;;  %v2433_v5 = vld [vmem:[#allocation15] ss:$0 sm:$0xff] }
 0xa34   : > { %2246 = vmatmul.msk.bf16.vlgmr.msrb.gmra.mxu0 %vm1004_vm0, %v1772_v6 }
 0xab1   : > { %v1805_v8 = vpop.f32.mrf.mxu0 }
 0xab2   : > { %v1806_v9 = vadd.f32 %v2428_v7, %v1805_v8  ;;  %v2434_v7 = vld [vmem:[#allocation17] ss:$0 sm:$0xff] }
 0xab4   : > { %v1809_v10 = vadd.f32 %v1806_v9, %v3189_v28  ;;  %v2289_v28 = vld [vmem:[%s3353_s21] sm:$0xff] }
 0xab5   : > { %1874 = vmatpush.bf16.msrb.mxu1 %v2289_v28 }
 0xab6   : > { %v1812_v11 = vsel %vm1004_vm0, %v1809_v10, 0.0 }
 0xab7   : > { %1813 = vadd.xlane.f32.xlu2 %v1812_v11 }
 0xab9   : > { %v1807_v12 = vpop.f32.mrf.mxu0 }
 0xb2a   : > { %v1814_v13 = vpop.xlane.xlu2 %1813 }
 0xb2b   : > { %v1815_v14 = vmul.f32 %v1814_v13, %v3158_v62 }
 0xb2d   : > { %v1816_v15 = vsub.f32 %v1809_v10, %v1815_v14 }
 0xb2f   : > { %v1817_v16 = vmul.f32 %v1816_v15, %v1816_v15 }
 0xb31   : > { %v1818_v18 = vsel %vm1004_vm0, %v1817_v16, 0.0 }
 0xb32   : > { %1819 = vadd.xlane.f32.xlu0 %v1818_v18 }
 0xba5   : > { %v1820_v20 = vpop.xlane.xlu0 %1819 }
 0xba6   : > { %v1821_v21 = vmul.f32 %v1820_v20, %v3158_v62 }
 0xba8   : > { %v1822_v23 = vadd.f32 1e-05, %v1821_v21 }
 0xbaa   : > { %2471 = vrsqrt.f32 %v1822_v23  ;;  %vm1829_vm2 = vweird.f32 %v1822_v23 }
 0xbb0   : > { %v2472_v25 = vpop.eup %2471 }
 0xbb1   : > { %v1824_v27 = vmul.f32 %v2472_v25, %v1822_v23  ;;  %vm1830_vm15 = vweird.f32 %v2472_v25 }
 0xbb2   : > { %vm1831_vm3 = vmor %vm1829_vm2, %vm1830_vm15 }
 0xbb3   : > { %v1825_v29 = vmul.f32 %v2472_v25, %v1824_v27 }
 0xbb5   : > { %v1826_v30 = vmul.f32 0.5, %v1825_v29 }
 0xbb7   : > { %v1827_v31 = vsub.f32 1.5, %v1826_v30 }
 0xbb9   : > { %v1828_v17 = vmul.f32 %v2472_v25, %v1827_v31 }
 0xbbb   : > { %v1832_v33 = vsel %vm1831_vm3, %v2472_v25, %v1828_v17 }
 0xbbc   : > { %v1833_v36 = vmul.f32 %v1832_v33, %v1816_v15 }
 0xbbe   : > { %v1837_v37 = vmul.f32 %v2429_v32, %v1833_v36 }
 0xbc0   : > { %v1841_v38 = vadd.f32 %v2430_v35, %v1837_v37 }
 0xbc2   : > { %v1842_v39 = vmul.f32 %v1841_v38, %v3186_v26 }
 0xbc4   : > { %v1843_v40 = vpack.c.bf16 %v1842_v39, %v1842_v39 }
 0xbc6   : > { %2255 = vmatmul.msk.bf16.vlgmr.msrb.gmra.mxu1 %vm1004_vm0, %v1843_v40 }
 0xc43   : > { %v1876_v44 = vpop.f32.mrf.mxu1 }
 0xc44   : > { %v1877_v45 = vadd.f32 %v2431_v43, %v1876_v44 }
 0xc46   : > { %v1880_v46 = vmax.f32 %v1877_v45, 0.0 }
 0xc48   : > { %v1881_v47 = vpack.c.bf16 %v1880_v46, %v1880_v46 }
 0xc4a   : > { %2272 = vmatmul.msk.bf16.vlgmr.msrb.gmra.mxu2 %vm1055_vm1, %v1881_v47 }
 0xc4b   : > { %v1878_v48 = vpop.f32.mrf.mxu1 }
 0xccd   : > { %v1930_v50 = vpop.f32.mrf.mxu2 }
 0xcce   : > { %v1931_v34 = vadd.f32 %v2432_v49, %v1930_v50 }
 0xcd0   : > { %v1934_v51 = vadd.f32 %v1931_v34, %v1842_v39 }
 0xcd2   : > { %v1937_v52 = vsel %vm1004_vm0, %v1934_v51, 0.0 }
 0xcd3   : > { %1938 = vadd.xlane.f32.xlu1 %v1937_v52 }
 0xcd5   : > { %v1932_v53 = vpop.f32.mrf.mxu2 }
 0xd46   : > { %v1939_v54 = vpop.xlane.xlu1 %1938 }
 0xd47   : > { %v1940_v55 = vmul.f32 %v1939_v54, %v3158_v62 }
 0xd49   : > { %v1941_v56 = vsub.f32 %v1934_v51, %v1940_v55 }
 0xd4b   : > { %v1942_v57 = vmul.f32 %v1941_v56, %v1941_v56 }
 0xd4d   : > { %v1943_v58 = vsel %vm1004_vm0, %v1942_v57, 0.0 }
 0xd4e   : > { %1944 = vadd.xlane.f32.xlu2 %v1943_v58 }
 0xdc1   : > { %v1945_v59 = vpop.xlane.xlu2 %1944 }
 0xdc2   : > { %v1946_v60 = vmul.f32 %v1945_v59, %v3158_v62 }
 0xdc4   : > { %v1947_v4 = vadd.f32 1e-05, %v1946_v60 }
 0xdc6   : > { %2473 = vrsqrt.f32 %v1947_v4  ;;  %vm1954_vm4 = vweird.f32 %v1947_v4 }
 0xdcc   : > { %v2474_v61 = vpop.eup %2473 }
 0xdcd   : > { %v1949_v63 = vmul.f32 %v2474_v61, %v1947_v4  ;;  %vm1955_vm1 = vweird.f32 %v2474_v61 }
 0xdce   : > { %vm1956_vm5 = vmor %vm1954_vm4, %vm1955_vm1 }
 0xdcf   : > { %v1950_v0 = vmul.f32 %v2474_v61, %v1949_v63 }
 0xdd1   : > { %v1951_v1 = vmul.f32 0.5, %v1950_v0 }
 0xdd3   : > { %v1952_v2 = vsub.f32 1.5, %v1951_v1 }
 0xdd5   : > { %v1953_v3 = vmul.f32 %v2474_v61, %v1952_v2 }
 0xdd7   : > { %v1957_v6 = vsel %vm1956_vm5, %v2474_v61, %v1953_v3 }
 0xdd8   : > { %v1958_v8 = vmul.f32 %v1957_v6, %v1941_v56 }
 0xdda   : > { %v1962_v62 = vmul.f32 %v2433_v5, %v1958_v8 }
 0xddc   : > { %v1966_v9 = vadd.f32 %v2434_v7, %v1962_v62 }
 0xdde   : > { %v1967_v10 = vmul.f32 %v1966_v9, %v3186_v26 }
 0xde0   : > { %1968 = vst.msk [vmem:[%s959_s8] sm:$0xff] %vm1004_vm0, %v1967_v10 }
 0xde1   : > { %2712 = shalt.err (!%p2709_p8)
}
 0xde2   : > { %2323 = dma.vmem_to_hbm [thread:$0]  (%p2962_p5), %s1983_s7, 128, %s1985_s10, %s1970_s9  }
 0xde3 PF: > { %s3437_s28 = sld [smem:[#allocation26_spill]] }
 0xde4   : > { %s3438_s0 = sld [smem:[#allocation24_spill]] }
 0xde9   : > { %p2365_p9 = scmp.ge.s32.totalorder %s3437_s28, 2 }
 0xdea   : > { %s1996_s3 = sand.u32 1, %s3438_s0  }
 0xdeb   : > { %p2348_p10 = pnand %p2365_p9, %p2966_p6  ;;  %s1997_s30 = scalar_lea.sflag [#allocation8], %s1996_s3 }
 0xded   : > { %p2349_p11 = pneg %p2348_p10 }
 0xdef   : > { %2746 = dma.done.wait (%p2349_p11), %s1997_s30, 128  }
 0xdf0   : > { %2748 = vsyncadd (%p2349_p11), %s1997_s30, 4294967168  ;;  %s3440_s30 = sld [smem:[#allocation27_spill]]  ;;  %s3443_s7 = smov %s2755_s4 }
 0xdf1   : > { %s3441_s11 = sld [smem:[#allocation25_spill]] }
 0xdf2   : > { %s3442_s8 = sld [smem:[#allocation28_spill]] }
 0xdf6   : > { %p41_p12 = scmp.ge.s32.totalorder %s3440_s30, 4  }
 0xdf7   : > { %s3444_s4 = smov %s3441_s11 }
 0xdf8   :  { %43 = sbr.rel (!%p41_p12) target bundleno = 23 (0x17), region = 204 }
 0xdfd   :  { %2003 = vsyncpa [#allocation7], 1 }
 0xdfe   :  { %2005 = vsyncpa [#allocation7 + $0x1], 1 }
 0xdff   :  { %2006 = vsyncpa [#allocation10], 1 }
 0xe00   :  { %2007 = vsyncpa [#allocation13], 1 }
 0xe01   :  { %2008 = vsyncpa [#allocation16], 1 }
 0xe02   :  { %2009 = vsyncpa [#allocation8], 1 }
 0xe03   :  { %2011 = vsyncpa [#allocation8 + $0x1], 1 }

// kernel: decoder_transformer_forward.2
= control target key start
LH: loop header
LB: loop body
LE: loop exit
PB: predicated region body
PF: predicated region fallthrough
CT: control target
= control target key end

     0   :  { %s2621_s0 = inlined_call_operand.vmem [shape: f32[2,8,32], index: 0, kind: input, shape index: {}]   ;;  %s2622_s1 = inlined_call_operand.vmem [shape: f32[2,8,32], index: 1, kind: input, shape index: {}]   ;;  %s2623_s2 = inlined_call_operand.vmem [shape: f32[2,1,8], index: 2, kind: input, shape index: {}]   ;;  %s2624_s3 = inlined_call_operand.vmem [shape: f32[2,1,8], index: 3, kind: input, shape index: {}]   ;;  %s2625_s4 = inlined_call_operand.vmem [shape: f32[2,8,1], index: 4, kind: input, shape index: {}]   ;;  %s2626_s5 = inlined_call_operand.vmem [shape: bf16[32,32], index: 5, kind: input, shape index: {}]   ;;  %s2627_s6 = inlined_call_operand.vmem [shape: f32[1,32], index: 6, kind: input, shape index: {}]   ;;  %s2628_s7 = inlined_call_operand.vmem [shape: bf16[32,64], index: 7, kind: input, shape index: {}]   ;;  %s2629_s8 = inlined_call_operand.vmem [shape: f32[1,64], index: 8, kind: input, shape index: {}]   ;;  %s2630_s9 = inlined_call_operand.vmem [shape: bf16[32,32], index: 9, kind: input, shape index: {}]   ;;  %s2631_s10 = inlined_call_operand.vmem [shape: f32[1,32], index: 10, kind: input, shape index: {}]   ;;  %s2632_s11 = inlined_call_operand.vmem [shape: f32[1,32], index: 11, kind: input, shape index: {}]   ;;  %s2633_s12 = inlined_call_operand.vmem [shape: f32[1,32], index: 12, kind: input, shape index: {}]   ;;  %s2634_s13 = inlined_call_operand.vmem [shape: bf16[32,32], index: 13, kind: input, shape index: {}]   ;;  %s2635_s14 = inlined_call_operand.vmem [shape: f32[1,32], index: 14, kind: input, shape index: {}]   ;;  %s2636_s15 = inlined_call_operand.vmem [shape: bf16[32,64], index: 15, kind: input, shape index: {}]   ;;  %s2637_s16 = inlined_call_operand.vmem [shape: f32[1,64], index: 16, kind: input, shape index: {}]   ;;  %s2638_s17 = inlined_call_operand.vmem [shape: bf16[32,32], index: 17, kind: input, shape index: {}]   ;;  %s2639_s18 = inlined_call_operand.vmem [shape: f32[1,32], index: 18, kind: input, shape index: {}]   ;;  %s2640_s19 = inlined_call_operand.vmem [shape: f32[1,32], index: 19, kind: input, shape index: {}]   ;;  %s2641_s20 = inlined_call_operand.vmem [shape: f32[1,32], index: 20, kind: input, shape index: {}]   ;;  %s2642_s21 = inlined_call_operand.vmem [shape: bf16[32,64], index: 21, kind: input, shape index: {}]   ;;  %s2643_s22 = inlined_call_operand.vmem [shape: f32[1,64], index: 22, kind: input, shape index: {}]   ;;  %s2644_s23 = inlined_call_operand.vmem [shape: bf16[64,32], index: 23, kind: input, shape index: {}]   ;;  %s2645_s24 = inlined_call_operand.vmem [shape: f32[1,32], index: 24, kind: input, shape index: {}]   ;;  %s2646_s25 = inlined_call_operand.vmem [shape: f32[1,32], index: 25, kind: input, shape index: {}]   ;;  %s2647_s26 = inlined_call_operand.vmem [shape: f32[1,32], index: 26, kind: input, shape index: {}]   ;;  %s2648_s27 = inlined_call_operand.vmem [shape: f32[2,8,32], index: 27, kind: output, shape index: {}]  }
   0x1   :  { %2666 = sst [smem:[#allocation6_spill]] %s2621_s0 }
   0x2   :  { %2667 = sst [smem:[#allocation7_spill]] %s2622_s1 }
   0x3   :  { %2668 = sst [smem:[#allocation8_spill]] %s2623_s2 }
   0x4   :  { %2669 = sst [smem:[#allocation9_spill]] %s2624_s3 }
   0x5   :  { %2670 = sst [smem:[#allocation10_spill]] %s2625_s4 }
   0x6   :  { %2671 = sst [smem:[#allocation11_spill]] %s2626_s5 }
   0x7   :  { %2672 = sst [smem:[#allocation12_spill]] %s2627_s6 }
   0x8   :  { %2673 = sst [smem:[#allocation13_spill]] %s2628_s7  ;;  %s2325_s7 = smov 0  }
   0x9   :  { %2674 = sst [smem:[#allocation14_spill]] %s2629_s8 }
   0xa   :  { %2675 = sst [smem:[#allocation15_spill]] %s2630_s9 }
   0xb   :  { %2676 = sst [smem:[#allocation16_spill]] %s2631_s10 }
   0xc   :  { %2677 = sst [smem:[#allocation17_spill]] %s2632_s11 }
   0xd LB: > { %s1962_s4 = sadd.s32 4294967295, %s2171_s7   ;;  %p1966_p0 = scmp.ge.s32.totalorder %s2171_s7, 1  ;;  %s2171_s7 = sphi %s2325_s7, %s37_s7  }
   0xe   : > { %p770_p1 = scmp.lt.s32.totalorder %s2171_s7, 3 }
  0x10   : > { %p771_p2 = pnand %p1966_p0, %p770_p1 }
  0x11   : > { %s2678_s9 = sld [smem:[#allocation11_spill]] (!%p771_p2)  ;;  %p854_p3 = scmp.lt.s32.totalorder (!%p771_p2), %s1962_s4, 1 }
  0x12   : > { %774 = sbr.rel (%p771_p2) target bundleno = 3500 (0xdac), region = 128  ;;  %s2679_s0 = sld [smem:[#allocation13_spill]] (!%p771_p2) }
  0x13   : > { %s2680_s8 = sld [smem:[#allocation6_spill]] (!%p771_p2)  ;;  %s2663_s2 = smov (!%p771_p2), 120  }
  0x14   : > { %s2681_s10 = sld [smem:[#allocation12_spill]] (!%p771_p2)  ;;  %s2655_s3 = smov (!%p771_p2), 96  }
  0x15   : > { %s2682_s6 = sld [smem:[#allocation14_spill]] (!%p771_p2)  ;;  %s2656_s29 = smov (!%p771_p2), 104  }
  0x16   : > { %s2683_s28 = sld [smem:[#allocation8_spill]] (!%p771_p2)  ;;  %s2654_s1 = smov (!%p771_p2), 88  }
  0x17   : > { %v2070_v0 = vld [vmem:[%s2678_s9 + $0x8] sm:$0xff]  ;;  %v2069_v2 = vld [vmem:[%s2678_s9] sm:$0xff]  ;;  %s2703_s4 = smov (!%p854_p3, %s1962_s4), 1  ;;  %vm902_vm0 = vcmask 261120   ;;  %vm953_vm1 = vcmask 523264   ;;  %vm969_vm2 = vcmask 64512   ;;  %v959_v26 = vlaneseq }
  0x18   : > { %v2072_v1 = vld [vmem:[%s2679_s0 + $0x8] sm:$0xff]  ;;  %912 = vmatpush.bf16.msra.mxu0 %v2070_v0  ;;  %v2071_v3 = vld [vmem:[%s2679_s0] sm:$0xff]  ;;  %s2348_s11 = sshll.u32 %s2703_s4, 3  ;;  %vm1009_vm3 = vcmask 1043456   ;;  %s2660_s5 = smov 8   ;;  %vm1095_vm7 = vcmask 130112  }
  0x19   : > { %946 = vmatpush.bf16.msra.mxu1 %v2072_v1  ;;  %s857_s30 = scalar_lea.vmem %s2680_s8, %s2348_s11  ;;  %s2661_s8 = smov 112   ;;  %v960_v29 = vshrl.u32 %v959_v26, 7  ;;  %v962_v30 = vand.u32 127, %v959_v26  ;;  %vm1165_vm8 = vcmask 195712   ;;  %vm1235_vm9 = vcmask 261312  }
  0x1a   : > { %v2354_v4 = vld [vmem:[%s857_s30] sm:$0xff]  ;;  %s2652_s30 = smov 72   ;;  %s2700_s0 = smov 16  }
  0x1b   : > { %v881_v5 = vpack.c.bf16 %v2354_v4, %v2354_v4  ;;  %v2109_v6 = vld [vmem:[%s2681_s10] ss:$0 sm:$0xff]  ;;  %vm963_vm5 = vcmp.gt.s32.totalorder %v962_v30, %v960_v29 }
  0x1c   : > { %913 = vmatpush.bf16.msra.mxu0 %v2069_v2  ;;  %v2110_v7 = vld [vmem:[%s2682_s6] ss:$0 sm:$0xff]  ;;  %s864_s10 = scalar_lea.vmem %s2683_s28, %s2703_s4  ;;  %s2653_s6 = smov 80  }
  0x1d   : > { %947 = vmatpush.bf16.msra.mxu1 %v2071_v3  ;;  %v2111_v28 = vld [vmem:[%s864_s10] ss:$0 sm:$0xff]  ;;  %s2659_s28 = smov 16   ;;  %s2658_s10 = smov 24  }
  0x1e   : > { %vm958_vm4 = vcmp.gt.f32.partialorder %v2111_v28, 0.5 }
  0x1f   : > { %1979 = vmatmul.msk.bf16.vlgmr.msra.gmra.mxu0 %vm902_vm0, %v881_v5  ;;  %vm2390_vm6 = vmor %vm958_vm4, %vm963_vm5 }
  0x20   : > { %1988 = vmatmul.msk.bf16.vlgmr.msra.gmra.mxu1 %vm902_vm0, %v881_v5 }
  0x9c   : > { %v915_v8 = vpop.f32.mrf.mxu0 }
  0x9d   : > { %v949_v9 = vpop.f32.mrf.mxu1  ;;  %v916_v10 = vadd.f32 %v2109_v6, %v915_v8 }
  0x9e   : > { %v950_v11 = vadd.f32 %v2110_v7, %v949_v9 }
  0x9f   : > { %919 = vst.msk [vmem:[#allocation2] sm:$0xff] %vm902_vm0, %v916_v10 }
  0xa0   : > { %954 = vst.msk [vmem:[#allocation3] sm:$0xff] %vm953_vm1, %v950_v11 }
  0xa4   : > { %v917_v12 = vpop.f32.mrf.mxu0 }
  0xa5   : > { %v951_v13 = vpop.f32.mrf.mxu1 }
  0xa6   : > { %v1027_v14 = vld [vmem:[#allocation2] sm:$0xff] }
  0xa7   : > { %v967_v15 = vld [vmem:[#allocation3] sm:$0xff]  ;;  %v1028_v16 = vpack.c.bf16 %v1027_v14, %v1027_v14 }
  0xa8   : > { %v2368_v17 = vpack.c.bf16 %v967_v15, %v967_v15 }
  0xa9   : > { %1032 = vrot.lane.b32.xlu2 %v1028_v16, %s2663_s2 }
  0xaa   : > { %1004 = vrot.lane.b32.xlu1 %v2368_v17, %s2655_s3  ;;  %v974_v18 = vsel %vm969_vm2, %v2368_v17, 0 }
  0xab   : > { %983 = vmatpush.bf16.xpose.msra.mxu2 %v974_v18 }
  0xb1   : > { %1105 = vrot.lane.b32.xlu2 %v2368_v17, %s2661_s8 }
  0xb2   : > { %1035 = vrot.lane.b32.xlu1 %v2368_v17, %s2663_s2  ;;  %1989 = vmatmul.msk.bf16.vlgmr.msra.gmra.mxu2 %vm969_vm2, %v1028_v16  ;;  %s2701_s2 = smov 24  }
  0xb9   : > { %1172 = vrot.lane.b32.xlu2 %v1028_v16, %s2656_s29 }
  0xba   : > { %1102 = vrot.lane.b32.xlu1 %v1028_v16, %s2661_s8  ;;  %s2690_s8 = sld [smem:[#allocation17_spill]] }
 0x103   : > { %v1033_v19 = vpop.permute.xlu2 %1032 }
 0x10b   : > { %v1106_v20 = vpop.permute.xlu2 %1105 }
 0x10c   : > { %v1111_v21 = vsel %vm969_vm2, %v1106_v20, 0 }
 0x10d   : > { %1120 = vmatpush.bf16.xpose.msrb.mxu1 %v1111_v21 }
 0x113   : > { %v1173_v47 = vpop.permute.xlu2 %1172 }
 0x11c   : > { %v1005_v22 = vpop.permute.xlu1 %1004 }
 0x11d   : > { %v1011_v23 = vsel %vm1009_vm3, %v1005_v22, 0 }
 0x11e   : > { %1020 = vmatpush.bf16.msra.mxu3 %v1011_v23 }
 0x124   : > { %v1036_v24 = vpop.permute.xlu1 %1035 }
 0x125   : > { %v1041_v25 = vsel %vm969_vm2, %v1036_v24, 0 }
 0x126   : > { %1050 = vmatpush.bf16.xpose.msrb.mxu3 %v1041_v25 }
 0x12c   : > { %v1103_v27 = vpop.permute.xlu1 %1102 }
 0x12d   : > { %1993 = vmatmul.msk.bf16.vlgmr.msrb.gmra.mxu1 %vm969_vm2, %v1103_v27 }
 0x135   : > { %v985_v31 = vpop.f32.mrf.mxu2 }
 0x136   : > { %v989_v33 = vmul.f32 0.35355338, %v985_v31 }
 0x138   : > { %v990_v34 = vsel %vm2390_vm6, -1e+09, %v989_v33 }
 0x139   : > { %v991_v35 = vsel %vm969_vm2, %v990_v34, -inf }
 0x13a   : > { %992 = vmax.xlane.f32.xlu0 %v991_v35 }
 0x13d   : > { %v987_v36 = vpop.f32.mrf.mxu2 }
 0x1aa   : > { %v1122_v37 = vpop.f32.mrf.mxu1 }
 0x1ab   : > { %v1126_v38 = vmul.f32 0.35355338, %v1122_v37 }
 0x1ad   : > { %v993_v39 = vpop.xlane.xlu0 %992  ;;  %v1127_v40 = vsel %vm2390_vm6, -1e+09, %v1126_v38 }
 0x1ae   : > { %v994_v41 = vsub.f32 %v990_v34, %v993_v39  ;;  %v1128_v42 = vsel %vm969_vm2, %v1127_v40, -inf }
 0x1af   : > { %1129 = vmax.xlane.f32.xlu2 %v1128_v42 }
 0x1b0   : > { %v995_v43 = vmul.f32 1.442695, %v994_v41 }
 0x1b2   : > { %2125 = vpow2.f32 %v995_v43  ;;  %v1124_v44 = vpop.f32.mrf.mxu1 }
 0x1b8   : > { %v2126_v45 = vpop.eup %2125 }
 0x1b9   : > { %v997_v46 = vsel %vm969_vm2, %v2126_v45, 0.0 }
 0x1ba   : > { %998 = vadd.xlane.f32.xlu0 %v997_v46 }
 0x1ce   : > { %1175 = vrot.lane.b32.xlu0 %v2368_v17, %s2656_s29  ;;  %s2689_s29 = sld [smem:[#allocation7_spill]] }
 0x222   : > { %v1130_v48 = vpop.xlane.xlu2 %1129 }
 0x223   : > { %v1131_v49 = vsub.f32 %v1127_v40, %v1130_v48 }
 0x225   : > { %v1132_v50 = vmul.f32 1.442695, %v1131_v49 }
 0x227   : > { %2127 = vpow2.f32 %v1132_v50 }
 0x22d   : > { %v2128_v51 = vpop.eup %2127  ;;  %v999_v52 = vpop.xlane.xlu0 %998 }
 0x22e   : > { %2129 = vrcp.f32 %v999_v52  ;;  %v1134_v53 = vsel %vm969_vm2, %v2128_v51, 0.0 }
 0x22f   : > { %1135 = vadd.xlane.f32.xlu2 %v1134_v53 }
 0x234   : > { %v2130_v54 = vpop.eup %2129 }
 0x235   : > { %v1001_v55 = vmul.f32 %v2130_v54, %v2126_v45 }
 0x237   : > { %v1002_v56 = vpack.c.bf16 %v1001_v55, %v1001_v55  ;;  %v2183_v55 = vmov 32.0  }
 0x239   : > { %1990 = vmatmul.msk.bf16.vlgmr.msra.gmra.mxu3 %vm969_vm2, %v1002_v56 }
 0x240   : > { %v1176_v57 = vpop.permute.xlu0 %1175 }
 0x241   : > { %v1181_v58 = vsel %vm969_vm2, %v1176_v57, 0  ;;  %v2184_v57 = vmov 0  }
 0x242   : > { %1190 = vmatpush.bf16.xpose.msra.mxu3 %v1181_v58  ;;  %2107 = vset.pattern.permute.xlu2 %v2184_v57 }
 0x243   : > { %2108 = vset.pattern.permute.xlu0 %v2184_v57 }
 0x249   : > { %1991 = vmatmul.msk.bf16.vlgmr.msrb.gmra.mxu3 %vm969_vm2, %v1033_v19 }
 0x259   : > { %1995 = vmatmul.msk.bf16.vlgmr.msra.gmra.mxu3 %vm969_vm2, %v1173_v47 }
 0x2a2   : > { %v1136_v21 = vpop.xlane.xlu2 %1135 }
 0x2bc   : > { %v1022_v59 = vpop.f32.mrf.mxu3 }
 0x2bd   : > { %1026 = vst.msk [vmem:[#allocation5] sm:$0xff] %vm969_vm2, %v1022_v59 }
 0x2c4   : > { %v1024_v60 = vpop.f32.mrf.mxu3 }
 0x2cc   : > { %v1052_v61 = vpop.f32.mrf.mxu3 }
 0x2cd   : > { %v1056_v62 = vmul.f32 0.35355338, %v1052_v61 }
 0x2cf   : > { %v1057_v63 = vsel %vm2390_vm6, -1e+09, %v1056_v62 }
 0x2d0   : > { %v1058_v0 = vsel %vm969_vm2, %v1057_v63, -inf }
 0x2d1   : > { %1059 = vmax.xlane.f32.xlu1 %v1058_v0 }
 0x2d4   : > { %v1054_v1 = vpop.f32.mrf.mxu3 }
 0x2dc   : > { %v1192_v2 = vpop.f32.mrf.mxu3 }
 0x2dd   : > { %v1196_v3 = vmul.f32 0.35355338, %v1192_v2 }
 0x2df   : > { %v1197_v5 = vsel %vm2390_vm6, -1e+09, %v1196_v3 }
 0x2e0   : > { %v1198_v6 = vsel %vm969_vm2, %v1197_v5, -inf }
 0x2e1   : > { %1199 = vmax.xlane.f32.xlu0 %v1198_v6  ;;  %v2077_v6 = vld [vmem:[%s2636_s15] sm:$0xff] }
 0x2e4   : > { %v1194_v7 = vpop.f32.mrf.mxu3 }
 0x2ea   : > { %1070 = vrot.lane.b32.xlu1 %v2368_v17, %s2654_s1  ;;  %s2686_s1 = sld [smem:[#allocation15_spill]] }
 0x2f0   : > { %v2074_v42 = vld [vmem:[%s2686_s1 + $0x8] sm:$0xff]  ;;  %v2073_v43 = vld [vmem:[%s2686_s1] sm:$0xff] }
 0x2f1   : > { %1268 = vmatpush.bf16.msra.mxu1 %v2074_v42 }
 0x2f5   : > { %1269 = vmatpush.bf16.msra.mxu1 %v2073_v43 }
 0x344   : > { %v1060_v8 = vpop.xlane.xlu1 %1059 }
 0x345   : > { %v1061_v9 = vsub.f32 %v1057_v63, %v1060_v8 }
 0x347   : > { %v1062_v10 = vmul.f32 1.442695, %v1061_v9  ;;  %v2076_v9 = vld [vmem:[%s2634_s13 + $0x8] sm:$0xff] }
 0x349   : > { %2131 = vpow2.f32 %v1062_v10  ;;  %v2075_v10 = vld [vmem:[%s2634_s13] sm:$0xff] }
 0x34f   : > { %v2132_v11 = vpop.eup %2131 }
 0x350   : > { %v1064_v12 = vsel %vm969_vm2, %v2132_v11, 0.0 }
 0x351   : > { %1065 = vadd.xlane.f32.xlu2 %v1064_v12 }
 0x354   : > { %v1200_v13 = vpop.xlane.xlu0 %1199 }
 0x355   : > { %v1201_v14 = vsub.f32 %v1197_v5, %v1200_v13  ;;  %v2078_v5 = vld [vmem:[%s2636_s15 + $0x8] sm:$0xff] }
 0x356   : > { %1390 = vmatpush.bf16.msrb.mxu3 %v2078_v5 }
 0x357   : > { %v1202_v15 = vmul.f32 1.442695, %v1201_v14 }
 0x359   : > { %2133 = vpow2.f32 %v1202_v15 }
 0x35a   : > { %2135 = vrcp.f32 %v1136_v21  ;;  %1391 = vmatpush.bf16.msrb.mxu3 %v2077_v6  ;;  %v2113_v21 = vld [vmem:[%s2690_s8] ss:$0 sm:$0xff] }
 0x35c   : > { %v1071_v16 = vpop.permute.xlu1 %1070 }
 0x35d   : > { %v1076_v18 = vsel %vm1009_vm3, %v1071_v16, 0 }
 0x35e   : > { %1085 = vmatpush.bf16.msrb.mxu0 %v1076_v18 }
 0x35f   : > { %v2134_v19 = vpop.eup %2133 }
 0x360   : > { %v1204_v20 = vsel %vm969_vm2, %v2134_v19, 0.0  ;;  %v2136_v23 = vpop.eup %2135 }
 0x361   : > { %1205 = vadd.xlane.f32.xlu0 %v1204_v20  ;;  %v1138_v25 = vmul.f32 %v2136_v23, %v2128_v51  ;;  %v2114_v23 = vld [vmem:[%s2633_s12] ss:$0 sm:$0xff] }
 0x363   : > { %v1139_v30 = vpack.c.bf16 %v1138_v25, %v1138_v25 }
 0x369   : > { %1140 = vrot.lane.b32.xlu2 %v2368_v17, %s2653_s6  ;;  %s2687_s6 = sld [smem:[#allocation16_spill]] }
 0x36f   : > { %v2112_v49 = vld [vmem:[%s2687_s6] ss:$0 sm:$0xff]  ;;  %s861_s6 = scalar_lea.vmem %s2689_s29, %s2348_s11  ;;  %s2694_s29 = smov 104  }
 0x370   : > { %v879_v7 = vld [vmem:[%s861_s6] sm:$0xff]  ;;  %s2696_s6 = smov 88  }
 0x371   : > { %v1360_v8 = vpack.c.bf16 %v879_v7, %v879_v7 }
 0x373   : > { %2023 = vmatmul.msk.bf16.vlgmr.msrb.gmra.mxu3 %vm902_vm0, %v1360_v8 }
 0x375   : > { %1210 = vrot.lane.b32.xlu0 %v2368_v17, %s2652_s30  ;;  %s2691_s30 = smov 120  }
 0x3c4   : > { %v1066_v22 = vpop.xlane.xlu2 %1065 }
 0x3c5   : > { %2137 = vrcp.f32 %v1066_v22 }
 0x3cb   : > { %v2138_v24 = vpop.eup %2137 }
 0x3cc   : > { %v1068_v26 = vmul.f32 %v2138_v24, %v2132_v11  ;;  %v1141_v27 = vpop.permute.xlu2 %1140 }
 0x3cd   : > { %v1146_v28 = vsel %vm1009_vm3, %v1141_v27, 0 }
 0x3ce   : > { %1155 = vmatpush.bf16.msrb.mxu2 %v1146_v28  ;;  %v1069_v29 = vpack.c.bf16 %v1068_v26, %v1068_v26 }
 0x3d0   : > { %1992 = vmatmul.msk.bf16.vlgmr.msrb.gmra.mxu0 %vm969_vm2, %v1069_v29 }
 0x3d1   : > { %1994 = vmatmul.msk.bf16.vlgmr.msrb.gmra.mxu2 %vm969_vm2, %v1139_v30  ;;  %v2115_v30 = vld [vmem:[%s2637_s16] ss:$0 sm:$0xff] }
 0x3d2   : > { %1352 = vmatpush.bf16.msra.mxu2 %v2076_v9 }
 0x3d4   : > { %v1206_v31 = vpop.xlane.xlu0 %1205 }
 0x3d5   : > { %2139 = vrcp.f32 %v1206_v31 }
 0x3d6   : > { %2141 = vrcp.f32 %v2183_v55  ;;  %1353 = vmatpush.bf16.msra.mxu2 %v2075_v10 }
 0x3db   : > { %v2140_v17 = vpop.eup %2139 }
 0x3dc   : > { %v1208_v32 = vmul.f32 %v2140_v17, %v2134_v19  ;;  %v2142_v58 = vpop.eup %2141 }
 0x3dd   : > { %v1282_v59 = vmul.f32 32.0, %v2142_v58  ;;  %vm1286_vm10 = vweird.f32 %v2142_v58 }
 0x3de   : > { %v1209_v35 = vpack.c.bf16 %v1208_v32, %v1208_v32 }
 0x3df   : > { %v1283_v60 = vsub.f32 1.0, %v1282_v59 }
 0x3e7   : > { %v1211_v33 = vpop.permute.xlu0 %1210 }
 0x3e8   : > { %v1216_v34 = vsel %vm1009_vm3, %v1211_v33, 0 }
 0x3e9   : > { %1225 = vmatpush.bf16.msra.mxu0 %v1216_v34 }
 0x3ec   : > { %1996 = vmatmul.msk.bf16.vlgmr.msra.gmra.mxu0 %vm969_vm2, %v1209_v35 }
 0x3f6   : > { %v1393_v31 = vpop.f32.mrf.mxu3 }
 0x3f7   : > { %v1394_v17 = vadd.f32 %v2115_v30, %v1393_v31 }
 0x3f9   : > { %1397 = vst.msk [vmem:[#allocation4] sm:$0xff] %vm953_vm1, %v1394_v17 }
 0x3fe   : > { %v1395_v32 = vpop.f32.mrf.mxu3 }
 0x400   : > { %v1464_v33 = vld [vmem:[#allocation4] sm:$0xff] }
 0x401   : > { %v2491_v34 = vpack.c.bf16 %v1464_v33, %v1464_v33 }
 0x403   : > { %v1410_v35 = vsel %vm969_vm2, %v2491_v34, 0 }
 0x404   : > { %1419 = vmatpush.bf16.xpose.msrb.mxu0 %v1410_v35 }
 0x44d   : > { %v1087_v36 = vpop.f32.mrf.mxu0 }
 0x44e   : > { %1092 = vrot.lane.b32.xlu1 %v1087_v36, %s2660_s5  ;;  %v2116_v36 = vld [vmem:[%s2635_s14] ss:$0 sm:$0xff] }
 0x454   : > { %v1157_v37 = vpop.f32.mrf.mxu2 }
 0x455   : > { %v1089_v38 = vpop.f32.mrf.mxu0 }
 0x456   : > { %1162 = vrot.lane.b32.xlu1 %v1157_v37, %s2659_s28  ;;  %s2688_s28 = sld [smem:[#allocation10_spill]] }
 0x45c   : > { %v1159_v39 = vpop.f32.mrf.mxu2  ;;  %s871_s5 = scalar_lea.vmem %s2688_s28, %s2348_s11  ;;  %s2699_s28 = smov 8  }
 0x45d   : > { %v877_v56 = vld [vmem:[%s871_s5] sm:$0xff]  ;;  %s2692_s5 = smov 112  }
 0x469   : > { %v1227_v40 = vpop.f32.mrf.mxu0 }
 0x46a   : > { %1232 = vrot.lane.b32.xlu2 %v1227_v40, %s2658_s10  ;;  %s2693_s10 = sld [smem:[#allocation9_spill]] }
 0x470   : > { %s867_s3 = scalar_lea.vmem %s2693_s10, %s2703_s4  ;;  %s2695_s4 = smov 96  }
 0x471   : > { %v1229_v41 = vpop.f32.mrf.mxu0 }
 0x472   : > { %1317 = vperm.xlu2 %2107, %v877_v56  }
 0x47a   : > { %1470 = vrot.lane.b32.xlu2 %v2491_v34, %s2691_s30 }
 0x4c0   : > { %v1093_v44 = vpop.permute.xlu1 %1092 }
 0x4c1   : > { %1096 = vst.msk [vmem:[#allocation5] sm:$0xff] %vm1095_vm7, %v1093_v44 }
 0x4c4   : > { %v1233_v46 = vpop.permute.xlu2 %1232 }
 0x4c8   : > { %v1163_v45 = vpop.permute.xlu1 %1162 }
 0x4c9   : > { %1166 = vst.msk [vmem:[#allocation5] sm:$0xff] %vm1165_vm8, %v1163_v45 }
 0x4ca   : > { %1236 = vst.msk [vmem:[#allocation5] sm:$0xff] %vm1235_vm9, %v1233_v46 }
 0x4cc   : > { %v2479_v26 = vpop.permute.xlu2 %1317 }
 0x4d1   : > { %v1237_v47 = vld [vmem:[#allocation5] sm:$0xff] }
 0x4d2   : > { %v1238_v48 = vpack.c.bf16 %v1237_v47, %v1237_v47 }
 0x4d4   : > { %2005 = vmatmul.msk.bf16.vlgmr.msra.gmra.mxu1 %vm902_vm0, %v1238_v48  ;;  %v1471_v42 = vpop.permute.xlu2 %1470 }
 0x4d5   : > { %v1476_v43 = vsel %vm969_vm2, %v1471_v42, 0 }
 0x4d6   : > { %1485 = vmatpush.bf16.xpose.msrb.mxu2 %v1476_v43 }
 0x551   : > { %v1271_v50 = vpop.f32.mrf.mxu1 }
 0x552   : > { %v1272_v51 = vadd.f32 %v2112_v49, %v1271_v50 }
 0x554   : > { %v1275_v52 = vadd.f32 %v1272_v51, %v2354_v4  ;;  %v1284_v4 = vmul.f32 %v2142_v58, %v1283_v60  ;;  %v2117_v51 = vld [vmem:[%s867_s3] ss:$0 sm:$0xff] }
 0x555   : > { %vm1401_vm14 = vcmp.gt.f32.partialorder %v2117_v51, 0.5 }
 0x556   : > { %v1278_v53 = vsel %vm902_vm0, %v1275_v52, 0.0  ;;  %v1285_v61 = vadd.f32 %v2142_v58, %v1284_v4 }
 0x557   : > { %1279 = vadd.xlane.f32.xlu0 %v1278_v53 }
 0x558   : > { %v2451_v62 = vsel %vm1286_vm10, %v2142_v58, %v1285_v61 }
 0x559   : > { %v1273_v54 = vpop.f32.mrf.mxu1 }
 0x56b   : > { %1539 = vrot.lane.b32.xlu0 %v2491_v34, %s2692_s5 }
 0x5ca   : > { %v1280_v63 = vpop.xlane.xlu0 %1279 }
 0x5cb   : > { %v1288_v0 = vmul.f32 %v2451_v62, %v1280_v63 }
 0x5cd   : > { %v1289_v1 = vsub.f32 %v1275_v52, %v1288_v0 }
 0x5cf   : > { %v1290_v2 = vmul.f32 %v1289_v1, %v1289_v1 }
 0x5d1   : > { %v1291_v3 = vsel %vm902_vm0, %v1290_v2, 0.0 }
 0x5d2   : > { %1292 = vadd.xlane.f32.xlu1 %v1291_v3 }
 0x5dd   : > { %v1540_v44 = vpop.permute.xlu0 %1539 }
 0x5de   : > { %v1545_v45 = vsel %vm969_vm2, %v1540_v44, 0 }
 0x5df   : > { %1554 = vmatpush.bf16.xpose.msra.mxu0 %v1545_v45 }
 0x645   : > { %v1293_v11 = vpop.xlane.xlu1 %1292 }
 0x646   : > { %v1294_v12 = vmul.f32 %v1293_v11, %v2451_v62 }
 0x648   : > { %v1295_v13 = vadd.f32 1e-05, %v1294_v12 }
 0x64a   : > { %2143 = vrsqrt.f32 %v1295_v13  ;;  %vm1302_vm12 = vweird.f32 %v1295_v13 }
 0x650   : > { %v2144_v14 = vpop.eup %2143 }
 0x651   : > { %v1297_v15 = vmul.f32 %v2144_v14, %v1295_v13  ;;  %vm1303_vm11 = vweird.f32 %v2144_v14 }
 0x652   : > { %vm1304_vm13 = vmor %vm1302_vm12, %vm1303_vm11 }
 0x653   : > { %v1298_v16 = vmul.f32 %v2144_v14, %v1297_v15 }
 0x655   : > { %v1299_v18 = vmul.f32 0.5, %v1298_v16 }
 0x657   : > { %v1300_v19 = vsub.f32 1.5, %v1299_v18 }
 0x659   : > { %v1301_v20 = vmul.f32 %v2144_v14, %v1300_v19 }
 0x65b   : > { %v1305_v22 = vsel %vm1304_vm13, %v2144_v14, %v1301_v20 }
 0x65c   : > { %v1306_v24 = vmul.f32 %v1305_v22, %v1289_v1 }
 0x65e   : > { %v1310_v25 = vmul.f32 %v2113_v21, %v1306_v24 }
 0x660   : > { %v1314_v27 = vadd.f32 %v2114_v23, %v1310_v25 }
 0x662   : > { %v2482_v28 = vmul.f32 %v2479_v26, %v1314_v27 }
 0x664   : > { %v1322_v29 = vpack.c.bf16 %v2482_v28, %v2482_v28 }
 0x666   : > { %2014 = vmatmul.msk.bf16.vlgmr.msra.gmra.mxu2 %vm902_vm0, %v1322_v29 }
 0x6e9   : > { %v1355_v37 = vpop.f32.mrf.mxu2 }
 0x6ea   : > { %v1356_v38 = vadd.f32 %v2116_v36, %v1355_v37 }
 0x6ec   : > { %1359 = vst.msk [vmem:[#allocation2] sm:$0xff] %vm902_vm0, %v1356_v38 }
 0x6f1   : > { %v1357_v39 = vpop.f32.mrf.mxu2 }
 0x6f3   : > { %v1531_v40 = vld [vmem:[#allocation2] sm:$0xff] }
 0x6f4   : > { %v1532_v41 = vpack.c.bf16 %v1531_v40, %v1531_v40 }
 0x6f6   : > { %1536 = vrot.lane.b32.xlu1 %v1532_v41, %s2692_s5  ;;  %1467 = vrot.lane.b32.xlu2 %v1532_v41, %s2691_s30  ;;  %s2697_s30 = smov 80   ;;  %s2698_s5 = smov 72  }
 0x6f7   : > { %2024 = vmatmul.msk.bf16.vlgmr.msrb.gmra.mxu0 %vm969_vm2, %v1532_v41 }
 0x6fe   : > { %1608 = vrot.lane.b32.xlu2 %v2491_v34, %s2694_s29 }
 0x706   : > { %1605 = vrot.lane.b32.xlu2 %v1532_v41, %s2694_s29 }
 0x750   : > { %v1468_v46 = vpop.permute.xlu2 %1467 }
 0x751   : > { %2026 = vmatmul.msk.bf16.vlgmr.msrb.gmra.mxu2 %vm969_vm2, %v1468_v46 }
 0x758   : > { %v1609_v47 = vpop.permute.xlu2 %1608 }
 0x759   : > { %v1614_v48 = vsel %vm969_vm2, %v1609_v47, 0 }
 0x75a   : > { %1623 = vmatpush.bf16.xpose.msra.mxu2 %v1614_v48 }
 0x760   : > { %v1606_v49 = vpop.permute.xlu2 %1605 }
 0x761   : > { %2030 = vmatmul.msk.bf16.vlgmr.msra.gmra.mxu2 %vm969_vm2, %v1606_v49 }
 0x768   : > { %v1537_v50 = vpop.permute.xlu1 %1536 }
 0x769   : > { %2028 = vmatmul.msk.bf16.vlgmr.msra.gmra.mxu0 %vm969_vm2, %v1537_v50 }
 0x774   : > { %v1421_v52 = vpop.f32.mrf.mxu0 }
 0x775   : > { %v1425_v53 = vmul.f32 0.35355338, %v1421_v52 }
 0x777   : > { %v1426_v54 = vsel %vm1401_vm14, -1e+09, %v1425_v53 }
 0x778   : > { %v1427_v55 = vsel %vm969_vm2, %v1426_v54, -inf }
 0x779   : > { %1428 = vmax.xlane.f32.xlu0 %v1427_v55 }
 0x77c   : > { %v1423_v56 = vpop.f32.mrf.mxu0 }
 0x7d4   : > { %v1487_v57 = vpop.f32.mrf.mxu2 }
 0x7d5   : > { %v1491_v58 = vmul.f32 0.35355338, %v1487_v57 }
 0x7d7   : > { %v1492_v59 = vsel %vm1401_vm14, -1e+09, %v1491_v58 }
 0x7d8   : > { %v1493_v60 = vsel %vm969_vm2, %v1492_v59, -inf }
 0x7d9   : > { %1494 = vmax.xlane.f32.xlu2 %v1493_v60 }
 0x7dc   : > { %v1489_v4 = vpop.f32.mrf.mxu2 }
 0x7e4   : > { %v1625_v61 = vpop.f32.mrf.mxu2 }
 0x7e5   : > { %v1629_v63 = vmul.f32 0.35355338, %v1625_v61 }
 0x7e6   : > { %v1556_v0 = vpop.f32.mrf.mxu0 }
 0x7e7   : > { %v1560_v1 = vmul.f32 0.35355338, %v1556_v0  ;;  %v1630_v2 = vsel %vm1401_vm14, -1e+09, %v1629_v63 }
 0x7e8   : > { %v1631_v3 = vsel %vm969_vm2, %v1630_v2, -inf }
 0x7e9   : > { %1632 = vmax.xlane.f32.xlu1 %v1631_v3  ;;  %v1561_v5 = vsel %vm1401_vm14, -1e+09, %v1560_v1  ;;  %v2080_v1 = vld [vmem:[%s2638_s17 + $0x8] sm:$0xff] }
 0x7ea   : > { %v1562_v6 = vsel %vm969_vm2, %v1561_v5, -inf  ;;  %1700 = vmatpush.bf16.msrb.mxu0 %v2080_v1 }
 0x7eb   : > { %1563 = vmax.xlane.f32.xlu2 %v1562_v6 }
 0x7ec   : > { %v1429_v7 = vpop.xlane.xlu0 %1428  ;;  %v1627_v8 = vpop.f32.mrf.mxu2 }
 0x7ed   : > { %v1430_v9 = vsub.f32 %v1426_v54, %v1429_v7  ;;  %v2118_v7 = vld [vmem:[%s2639_s18] ss:$0 sm:$0xff] }
 0x7ee   : > { %v1558_v10 = vpop.f32.mrf.mxu0 }
 0x7ef   : > { %v1431_v11 = vmul.f32 1.442695, %v1430_v9 }
 0x7f1   : > { %2145 = vpow2.f32 %v1431_v11 }
 0x7f7   : > { %v2146_v12 = vpop.eup %2145 }
 0x7f8   : > { %v1433_v13 = vsel %vm969_vm2, %v2146_v12, 0.0 }
 0x7f9   : > { %1434 = vadd.xlane.f32.xlu0 %v1433_v13 }
 0x802   : > { %1440 = vrot.lane.b32.xlu1 %v2491_v34, %s2695_s4 }
 0x803   : > { %1505 = vrot.lane.b32.xlu2 %v2491_v34, %s2696_s6 }
 0x84c   : > { %v1495_v14 = vpop.xlane.xlu2 %1494 }
 0x84d   : > { %v1496_v15 = vsub.f32 %v1492_v59, %v1495_v14 }
 0x84f   : > { %v1497_v16 = vmul.f32 1.442695, %v1496_v15 }
 0x851   : > { %2147 = vpow2.f32 %v1497_v16 }
 0x857   : > { %v2148_v18 = vpop.eup %2147 }
 0x858   : > { %v1499_v19 = vsel %vm969_vm2, %v2148_v18, 0.0 }
 0x859   : > { %1500 = vadd.xlane.f32.xlu2 %v1499_v19  ;;  %v2082_v19 = vld [vmem:[%s2642_s21 + $0x8] sm:$0xff] }
 0x85c   : > { %v1633_v20 = vpop.xlane.xlu1 %1632 }
 0x85d   : > { %v1634_v23 = vsub.f32 %v1630_v2, %v1633_v20  ;;  %v2079_v2 = vld [vmem:[%s2638_s17] sm:$0xff] }
 0x85e   : > { %v1564_v21 = vpop.xlane.xlu2 %1563  ;;  %1701 = vmatpush.bf16.msrb.mxu0 %v2079_v2 }
 0x85f   : > { %v1565_v22 = vsub.f32 %v1561_v5, %v1564_v21  ;;  %v1635_v25 = vmul.f32 1.442695, %v1634_v23 }
 0x861   : > { %v1566_v24 = vmul.f32 1.442695, %v1565_v22  ;;  %v2086_v22 = vld [vmem:[%s2644_s23 + $0x18] sm:$0xff] }
 0x862   : > { %1823 = vmatpush.bf16.msrb.mxu2 %v2086_v22 }
 0x863   : > { %2149 = vpow2.f32 %v1566_v24  ;;  %v2085_v24 = vld [vmem:[%s2644_s23 + $0x10] sm:$0xff] }
 0x864   : > { %2151 = vpow2.f32 %v1635_v25 }
 0x866   : > { %v1506_v27 = vpop.permute.xlu2 %1505  ;;  %1824 = vmatpush.bf16.msrb.mxu2 %v2085_v24 }
 0x867   : > { %v1511_v29 = vsel %vm1009_vm3, %v1506_v27, 0 }
 0x868   : > { %1520 = vmatpush.bf16.msra.mxu3 %v1511_v29 }
 0x869   : > { %v2150_v30 = vpop.eup %2149 }
 0x86a   : > { %v1568_v31 = vsel %vm969_vm2, %v2150_v30, 0.0  ;;  %v2152_v32 = vpop.eup %2151 }
 0x86b   : > { %1569 = vadd.xlane.f32.xlu0 %v1568_v31  ;;  %v1637_v33 = vsel %vm969_vm2, %v2152_v32, 0.0 }
 0x86c   : > { %v1435_v17 = vpop.xlane.xlu0 %1434 }
 0x86d   : > { %2153 = vrcp.f32 %v1435_v17 }
 0x871   : > { %1574 = vrot.lane.b32.xlu2 %v2491_v34, %s2697_s30 }
 0x873   : > { %v2154_v35 = vpop.eup %2153  ;;  %1638 = vadd.xlane.f32.xlu0 %v1637_v33 }
 0x874   : > { %v1437_v36 = vmul.f32 %v2154_v35, %v2146_v12  ;;  %v1441_v37 = vpop.permute.xlu1 %1440  ;;  %v2120_v35 = vld [vmem:[%s2641_s20] ss:$0 sm:$0xff] }
 0x875   : > { %v1446_v38 = vsel %vm1009_vm3, %v1441_v37, 0 }
 0x876   : > { %1455 = vmatpush.bf16.msrb.mxu1 %v1446_v38  ;;  %v1438_v39 = vpack.c.bf16 %v1437_v36, %v1437_v36 }
 0x879   : > { %2025 = vmatmul.msk.bf16.vlgmr.msrb.gmra.mxu1 %vm969_vm2, %v1438_v39 }
 0x887   : > { %1643 = vrot.lane.b32.xlu0 %v2491_v34, %s2698_s5 }
 0x8cc   : > { %v1501_v40 = vpop.xlane.xlu2 %1500 }
 0x8cd   : > { %2155 = vrcp.f32 %v1501_v40 }
 0x8d3   : > { %v2156_v41 = vpop.eup %2155 }
 0x8d4   : > { %v1503_v42 = vmul.f32 %v2156_v41, %v2148_v18  ;;  %v1575_v43 = vpop.permute.xlu2 %1574  ;;  %v2084_v41 = vld [vmem:[%s2644_s23 + $0x8] sm:$0xff] }
 0x8d5   : > { %v1580_v44 = vsel %vm1009_vm3, %v1575_v43, 0  ;;  %1825 = vmatpush.bf16.msrb.mxu2 %v2084_v41  ;;  %v2121_v43 = vld [vmem:[%s2643_s22] ss:$0 sm:$0xff] }
 0x8d6   : > { %v1504_v45 = vpack.c.bf16 %v1503_v42, %v1503_v42  ;;  %1589 = vmatpush.bf16.msra.mxu1 %v1580_v44  ;;  %v2083_v42 = vld [vmem:[%s2644_s23] sm:$0xff] }
 0x8d8   : > { %2027 = vmatmul.msk.bf16.vlgmr.msra.gmra.mxu3 %vm969_vm2, %v1504_v45 }
 0x8d9   : > { %1826 = vmatpush.bf16.msrb.mxu2 %v2083_v42 }
 0x8da   : > { %1771 = vmatpush.bf16.msrb.mxu1 %v2082_v19 }
 0x8de   : > { %v1570_v46 = vpop.xlane.xlu0 %1569 }
 0x8df   : > { %2157 = vrcp.f32 %v1570_v46 }
 0x8e5   : > { %v2158_v47 = vpop.eup %2157 }
 0x8e6   : > { %v1572_v48 = vmul.f32 %v2158_v47, %v2150_v30  ;;  %v1639_v50 = vpop.xlane.xlu0 %1638 }
 0x8e7   : > { %2159 = vrcp.f32 %v1639_v50 }
 0x8e8   : > { %v1573_v49 = vpack.c.bf16 %v1572_v48, %v1572_v48 }
 0x8ea   : > { %2029 = vmatmul.msk.bf16.vlgmr.msra.gmra.mxu1 %vm969_vm2, %v1573_v49  ;;  %v2122_v49 = vld [vmem:[%s2645_s24] ss:$0 sm:$0xff] }
 0x8ed   : > { %v2160_v34 = vpop.eup %2159 }
 0x8ee   : > { %v1641_v52 = vmul.f32 %v2160_v34, %v2152_v32  ;;  %v2119_v32 = vld [vmem:[%s2640_s19] ss:$0 sm:$0xff] }
 0x8f0   : > { %v1642_v55 = vpack.c.bf16 %v1641_v52, %v1641_v52 }
 0x8f6   : > { %v1457_v51 = vpop.f32.mrf.mxu1 }
 0x8f7   : > { %1461 = vst.msk [vmem:[#allocation5] sm:$0xff] %vm969_vm2, %v1457_v51 }
 0x8f9   : > { %v1644_v53 = vpop.permute.xlu0 %1643 }
 0x8fa   : > { %v1649_v54 = vsel %vm1009_vm3, %v1644_v53, 0 }
 0x8fb   : > { %1658 = vmatpush.bf16.msrb.mxu3 %v1649_v54 }
 0x8fe   : > { %v1459_v56 = vpop.f32.mrf.mxu1  ;;  %2031 = vmatmul.msk.bf16.vlgmr.msrb.gmra.mxu3 %vm969_vm2, %v1642_v55 }
 0x95b   : > { %v1522_v57 = vpop.f32.mrf.mxu3 }
 0x95c   : > { %1527 = vrot.lane.b32.xlu1 %v1522_v57, %s2699_s28 }
 0x963   : > { %v1524_v58 = vpop.f32.mrf.mxu3 }
 0x967   : > { %v1591_v59 = vpop.f32.mrf.mxu1 }
 0x968   : > { %1596 = vrot.lane.b32.xlu2 %v1591_v59, %s2700_s0 }
 0x96f   : > { %v1593_v60 = vpop.f32.mrf.mxu1 }
 0x981   : > { %v1660_v4 = vpop.f32.mrf.mxu3 }
 0x982   : > { %1665 = vrot.lane.b32.xlu1 %v1660_v4, %s2701_s2  ;;  %s875_s2 = scalar_lea.vmem %s2648_s27, %s2348_s11 }
 0x989   : > { %v1662_v61 = vpop.f32.mrf.mxu3 }
 0x9c2   : > { %v1597_v0 = vpop.permute.xlu2 %1596 }
 0x9ce   : > { %v1528_v63 = vpop.permute.xlu1 %1527 }
 0x9cf   : > { %1530 = vst.msk [vmem:[#allocation5] sm:$0xff] %vm1095_vm7, %v1528_v63 }
 0x9d0   : > { %1599 = vst.msk [vmem:[#allocation5] sm:$0xff] %vm1165_vm8, %v1597_v0 }
 0x9f4   : > { %v1666_v3 = vpop.permute.xlu1 %1665 }
 0x9f5   : > { %1668 = vst.msk [vmem:[#allocation5] sm:$0xff] %vm1235_vm9, %v1666_v3 }
 0x9fc   : > { %v1669_v5 = vld [vmem:[#allocation5] sm:$0xff] }
 0x9fd   : > { %v1670_v6 = vpack.c.bf16 %v1669_v5, %v1669_v5  ;;  %v2123_v5 = vld [vmem:[%s2646_s25] ss:$0 sm:$0xff] }
 0x9ff   : > { %2040 = vmatmul.msk.bf16.vlgmr.msrb.gmra.mxu0 %vm902_vm0, %v1670_v6 }
 0xa7c   : > { %v1703_v8 = vpop.f32.mrf.mxu0 }
 0xa7d   : > { %v1704_v9 = vadd.f32 %v2118_v7, %v1703_v8 }
 0xa7f   : > { %v1707_v10 = vadd.f32 %v1704_v9, %v2482_v28  ;;  %v2081_v28 = vld [vmem:[%s2642_s21] sm:$0xff] }
 0xa80   : > { %1772 = vmatpush.bf16.msrb.mxu1 %v2081_v28 }
 0xa81   : > { %v1710_v11 = vsel %vm902_vm0, %v1707_v10, 0.0 }
 0xa82   : > { %1711 = vadd.xlane.f32.xlu2 %v1710_v11 }
 0xa84   : > { %v1705_v12 = vpop.f32.mrf.mxu0 }
 0xaf5   : > { %v1712_v13 = vpop.xlane.xlu2 %1711 }
 0xaf6   : > { %v1713_v14 = vmul.f32 %v1712_v13, %v2451_v62 }
 0xaf8   : > { %v1714_v15 = vsub.f32 %v1707_v10, %v1713_v14 }
 0xafa   : > { %v1715_v16 = vmul.f32 %v1714_v15, %v1714_v15 }
 0xafc   : > { %v1716_v18 = vsel %vm902_vm0, %v1715_v16, 0.0 }
 0xafd   : > { %1717 = vadd.xlane.f32.xlu0 %v1716_v18 }
 0xb70   : > { %v1718_v20 = vpop.xlane.xlu0 %1717 }
 0xb71   : > { %v1719_v21 = vmul.f32 %v1718_v20, %v2451_v62 }
 0xb73   : > { %v1720_v23 = vadd.f32 1e-05, %v1719_v21 }
 0xb75   : > { %2161 = vrsqrt.f32 %v1720_v23  ;;  %vm1727_vm2 = vweird.f32 %v1720_v23 }
 0xb7b   : > { %v2162_v25 = vpop.eup %2161 }
 0xb7c   : > { %v1722_v27 = vmul.f32 %v2162_v25, %v1720_v23  ;;  %vm1728_vm15 = vweird.f32 %v2162_v25 }
 0xb7d   : > { %vm1729_vm3 = vmor %vm1727_vm2, %vm1728_vm15 }
 0xb7e   : > { %v1723_v29 = vmul.f32 %v2162_v25, %v1722_v27 }
 0xb80   : > { %v1724_v30 = vmul.f32 0.5, %v1723_v29 }
 0xb82   : > { %v1725_v31 = vsub.f32 1.5, %v1724_v30 }
 0xb84   : > { %v1726_v17 = vmul.f32 %v2162_v25, %v1725_v31 }
 0xb86   : > { %v1730_v33 = vsel %vm1729_vm3, %v2162_v25, %v1726_v17 }
 0xb87   : > { %v1731_v36 = vmul.f32 %v1730_v33, %v1714_v15 }
 0xb89   : > { %v1735_v37 = vmul.f32 %v2119_v32, %v1731_v36 }
 0xb8b   : > { %v1739_v38 = vadd.f32 %v2120_v35, %v1735_v37 }
 0xb8d   : > { %v1740_v39 = vmul.f32 %v1739_v38, %v2479_v26 }
 0xb8f   : > { %v1741_v40 = vpack.c.bf16 %v1740_v39, %v1740_v39 }
 0xb91   : > { %2049 = vmatmul.msk.bf16.vlgmr.msrb.gmra.mxu1 %vm902_vm0, %v1741_v40 }
 0xc0e   : > { %v1774_v44 = vpop.f32.mrf.mxu1 }
 0xc0f   : > { %v1775_v45 = vadd.f32 %v2121_v43, %v1774_v44 }
 0xc11   : > { %v1778_v46 = vmax.f32 %v1775_v45, 0.0 }
 0xc13   : > { %v1779_v47 = vpack.c.bf16 %v1778_v46, %v1778_v46 }
 0xc15   : > { %2066 = vmatmul.msk.bf16.vlgmr.msrb.gmra.mxu2 %vm953_vm1, %v1779_v47 }
 0xc16   : > { %v1776_v48 = vpop.f32.mrf.mxu1 }
 0xc98   : > { %v1828_v50 = vpop.f32.mrf.mxu2 }
 0xc99   : > { %v1829_v34 = vadd.f32 %v2122_v49, %v1828_v50 }
 0xc9b   : > { %v1832_v51 = vadd.f32 %v1829_v34, %v1740_v39 }
 0xc9d   : > { %v1835_v52 = vsel %vm902_vm0, %v1832_v51, 0.0 }
 0xc9e   : > { %1836 = vadd.xlane.f32.xlu1 %v1835_v52 }
 0xca0   : > { %v1830_v53 = vpop.f32.mrf.mxu2 }
 0xd11   : > { %v1837_v54 = vpop.xlane.xlu1 %1836 }
 0xd12   : > { %v1838_v55 = vmul.f32 %v1837_v54, %v2451_v62 }
 0xd14   : > { %v1839_v56 = vsub.f32 %v1832_v51, %v1838_v55 }
 0xd16   : > { %v1840_v57 = vmul.f32 %v1839_v56, %v1839_v56 }
 0xd18   : > { %v1841_v58 = vsel %vm902_vm0, %v1840_v57, 0.0 }
 0xd19   : > { %1842 = vadd.xlane.f32.xlu2 %v1841_v58 }
 0xd8c   : > { %v1843_v59 = vpop.xlane.xlu2 %1842 }
 0xd8d   : > { %v1844_v60 = vmul.f32 %v1843_v59, %v2451_v62  ;;  %v2124_v62 = vld [vmem:[%s2647_s26] ss:$0 sm:$0xff] }
 0xd8f   : > { %v1845_v4 = vadd.f32 1e-05, %v1844_v60 }
 0xd91   : > { %2163 = vrsqrt.f32 %v1845_v4  ;;  %vm1852_vm4 = vweird.f32 %v1845_v4 }
 0xd97   : > { %v2164_v61 = vpop.eup %2163 }
 0xd98   : > { %v1847_v63 = vmul.f32 %v2164_v61, %v1845_v4  ;;  %vm1853_vm1 = vweird.f32 %v2164_v61 }
 0xd99   : > { %vm1854_vm5 = vmor %vm1852_vm4, %vm1853_vm1 }
 0xd9a   : > { %v1848_v0 = vmul.f32 %v2164_v61, %v1847_v63 }
 0xd9c   : > { %v1849_v1 = vmul.f32 0.5, %v1848_v0 }
 0xd9e   : > { %v1850_v2 = vsub.f32 1.5, %v1849_v1 }
 0xda0   : > { %v1851_v3 = vmul.f32 %v2164_v61, %v1850_v2 }
 0xda2   : > { %v1855_v6 = vsel %vm1854_vm5, %v2164_v61, %v1851_v3 }
 0xda3   : > { %v1856_v7 = vmul.f32 %v1855_v6, %v1839_v56 }
 0xda5   : > { %v1860_v8 = vmul.f32 %v2123_v5, %v1856_v7 }
 0xda7   : > { %v1864_v9 = vadd.f32 %v2124_v62, %v1860_v8 }
 0xda9   : > { %v1865_v10 = vmul.f32 %v1864_v9, %v2479_v26 }
 0xdab   : > { %1866 = vst.msk [vmem:[%s875_s2] sm:$0xff] %vm902_vm0, %v1865_v10 }
 0xdac PF: > { %s37_s7 = sadd.s32 1, %s2171_s7  }
 0xdad   : > { %p34_p4 = scmp.ge.s32.totalorder %s37_s7, 4  }
 0xdaf   :  { %36 = sbr.rel (!%p34_p4) target bundleno = 13 (0xd), region = 170 }

</bundles_post_ra>
